<compile_context>
chip_gen: v7x
topology: tpu7x:2x2x1
jax: 0.10.0
libtpu: 0.0.40
codegen_flags: <defaults>
</compile_context>

<pallas_src>
import math

import jax
import jax.numpy as jnp
from jax.experimental import pallas as pl
from jax.experimental.pallas import tpu as pltpu

# ----------------------------- config (small) --------------------------------
PAD_IDX, EOS_IDX, BOS_IDX, UNK_IDX = 0, 1, 2, 3
VOCAB_SIZE = 16
WORD_EMB_DIM = 32          # dim_in  (scaled down from 256)
AE_DIM = 32                # dim_out (scaled down from 256)
N_HEADS = 4
N_LAYERS = 4
MAX_LEN = 16
BATCH = 2
SEQ = 8
NEG_BIG = -1e30            # finite "-inf" -> NaN-free softmax on all-PAD rows

assert WORD_EMB_DIM % N_HEADS == 0

_VSPEC = pl.BlockSpec(memory_space=pltpu.MemorySpace.VMEM)


# ------------------------------ fused kernel ---------------------------------

def _d2ae_kernel(tok_ref, table_ref, qkv_ref, ff1_ref, dcol_ref, lin_ref, out_ref):
    """Entire Definition2AutoEncoding forward in one kernel.

    tok_ref   : (B, S) int32 token ids (batch-major)
    table_ref : (V + MAX_LEN, D)  rows [0:V) embedding (PAD row zero), [V:) PE
    qkv_ref   : (L, D+1, 3D)      rows [0:D) = W_qkv (matmul layout), row D = b_qkv
    ff1_ref   : (L, D+1, 2D)      rows [0:D) = W_ff1,  row D = b_ff1
    dcol_ref  : (L, 3D+6, D)      rows [0:D)=W_o, [D:3D)=W_ff2,
                                  3D+{0..5} = b_o, b_ff2, ln1_g, ln1_b, ln2_g, ln2_b
    lin_ref   : (D+1, Dout)       rows [0:D) = final W, row D = final b
    out_ref   : (B, Dout)
    """
    B, S = tok_ref.shape
    V = VOCAB_SIZE
    L, _, D3 = qkv_ref.shape
    D = D3 // 3
    H = N_HEADS
    Dh = D // H
    N = B * S
    scale = 1.0 / math.sqrt(Dh)

    # ---- in-kernel prologue: embedding gather + PE + pad masks ----
    tok = tok_ref[...]                                                  # (B, S) i32
    onehot = (jax.lax.broadcasted_iota(jnp.int32, (B, S, V), 2)
              == tok[:, :, None]).astype(jnp.float32)                   # (B, S, V)
    emb = jnp.dot(onehot.reshape(N, V), table_ref[0:V, :],
                  preferred_element_type=jnp.float32)                   # (N, D)
    pe = table_ref[V:V + S, :]                                          # (S, D)
    x = (emb.reshape(B, S, D) + pe[None, :, :]).reshape(N, D)

    padf = (tok == PAD_IDX).astype(jnp.float32)                         # (B, S)
    # hoisted once: additive key-padding bias, pre-broadcast to (B, S, S)
    bias = jnp.broadcast_to((padf * NEG_BIG)[:, None, :], (B, S, S))
    keep = (1.0 - padf).reshape(B, S, 1)                                # (B, S, 1)

    def _ln(y, g, b2):                    # LayerNorm over last dim, eps=1e-5 (f32)
        mu = jnp.mean(y, axis=-1, keepdims=True)
        yc = y - mu
        var = jnp.mean(yc * yc, axis=-1, keepdims=True)
        return yc * jax.lax.rsqrt(var + 1e-5) * g + b2

    for l in range(L):                    # static unroll: 4 layers
        qk_blk = qkv_ref[l]               # (D+1, 3D)
        f1_blk = ff1_ref[l]               # (D+1, 2D)
        dc_blk = dcol_ref[l]              # (3D+6, D)

        # ---- fused qkv projection: ONE (N,D)@(D,3D) matmul per layer ----
        qkv = jnp.dot(x, qk_blk[0:D, :],
                      preferred_element_type=jnp.float32) + qk_blk[D:D + 1, :]

        # ---- per-head scores/softmax on tiny (S,S) blocks ----
        heads = []
        for h in range(H):                # static unroll: 4 heads
            qh = (qkv[:, h * Dh:(h + 1) * Dh] * scale).reshape(B, S, Dh)
            kh = qkv[:, D + h * Dh:D + (h + 1) * Dh].reshape(B, S, Dh)
            vh = qkv[:, 2 * D + h * Dh:2 * D + (h + 1) * Dh].reshape(B, S, Dh)
            sc = jnp.einsum("bqd,bkd->bqk", qh, kh,
                            preferred_element_type=jnp.float32) + bias
            m = jnp.max(sc, axis=-1, keepdims=True)
            p = jnp.exp(sc - m)
            p = p * pl.reciprocal(jnp.sum(p, axis=-1, keepdims=True), approx=True)
            oh = jnp.einsum("bqk,bkd->bqd", p, vh,
                            preferred_element_type=jnp.float32)
            heads.append(oh.reshape(N, Dh))
        o_cat = jnp.concatenate(heads, axis=-1)                          # (N, D)

        # ---- fused out-proj: ONE (N,D)@(D,D) matmul ----
        attn = (jnp.dot(o_cat, dc_blk[0:D, :],
                        preferred_element_type=jnp.float32)
                + dc_blk[3 * D:3 * D + 1, :])
        x = _ln(x + attn, dc_blk[3 * D + 2:3 * D + 3, :],
                dc_blk[3 * D + 3:3 * D + 4, :])

        # ---- feed-forward (Linear -> ReLU -> Linear) ----
        ff = jnp.maximum(
            jnp.dot(x, f1_blk[0:D, :], preferred_element_type=jnp.float32)
            + f1_blk[D:D + 1, :], 0.0)
        ff = (jnp.dot(ff, dc_blk[D:3 * D, :],
                      preferred_element_type=jnp.float32)
              + dc_blk[3 * D + 1:3 * D + 2, :])
        x = _ln(x + ff, dc_blk[3 * D + 4:3 * D + 5, :],
                dc_blk[3 * D + 5:3 * D + 6, :])

    # ---- epilogue: masked sum over sequence -> ReLU -> final Linear ----
    summed = jnp.sum(x.reshape(B, S, D) * keep, axis=1)                  # (B, D)
    summed = jnp.maximum(summed, 0.0)
    out_ref[...] = (jnp.dot(summed, lin_ref[0:D, :],
                            preferred_element_type=jnp.float32)
                    + lin_ref[D:D + 1, :])


def definition2autoencoding_forward(params, gloss_tensor):
    """gloss_tensor: (S, B) int32 token ids (seq-first, like the PyTorch module)."""
    tok = gloss_tensor.T.astype(jnp.int32)          # (B, S): only op outside the kernel
    args = (tok, params["tok_table"], params["qkv_blk"], params["ff1_blk"],
            params["dcol_blk"], params["lin_blk"])
    b = tok.shape[0]
    d_out = params["lin_blk"].shape[-1]
    return pl.pallas_call(
        _d2ae_kernel,
        out_shape=jax.ShapeDtypeStruct((b, d_out), jnp.float32),
        in_specs=[_VSPEC] * len(args),
        out_specs=_VSPEC,
    )(*args)


# --------------------------- pure-JAX reference -------------------------------

def _reference_forward(params, gloss_tensor):
    raw = params["raw"]
    s, b = gloss_tensor.shape
    tok = gloss_tensor.T
    pad = tok == PAD_IDX
    x = raw["embedding"][tok] + raw["pe"][:s][None, :, :]
    bias4 = jnp.where(pad, NEG_BIG, 0.0)[:, None, None, :]        # (B,1,1,S)
    keep = jnp.where(pad, 0.0, 1.0)[:, :, None]
    D = x.shape[-1]
    H = N_HEADS
    Dh = D // H
    scale = 1.0 / math.sqrt(Dh)
    x = x.reshape(b * s, D)

    def ln(y, g, bt):
        mu = jnp.mean(y, axis=-1, keepdims=True)
        yc = y - mu
        var = jnp.mean(yc * yc, axis=-1, keepdims=True)
        return yc * jax.lax.rsqrt(var + 1e-5) * g + bt

    for lyr in raw["layers"]:
        qkv = x @ lyr["in_proj_w"].T + lyr["in_proj_b"]
        q = (qkv[:, 0:D] * scale).reshape(b, s, H, Dh)
        k = qkv[:, D:2 * D].reshape(b, s, H, Dh)
        v = qkv[:, 2 * D:3 * D].reshape(b, s, H, Dh)
        sc = jnp.einsum("bqhd,bkhd->bhqk", q, k) + bias4
        p = jax.nn.softmax(sc, axis=-1)
        o = jnp.einsum("bhqk,bkhd->bqhd", p, v).reshape(b * s, D)
        attn = o @ lyr["out_proj_w"].T + lyr["out_proj_b"]
        x = ln(x + attn, lyr["ln1_g"], lyr["ln1_b"])
        ff = jnp.maximum(x @ lyr["ff1_w"].T + lyr["ff1_b"], 0.0)
        ff = ff @ lyr["ff2_w"].T + lyr["ff2_b"]
        x = ln(x + ff, lyr["ln2_g"], lyr["ln2_b"])

    summed = jnp.sum(x.reshape(b, s, D) * keep, axis=1)
    return jnp.maximum(summed, 0.0) @ raw["lin_w"].T + raw["lin_b"]


# ----------------------------- parameter init --------------------------------

def sinusoidal_pe(max_len, d):
    pos = jnp.arange(max_len, dtype=jnp.float32)[:, None]
    div = jnp.exp(jnp.arange(0, d, 2, dtype=jnp.float32) * (-math.log(10000.0) / d))
    pe = jnp.zeros((max_len, d), jnp.float32)
    pe = pe.at[:, 0::2].set(jnp.sin(pos * div))
    pe = pe.at[:, 1::2].set(jnp.cos(pos * div))
    return pe


def init_params(key, vocab=VOCAB_SIZE, d=WORD_EMB_DIM, d_out=AE_DIM,
                n_layers=N_LAYERS, max_len=MAX_LEN):
    keys = iter(jax.random.split(key, 64))

    def rnd(shape, scale=0.05):
        return jax.random.normal(next(keys), shape, jnp.float32) * scale

    # torch-layout tensors, as the nn.Module would hold them
    layers = []
    for _ in range(n_layers):
        layers.append(dict(
            in_proj_w=rnd((3 * d, d)), in_proj_b=rnd((3 * d,)),
            out_proj_w=rnd((d, d)), out_proj_b=rnd((d,)),
            ff1_w=rnd((2 * d, d)), ff1_b=rnd((2 * d,)),
            ff2_w=rnd((d, 2 * d)), ff2_b=rnd((d,)),
            ln1_g=1.0 + rnd((d,)), ln1_b=rnd((d,)),
            ln2_g=1.0 + rnd((d,)), ln2_b=rnd((d,)),
        ))
    lin_w_t = rnd((d_out, d))
    lin_b_t = rnd((d_out,))
    emb = rnd((vocab, d)).at[PAD_IDX].set(0.0)        # padding_idx row zeroed
    pe = sinusoidal_pe(max_len, d)

    raw = dict(embedding=emb, pe=pe, layers=layers, lin_w=lin_w_t, lin_b=lin_b_t)

    # ---- one-time packing: matmul-ready layout, 6 kernel inputs total ----
    def pack(fn):
        return jnp.stack([fn(p) for p in layers])

    qkv_blk = pack(lambda p: jnp.concatenate(
        [p["in_proj_w"].T, p["in_proj_b"][None, :]], axis=0))            # (L, D+1, 3D)
    ff1_blk = pack(lambda p: jnp.concatenate(
        [p["ff1_w"].T, p["ff1_b"][None, :]], axis=0))                    # (L, D+1, 2D)
    dcol_blk = pack(lambda p: jnp.concatenate(
        [p["out_proj_w"].T,                    # rows [0:D)
         p["ff2_w"].T,                         # rows [D:3D)
         p["out_proj_b"][None, :],             # row 3D+0
         p["ff2_b"][None, :],                  # row 3D+1
         p["ln1_g"][None, :], p["ln1_b"][None, :],   # 3D+2, 3D+3
         p["ln2_g"][None, :], p["ln2_b"][None, :]],  # 3D+4, 3D+5
        axis=0))                                                          # (L, 3D+6, D)
    lin_blk = jnp.concatenate([lin_w_t.T, lin_b_t[None, :]], axis=0)      # (D+1, Dout)
    tok_table = jnp.concatenate([emb, pe], axis=0)                        # (V+MAX_LEN, D)

    return dict(raw=raw, tok_table=tok_table, qkv_blk=qkv_blk,
                ff1_blk=ff1_blk, dcol_blk=dcol_blk, lin_blk=lin_blk)


# ----------------------------------- main -------------------------------------

if __name__ == "__main__":
    root = jax.random.PRNGKey(0)
    pkey, dkey = jax.random.split(root, 2)

    params = init_params(pkey)

    # gloss_tensor: (S, B) token ids, seq-first like the PyTorch module expects
    gloss = jax.random.randint(dkey, (SEQ, BATCH), 4, VOCAB_SIZE, dtype=jnp.int32)
    # give sequence 1 an EOS + trailing padding (exercises src_key_padding_mask)
    gloss = gloss.at[SEQ - 3, 1].set(EOS_IDX)
    gloss = gloss.at[SEQ - 2:, 1].set(PAD_IDX)

    fwd = jax.jit(definition2autoencoding_forward)
    out = jax.block_until_ready(fwd(params, gloss))

    assert out.shape == (BATCH, AE_DIM)
    assert bool(jnp.all(jnp.isfinite(out)))

    ref = jax.block_until_ready(jax.jit(_reference_forward)(params, gloss))
    max_diff = float(jnp.max(jnp.abs(out - ref)))
    assert bool(jnp.allclose(out, ref, atol=5e-2, rtol=5e-2)), (
        f"Pallas kernel diverged from pure-JAX reference (max|diff|={max_diff})")

    print("KERNEL_OK")
</pallas_src>

<mosaic_0001>
module attributes {stable_mosaic.version = 11 : i64} {
  func.func @_d2ae_kernel(%arg0: memref<2x8xi32, #tpu.memory_space<vmem>>, %arg1: memref<32x32xf32, #tpu.memory_space<vmem>>, %arg2: memref<4x33x96xf32, #tpu.memory_space<vmem>>, %arg3: memref<4x33x64xf32, #tpu.memory_space<vmem>>, %arg4: memref<4x102x32xf32, #tpu.memory_space<vmem>>, %arg5: memref<33x32xf32, #tpu.memory_space<vmem>>, %arg6: memref<2x32xf32, #tpu.memory_space<vmem>>) attributes {dimension_semantics = [], scalar_prefetch = 0 : i64, scratch_operands = 0 : i64, tpu.core_type = #tpu.core_type<tc>} {
    %c0 = arith.constant 0 : index
    %c0_0 = arith.constant 0 : index
    %0 = vector.load %arg0[%c0, %c0_0] : memref<2x8xi32, #tpu.memory_space<vmem>>, vector<2x8xi32>
    %1 = tpu.iota {dimensions = array<i32: 2>} : vector<2x8x16xi32>
    %2 = vector.shape_cast %0 : vector<2x8xi32> to vector<2x8x1xi32>
    %3 = vector.broadcast %2 : vector<2x8x1xi32> to vector<2x8x16xi32>
    %4 = arith.cmpi eq, %1, %3 : vector<2x8x16xi32>
    %5 = arith.extui %4 : vector<2x8x16xi1> to vector<2x8x16xi32>
    %6 = arith.sitofp %5 : vector<2x8x16xi32> to vector<2x8x16xf32>
    %7 = vector.shape_cast %6 : vector<2x8x16xf32> to vector<16x16xf32>
    %c0_1 = arith.constant 0 : index
    %c0_2 = arith.constant 0 : index
    %8 = vector.load %arg1[%c0_1, %c0_2] : memref<32x32xf32, #tpu.memory_space<vmem>>, vector<16x32xf32>
    %cst = arith.constant dense<0.000000e+00> : vector<16x32xf32>
    %9 = tpu.matmul %7, %8, %cst {dimension_numbers = #tpu.dot_dimension_numbers<[1], [0], [0], [1], [0, 0, 1, 1], [], []>} : vector<16x16xf32>, vector<16x32xf32>, vector<16x32xf32> -> vector<16x32xf32>
    %c16 = arith.constant 16 : index
    %c0_3 = arith.constant 0 : index
    %10 = vector.load %arg1[%c16, %c0_3] : memref<32x32xf32, #tpu.memory_space<vmem>>, vector<8x32xf32>
    %11 = vector.shape_cast %9 : vector<16x32xf32> to vector<2x8x32xf32>
    %12 = vector.shape_cast %10 : vector<8x32xf32> to vector<1x8x32xf32>
    %13 = vector.broadcast %12 : vector<1x8x32xf32> to vector<2x8x32xf32>
    %14 = arith.addf %11, %13 : vector<2x8x32xf32>
    %15 = vector.shape_cast %14 : vector<2x8x32xf32> to vector<16x32xf32>
    %c0_i32 = arith.constant 0 : i32
    %16 = vector.broadcast %c0_i32 : i32 to vector<2x8xi32>
    %17 = arith.cmpi eq, %0, %16 : vector<2x8xi32>
    %18 = arith.extui %17 : vector<2x8xi1> to vector<2x8xi32>
    %19 = arith.sitofp %18 : vector<2x8xi32> to vector<2x8xf32>
    %cst_4 = arith.constant -1.000000e+30 : f32
    %20 = vector.broadcast %cst_4 : f32 to vector<2x8xf32>
    %21 = arith.mulf %19, %20 : vector<2x8xf32>
    %22 = vector.shape_cast %21 : vector<2x8xf32> to vector<2x1x8xf32>
    %23 = vector.shape_cast %22 : vector<2x1x8xf32> to vector<2x1x8xf32>
    %24 = vector.broadcast %23 : vector<2x1x8xf32> to vector<2x8x8xf32>
    %cst_5 = arith.constant 1.000000e+00 : f32
    %25 = vector.broadcast %cst_5 : f32 to vector<2x8xf32>
    %26 = arith.subf %25, %19 : vector<2x8xf32>
    %27 = vector.shape_cast %26 : vector<2x8xf32> to vector<2x8x1xf32>
    %c0_6 = arith.constant 0 : index
    %c0_7 = arith.constant 0 : index
    %c0_8 = arith.constant 0 : index
    %28 = vector.load %arg2[%c0_6, %c0_7, %c0_8] : memref<4x33x96xf32, #tpu.memory_space<vmem>>, vector<1x33x96xf32>
    %29 = vector.shape_cast %28 : vector<1x33x96xf32> to vector<33x96xf32>
    %c0_9 = arith.constant 0 : index
    %c0_10 = arith.constant 0 : index
    %c0_11 = arith.constant 0 : index
    %30 = vector.load %arg3[%c0_9, %c0_10, %c0_11] : memref<4x33x64xf32, #tpu.memory_space<vmem>>, vector<1x33x64xf32>
    %31 = vector.shape_cast %30 : vector<1x33x64xf32> to vector<33x64xf32>
    %c0_12 = arith.constant 0 : index
    %c0_13 = arith.constant 0 : index
    %c0_14 = arith.constant 0 : index
    %32 = vector.load %arg4[%c0_12, %c0_13, %c0_14] : memref<4x102x32xf32, #tpu.memory_space<vmem>>, vector<1x102x32xf32>
    %33 = vector.shape_cast %32 : vector<1x102x32xf32> to vector<102x32xf32>
    %34 = vector.extract_strided_slice %29 {offsets = [0, 0], sizes = [32, 96], strides = [1, 1]} : vector<33x96xf32> to vector<32x96xf32>
    %cst_15 = arith.constant dense<0.000000e+00> : vector<16x96xf32>
    %35 = tpu.matmul %15, %34, %cst_15 {dimension_numbers = #tpu.dot_dimension_numbers<[1], [0], [0], [1], [0, 0, 1, 1], [], []>} : vector<16x32xf32>, vector<32x96xf32>, vector<16x96xf32> -> vector<16x96xf32>
    %36 = vector.extract_strided_slice %29 {offsets = [32, 0], sizes = [1, 96], strides = [1, 1]} : vector<33x96xf32> to vector<1x96xf32>
    %37 = vector.broadcast %36 : vector<1x96xf32> to vector<16x96xf32>
    %38 = arith.addf %35, %37 : vector<16x96xf32>
    %39 = vector.extract_strided_slice %38 {offsets = [0, 0], sizes = [16, 8], strides = [1, 1]} : vector<16x96xf32> to vector<16x8xf32>
    %cst_16 = arith.constant 0.353553385 : f32
    %40 = vector.broadcast %cst_16 : f32 to vector<16x8xf32>
    %41 = arith.mulf %39, %40 : vector<16x8xf32>
    %42 = vector.shape_cast %41 : vector<16x8xf32> to vector<2x8x8xf32>
    %43 = vector.extract_strided_slice %38 {offsets = [0, 32], sizes = [16, 8], strides = [1, 1]} : vector<16x96xf32> to vector<16x8xf32>
    %44 = vector.shape_cast %43 : vector<16x8xf32> to vector<2x8x8xf32>
    %45 = vector.extract_strided_slice %38 {offsets = [0, 64], sizes = [16, 8], strides = [1, 1]} : vector<16x96xf32> to vector<16x8xf32>
    %46 = vector.shape_cast %45 : vector<16x8xf32> to vector<2x8x8xf32>
    "tpu.trace_start"() <{level = 10 : i32, message = "bqd,bkd->bqk"}> : () -> ()
    %cst_17 = arith.constant dense<0.000000e+00> : vector<2x8x8xf32>
    %47 = tpu.matmul %42, %44, %cst_17 {dimension_numbers = #tpu.dot_dimension_numbers<[2], [2], [1], [1], [0, 0, 0, 1, 1, 1], [0], [0]>} : vector<2x8x8xf32>, vector<2x8x8xf32>, vector<2x8x8xf32> -> vector<2x8x8xf32>
    "tpu.trace_stop"() : () -> ()
    %48 = arith.addf %47, %24 : vector<2x8x8xf32>
    %cst_18 = arith.constant dense<0xFF800000> : vector<2x8xf32>
    %49 = vector.multi_reduction <maximumf>, %48, %cst_18 [2] : vector<2x8x8xf32> to vector<2x8xf32>
    %50 = vector.shape_cast %49 : vector<2x8xf32> to vector<2x8x1xf32>
    %51 = vector.broadcast %50 : vector<2x8x1xf32> to vector<2x8x8xf32>
    %52 = arith.subf %48, %51 : vector<2x8x8xf32>
    %53 = math.exp %52 : vector<2x8x8xf32>
    %cst_19 = arith.constant dense<0.000000e+00> : vector<2x8xf32>
    %54 = vector.multi_reduction <add>, %53, %cst_19 [2] : vector<2x8x8xf32> to vector<2x8xf32>
    %55 = vector.shape_cast %54 : vector<2x8xf32> to vector<2x8x1xf32>
    %56 = tpu.reciprocal %55 {approx = true} : vector<2x8x1xf32> -> vector<2x8x1xf32>
    %57 = vector.broadcast %56 : vector<2x8x1xf32> to vector<2x8x8xf32>
    %58 = arith.mulf %53, %57 : vector<2x8x8xf32>
    "tpu.trace_start"() <{level = 10 : i32, message = "bqk,bkd->bqd"}> : () -> ()
    %cst_20 = arith.constant dense<0.000000e+00> : vector<2x8x8xf32>
    %59 = tpu.matmul %58, %46, %cst_20 {dimension_numbers = #tpu.dot_dimension_numbers<[2], [1], [1], [2], [0, 0, 0, 1, 1, 2], [0], [0]>} : vector<2x8x8xf32>, vector<2x8x8xf32>, vector<2x8x8xf32> -> vector<2x8x8xf32>
    "tpu.trace_stop"() : () -> ()
    %60 = vector.shape_cast %59 : vector<2x8x8xf32> to vector<16x8xf32>
    %61 = vector.extract_strided_slice %38 {offsets = [0, 8], sizes = [16, 8], strides = [1, 1]} : vector<16x96xf32> to vector<16x8xf32>
    %cst_21 = arith.constant 0.353553385 : f32
    %62 = vector.broadcast %cst_21 : f32 to vector<16x8xf32>
    %63 = arith.mulf %61, %62 : vector<16x8xf32>
    %64 = vector.shape_cast %63 : vector<16x8xf32> to vector<2x8x8xf32>
    %65 = vector.extract_strided_slice %38 {offsets = [0, 40], sizes = [16, 8], strides = [1, 1]} : vector<16x96xf32> to vector<16x8xf32>
    %66 = vector.shape_cast %65 : vector<16x8xf32> to vector<2x8x8xf32>
    %67 = vector.extract_strided_slice %38 {offsets = [0, 72], sizes = [16, 8], strides = [1, 1]} : vector<16x96xf32> to vector<16x8xf32>
    %68 = vector.shape_cast %67 : vector<16x8xf32> to vector<2x8x8xf32>
    "tpu.trace_start"() <{level = 10 : i32, message = "bqd,bkd->bqk"}> : () -> ()
    %cst_22 = arith.constant dense<0.000000e+00> : vector<2x8x8xf32>
    %69 = tpu.matmul %64, %66, %cst_22 {dimension_numbers = #tpu.dot_dimension_numbers<[2], [2], [1], [1], [0, 0, 0, 1, 1, 1], [0], [0]>} : vector<2x8x8xf32>, vector<2x8x8xf32>, vector<2x8x8xf32> -> vector<2x8x8xf32>
    "tpu.trace_stop"() : () -> ()
    %70 = arith.addf %69, %24 : vector<2x8x8xf32>
    %cst_23 = arith.constant dense<0xFF800000> : vector<2x8xf32>
    %71 = vector.multi_reduction <maximumf>, %70, %cst_23 [2] : vector<2x8x8xf32> to vector<2x8xf32>
    %72 = vector.shape_cast %71 : vector<2x8xf32> to vector<2x8x1xf32>
    %73 = vector.broadcast %72 : vector<2x8x1xf32> to vector<2x8x8xf32>
    %74 = arith.subf %70, %73 : vector<2x8x8xf32>
    %75 = math.exp %74 : vector<2x8x8xf32>
    %cst_24 = arith.constant dense<0.000000e+00> : vector<2x8xf32>
    %76 = vector.multi_reduction <add>, %75, %cst_24 [2] : vector<2x8x8xf32> to vector<2x8xf32>
    %77 = vector.shape_cast %76 : vector<2x8xf32> to vector<2x8x1xf32>
    %78 = tpu.reciprocal %77 {approx = true} : vector<2x8x1xf32> -> vector<2x8x1xf32>
    %79 = vector.broadcast %78 : vector<2x8x1xf32> to vector<2x8x8xf32>
    %80 = arith.mulf %75, %79 : vector<2x8x8xf32>
    "tpu.trace_start"() <{level = 10 : i32, message = "bqk,bkd->bqd"}> : () -> ()
    %cst_25 = arith.constant dense<0.000000e+00> : vector<2x8x8xf32>
    %81 = tpu.matmul %80, %68, %cst_25 {dimension_numbers = #tpu.dot_dimension_numbers<[2], [1], [1], [2], [0, 0, 0, 1, 1, 2], [0], [0]>} : vector<2x8x8xf32>, vector<2x8x8xf32>, vector<2x8x8xf32> -> vector<2x8x8xf32>
    "tpu.trace_stop"() : () -> ()
    %82 = vector.shape_cast %81 : vector<2x8x8xf32> to vector<16x8xf32>
    %83 = vector.extract_strided_slice %38 {offsets = [0, 16], sizes = [16, 8], strides = [1, 1]} : vector<16x96xf32> to vector<16x8xf32>
    %cst_26 = arith.constant 0.353553385 : f32
    %84 = vector.broadcast %cst_26 : f32 to vector<16x8xf32>
    %85 = arith.mulf %83, %84 : vector<16x8xf32>
    %86 = vector.shape_cast %85 : vector<16x8xf32> to vector<2x8x8xf32>
    %87 = vector.extract_strided_slice %38 {offsets = [0, 48], sizes = [16, 8], strides = [1, 1]} : vector<16x96xf32> to vector<16x8xf32>
    %88 = vector.shape_cast %87 : vector<16x8xf32> to vector<2x8x8xf32>
    %89 = vector.extract_strided_slice %38 {offsets = [0, 80], sizes = [16, 8], strides = [1, 1]} : vector<16x96xf32> to vector<16x8xf32>
    %90 = vector.shape_cast %89 : vector<16x8xf32> to vector<2x8x8xf32>
    "tpu.trace_start"() <{level = 10 : i32, message = "bqd,bkd->bqk"}> : () -> ()
    %cst_27 = arith.constant dense<0.000000e+00> : vector<2x8x8xf32>
    %91 = tpu.matmul %86, %88, %cst_27 {dimension_numbers = #tpu.dot_dimension_numbers<[2], [2], [1], [1], [0, 0, 0, 1, 1, 1], [0], [0]>} : vector<2x8x8xf32>, vector<2x8x8xf32>, vector<2x8x8xf32> -> vector<2x8x8xf32>
    "tpu.trace_stop"() : () -> ()
    %92 = arith.addf %91, %24 : vector<2x8x8xf32>
    %cst_28 = arith.constant dense<0xFF800000> : vector<2x8xf32>
    %93 = vector.multi_reduction <maximumf>, %92, %cst_28 [2] : vector<2x8x8xf32> to vector<2x8xf32>
    %94 = vector.shape_cast %93 : vector<2x8xf32> to vector<2x8x1xf32>
    %95 = vector.broadcast %94 : vector<2x8x1xf32> to vector<2x8x8xf32>
    %96 = arith.subf %92, %95 : vector<2x8x8xf32>
    %97 = math.exp %96 : vector<2x8x8xf32>
    %cst_29 = arith.constant dense<0.000000e+00> : vector<2x8xf32>
    %98 = vector.multi_reduction <add>, %97, %cst_29 [2] : vector<2x8x8xf32> to vector<2x8xf32>
    %99 = vector.shape_cast %98 : vector<2x8xf32> to vector<2x8x1xf32>
    %100 = tpu.reciprocal %99 {approx = true} : vector<2x8x1xf32> -> vector<2x8x1xf32>
    %101 = vector.broadcast %100 : vector<2x8x1xf32> to vector<2x8x8xf32>
    %102 = arith.mulf %97, %101 : vector<2x8x8xf32>
    "tpu.trace_start"() <{level = 10 : i32, message = "bqk,bkd->bqd"}> : () -> ()
    %cst_30 = arith.constant dense<0.000000e+00> : vector<2x8x8xf32>
    %103 = tpu.matmul %102, %90, %cst_30 {dimension_numbers = #tpu.dot_dimension_numbers<[2], [1], [1], [2], [0, 0, 0, 1, 1, 2], [0], [0]>} : vector<2x8x8xf32>, vector<2x8x8xf32>, vector<2x8x8xf32> -> vector<2x8x8xf32>
    "tpu.trace_stop"() : () -> ()
    %104 = vector.shape_cast %103 : vector<2x8x8xf32> to vector<16x8xf32>
    %105 = vector.extract_strided_slice %38 {offsets = [0, 24], sizes = [16, 8], strides = [1, 1]} : vector<16x96xf32> to vector<16x8xf32>
    %cst_31 = arith.constant 0.353553385 : f32
    %106 = vector.broadcast %cst_31 : f32 to vector<16x8xf32>
    %107 = arith.mulf %105, %106 : vector<16x8xf32>
    %108 = vector.shape_cast %107 : vector<16x8xf32> to vector<2x8x8xf32>
    %109 = vector.extract_strided_slice %38 {offsets = [0, 56], sizes = [16, 8], strides = [1, 1]} : vector<16x96xf32> to vector<16x8xf32>
    %110 = vector.shape_cast %109 : vector<16x8xf32> to vector<2x8x8xf32>
    %111 = vector.extract_strided_slice %38 {offsets = [0, 88], sizes = [16, 8], strides = [1, 1]} : vector<16x96xf32> to vector<16x8xf32>
    %112 = vector.shape_cast %111 : vector<16x8xf32> to vector<2x8x8xf32>
    "tpu.trace_start"() <{level = 10 : i32, message = "bqd,bkd->bqk"}> : () -> ()
    %cst_32 = arith.constant dense<0.000000e+00> : vector<2x8x8xf32>
    %113 = tpu.matmul %108, %110, %cst_32 {dimension_numbers = #tpu.dot_dimension_numbers<[2], [2], [1], [1], [0, 0, 0, 1, 1, 1], [0], [0]>} : vector<2x8x8xf32>, vector<2x8x8xf32>, vector<2x8x8xf32> -> vector<2x8x8xf32>
    "tpu.trace_stop"() : () -> ()
    %114 = arith.addf %113, %24 : vector<2x8x8xf32>
    %cst_33 = arith.constant dense<0xFF800000> : vector<2x8xf32>
    %115 = vector.multi_reduction <maximumf>, %114, %cst_33 [2] : vector<2x8x8xf32> to vector<2x8xf32>
    %116 = vector.shape_cast %115 : vector<2x8xf32> to vector<2x8x1xf32>
    %117 = vector.broadcast %116 : vector<2x8x1xf32> to vector<2x8x8xf32>
    %118 = arith.subf %114, %117 : vector<2x8x8xf32>
    %119 = math.exp %118 : vector<2x8x8xf32>
    %cst_34 = arith.constant dense<0.000000e+00> : vector<2x8xf32>
    %120 = vector.multi_reduction <add>, %119, %cst_34 [2] : vector<2x8x8xf32> to vector<2x8xf32>
    %121 = vector.shape_cast %120 : vector<2x8xf32> to vector<2x8x1xf32>
    %122 = tpu.reciprocal %121 {approx = true} : vector<2x8x1xf32> -> vector<2x8x1xf32>
    %123 = vector.broadcast %122 : vector<2x8x1xf32> to vector<2x8x8xf32>
    %124 = arith.mulf %119, %123 : vector<2x8x8xf32>
    "tpu.trace_start"() <{level = 10 : i32, message = "bqk,bkd->bqd"}> : () -> ()
    %cst_35 = arith.constant dense<0.000000e+00> : vector<2x8x8xf32>
    %125 = tpu.matmul %124, %112, %cst_35 {dimension_numbers = #tpu.dot_dimension_numbers<[2], [1], [1], [2], [0, 0, 0, 1, 1, 2], [0], [0]>} : vector<2x8x8xf32>, vector<2x8x8xf32>, vector<2x8x8xf32> -> vector<2x8x8xf32>
    "tpu.trace_stop"() : () -> ()
    %126 = vector.shape_cast %125 : vector<2x8x8xf32> to vector<16x8xf32>
    %127 = tpu.concatenate %60, %82, %104, %126 in 1 : vector<16x8xf32>, vector<16x8xf32>, vector<16x8xf32>, vector<16x8xf32> -> vector<16x32xf32>
    %128 = vector.extract_strided_slice %33 {offsets = [0, 0], sizes = [32, 32], strides = [1, 1]} : vector<102x32xf32> to vector<32x32xf32>
    %cst_36 = arith.constant dense<0.000000e+00> : vector<16x32xf32>
    %129 = tpu.matmul %127, %128, %cst_36 {dimension_numbers = #tpu.dot_dimension_numbers<[1], [0], [0], [1], [0, 0, 1, 1], [], []>} : vector<16x32xf32>, vector<32x32xf32>, vector<16x32xf32> -> vector<16x32xf32>
    %130 = vector.extract_strided_slice %33 {offsets = [96, 0], sizes = [1, 32], strides = [1, 1]} : vector<102x32xf32> to vector<1x32xf32>
    %131 = vector.broadcast %130 : vector<1x32xf32> to vector<16x32xf32>
    %132 = arith.addf %129, %131 : vector<16x32xf32>
    %133 = arith.addf %15, %132 : vector<16x32xf32>
    %134 = vector.extract_strided_slice %33 {offsets = [98, 0], sizes = [1, 32], strides = [1, 1]} : vector<102x32xf32> to vector<1x32xf32>
    %135 = vector.extract_strided_slice %33 {offsets = [99, 0], sizes = [1, 32], strides = [1, 1]} : vector<102x32xf32> to vector<1x32xf32>
    %cst_37 = arith.constant dense<0.000000e+00> : vector<16xf32>
    %136 = vector.multi_reduction <add>, %133, %cst_37 [1] : vector<16x32xf32> to vector<16xf32>
    %137 = vector.shape_cast %136 : vector<16xf32> to vector<16x1xf32>
    %cst_38 = arith.constant 3.200000e+01 : f32
    %138 = vector.broadcast %cst_38 : f32 to vector<16x1xf32>
    %139 = arith.divf %137, %138 : vector<16x1xf32>
    %140 = vector.broadcast %139 : vector<16x1xf32> to vector<16x32xf32>
    %141 = arith.subf %133, %140 : vector<16x32xf32>
    %142 = arith.mulf %141, %141 : vector<16x32xf32>
    %cst_39 = arith.constant dense<0.000000e+00> : vector<16xf32>
    %143 = vector.multi_reduction <add>, %142, %cst_39 [1] : vector<16x32xf32> to vector<16xf32>
    %144 = vector.shape_cast %143 : vector<16xf32> to vector<16x1xf32>
    %cst_40 = arith.constant 3.200000e+01 : f32
    %145 = vector.broadcast %cst_40 : f32 to vector<16x1xf32>
    %146 = arith.divf %144, %145 : vector<16x1xf32>
    %cst_41 = arith.constant 9.99999974E-6 : f32
    %147 = vector.broadcast %cst_41 : f32 to vector<16x1xf32>
    %148 = arith.addf %146, %147 : vector<16x1xf32>
    %149 = math.rsqrt %148 : vector<16x1xf32>
    %150 = vector.broadcast %149 : vector<16x1xf32> to vector<16x32xf32>
    %151 = arith.mulf %141, %150 : vector<16x32xf32>
    %152 = vector.broadcast %134 : vector<1x32xf32> to vector<16x32xf32>
    %153 = arith.mulf %151, %152 : vector<16x32xf32>
    %154 = vector.broadcast %135 : vector<1x32xf32> to vector<16x32xf32>
    %155 = arith.addf %153, %154 : vector<16x32xf32>
    %156 = vector.extract_strided_slice %31 {offsets = [0, 0], sizes = [32, 64], strides = [1, 1]} : vector<33x64xf32> to vector<32x64xf32>
    %cst_42 = arith.constant dense<0.000000e+00> : vector<16x64xf32>
    %157 = tpu.matmul %155, %156, %cst_42 {dimension_numbers = #tpu.dot_dimension_numbers<[1], [0], [0], [1], [0, 0, 1, 1], [], []>} : vector<16x32xf32>, vector<32x64xf32>, vector<16x64xf32> -> vector<16x64xf32>
    %158 = vector.extract_strided_slice %31 {offsets = [32, 0], sizes = [1, 64], strides = [1, 1]} : vector<33x64xf32> to vector<1x64xf32>
    %159 = vector.broadcast %158 : vector<1x64xf32> to vector<16x64xf32>
    %160 = arith.addf %157, %159 : vector<16x64xf32>
    %cst_43 = arith.constant 0.000000e+00 : f32
    %161 = vector.broadcast %cst_43 : f32 to vector<16x64xf32>
    %162 = arith.maximumf %160, %161 : vector<16x64xf32>
    %163 = vector.extract_strided_slice %33 {offsets = [32, 0], sizes = [64, 32], strides = [1, 1]} : vector<102x32xf32> to vector<64x32xf32>
    %cst_44 = arith.constant dense<0.000000e+00> : vector<16x32xf32>
    %164 = tpu.matmul %162, %163, %cst_44 {dimension_numbers = #tpu.dot_dimension_numbers<[1], [0], [0], [1], [0, 0, 1, 1], [], []>} : vector<16x64xf32>, vector<64x32xf32>, vector<16x32xf32> -> vector<16x32xf32>
    %165 = vector.extract_strided_slice %33 {offsets = [97, 0], sizes = [1, 32], strides = [1, 1]} : vector<102x32xf32> to vector<1x32xf32>
    %166 = vector.broadcast %165 : vector<1x32xf32> to vector<16x32xf32>
    %167 = arith.addf %164, %166 : vector<16x32xf32>
    %168 = arith.addf %155, %167 : vector<16x32xf32>
    %169 = vector.extract_strided_slice %33 {offsets = [100, 0], sizes = [1, 32], strides = [1, 1]} : vector<102x32xf32> to vector<1x32xf32>
    %170 = vector.extract_strided_slice %33 {offsets = [101, 0], sizes = [1, 32], strides = [1, 1]} : vector<102x32xf32> to vector<1x32xf32>
    %cst_45 = arith.constant dense<0.000000e+00> : vector<16xf32>
    %171 = vector.multi_reduction <add>, %168, %cst_45 [1] : vector<16x32xf32> to vector<16xf32>
    %172 = vector.shape_cast %171 : vector<16xf32> to vector<16x1xf32>
    %cst_46 = arith.constant 3.200000e+01 : f32
    %173 = vector.broadcast %cst_46 : f32 to vector<16x1xf32>
    %174 = arith.divf %172, %173 : vector<16x1xf32>
    %175 = vector.broadcast %174 : vector<16x1xf32> to vector<16x32xf32>
    %176 = arith.subf %168, %175 : vector<16x32xf32>
    %177 = arith.mulf %176, %176 : vector<16x32xf32>
    %cst_47 = arith.constant dense<0.000000e+00> : vector<16xf32>
    %178 = vector.multi_reduction <add>, %177, %cst_47 [1] : vector<16x32xf32> to vector<16xf32>
    %179 = vector.shape_cast %178 : vector<16xf32> to vector<16x1xf32>
    %cst_48 = arith.constant 3.200000e+01 : f32
    %180 = vector.broadcast %cst_48 : f32 to vector<16x1xf32>
    %181 = arith.divf %179, %180 : vector<16x1xf32>
    %cst_49 = arith.constant 9.99999974E-6 : f32
    %182 = vector.broadcast %cst_49 : f32 to vector<16x1xf32>
    %183 = arith.addf %181, %182 : vector<16x1xf32>
    %184 = math.rsqrt %183 : vector<16x1xf32>
    %185 = vector.broadcast %184 : vector<16x1xf32> to vector<16x32xf32>
    %186 = arith.mulf %176, %185 : vector<16x32xf32>
    %187 = vector.broadcast %169 : vector<1x32xf32> to vector<16x32xf32>
    %188 = arith.mulf %186, %187 : vector<16x32xf32>
    %189 = vector.broadcast %170 : vector<1x32xf32> to vector<16x32xf32>
    %190 = arith.addf %188, %189 : vector<16x32xf32>
    %c1 = arith.constant 1 : index
    %c0_50 = arith.constant 0 : index
    %c0_51 = arith.constant 0 : index
    %191 = vector.load %arg2[%c1, %c0_50, %c0_51] : memref<4x33x96xf32, #tpu.memory_space<vmem>>, vector<1x33x96xf32>
    %192 = vector.shape_cast %191 : vector<1x33x96xf32> to vector<33x96xf32>
    %c1_52 = arith.constant 1 : index
    %c0_53 = arith.constant 0 : index
    %c0_54 = arith.constant 0 : index
    %193 = vector.load %arg3[%c1_52, %c0_53, %c0_54] : memref<4x33x64xf32, #tpu.memory_space<vmem>>, vector<1x33x64xf32>
    %194 = vector.shape_cast %193 : vector<1x33x64xf32> to vector<33x64xf32>
    %c1_55 = arith.constant 1 : index
    %c0_56 = arith.constant 0 : index
    %c0_57 = arith.constant 0 : index
    %195 = vector.load %arg4[%c1_55, %c0_56, %c0_57] : memref<4x102x32xf32, #tpu.memory_space<vmem>>, vector<1x102x32xf32>
    %196 = vector.shape_cast %195 : vector<1x102x32xf32> to vector<102x32xf32>
    %197 = vector.extract_strided_slice %192 {offsets = [0, 0], sizes = [32, 96], strides = [1, 1]} : vector<33x96xf32> to vector<32x96xf32>
    %cst_58 = arith.constant dense<0.000000e+00> : vector<16x96xf32>
    %198 = tpu.matmul %190, %197, %cst_58 {dimension_numbers = #tpu.dot_dimension_numbers<[1], [0], [0], [1], [0, 0, 1, 1], [], []>} : vector<16x32xf32>, vector<32x96xf32>, vector<16x96xf32> -> vector<16x96xf32>
    %199 = vector.extract_strided_slice %192 {offsets = [32, 0], sizes = [1, 96], strides = [1, 1]} : vector<33x96xf32> to vector<1x96xf32>
    %200 = vector.broadcast %199 : vector<1x96xf32> to vector<16x96xf32>
    %201 = arith.addf %198, %200 : vector<16x96xf32>
    %202 = vector.extract_strided_slice %201 {offsets = [0, 0], sizes = [16, 8], strides = [1, 1]} : vector<16x96xf32> to vector<16x8xf32>
    %cst_59 = arith.constant 0.353553385 : f32
    %203 = vector.broadcast %cst_59 : f32 to vector<16x8xf32>
    %204 = arith.mulf %202, %203 : vector<16x8xf32>
    %205 = vector.shape_cast %204 : vector<16x8xf32> to vector<2x8x8xf32>
    %206 = vector.extract_strided_slice %201 {offsets = [0, 32], sizes = [16, 8], strides = [1, 1]} : vector<16x96xf32> to vector<16x8xf32>
    %207 = vector.shape_cast %206 : vector<16x8xf32> to vector<2x8x8xf32>
    %208 = vector.extract_strided_slice %201 {offsets = [0, 64], sizes = [16, 8], strides = [1, 1]} : vector<16x96xf32> to vector<16x8xf32>
    %209 = vector.shape_cast %208 : vector<16x8xf32> to vector<2x8x8xf32>
    "tpu.trace_start"() <{level = 10 : i32, message = "bqd,bkd->bqk"}> : () -> ()
    %cst_60 = arith.constant dense<0.000000e+00> : vector<2x8x8xf32>
    %210 = tpu.matmul %205, %207, %cst_60 {dimension_numbers = #tpu.dot_dimension_numbers<[2], [2], [1], [1], [0, 0, 0, 1, 1, 1], [0], [0]>} : vector<2x8x8xf32>, vector<2x8x8xf32>, vector<2x8x8xf32> -> vector<2x8x8xf32>
    "tpu.trace_stop"() : () -> ()
    %211 = arith.addf %210, %24 : vector<2x8x8xf32>
    %cst_61 = arith.constant dense<0xFF800000> : vector<2x8xf32>
    %212 = vector.multi_reduction <maximumf>, %211, %cst_61 [2] : vector<2x8x8xf32> to vector<2x8xf32>
    %213 = vector.shape_cast %212 : vector<2x8xf32> to vector<2x8x1xf32>
    %214 = vector.broadcast %213 : vector<2x8x1xf32> to vector<2x8x8xf32>
    %215 = arith.subf %211, %214 : vector<2x8x8xf32>
    %216 = math.exp %215 : vector<2x8x8xf32>
    %cst_62 = arith.constant dense<0.000000e+00> : vector<2x8xf32>
    %217 = vector.multi_reduction <add>, %216, %cst_62 [2] : vector<2x8x8xf32> to vector<2x8xf32>
    %218 = vector.shape_cast %217 : vector<2x8xf32> to vector<2x8x1xf32>
    %219 = tpu.reciprocal %218 {approx = true} : vector<2x8x1xf32> -> vector<2x8x1xf32>
    %220 = vector.broadcast %219 : vector<2x8x1xf32> to vector<2x8x8xf32>
    %221 = arith.mulf %216, %220 : vector<2x8x8xf32>
    "tpu.trace_start"() <{level = 10 : i32, message = "bqk,bkd->bqd"}> : () -> ()
    %cst_63 = arith.constant dense<0.000000e+00> : vector<2x8x8xf32>
    %222 = tpu.matmul %221, %209, %cst_63 {dimension_numbers = #tpu.dot_dimension_numbers<[2], [1], [1], [2], [0, 0, 0, 1, 1, 2], [0], [0]>} : vector<2x8x8xf32>, vector<2x8x8xf32>, vector<2x8x8xf32> -> vector<2x8x8xf32>
    "tpu.trace_stop"() : () -> ()
    %223 = vector.shape_cast %222 : vector<2x8x8xf32> to vector<16x8xf32>
    %224 = vector.extract_strided_slice %201 {offsets = [0, 8], sizes = [16, 8], strides = [1, 1]} : vector<16x96xf32> to vector<16x8xf32>
    %cst_64 = arith.constant 0.353553385 : f32
    %225 = vector.broadcast %cst_64 : f32 to vector<16x8xf32>
    %226 = arith.mulf %224, %225 : vector<16x8xf32>
    %227 = vector.shape_cast %226 : vector<16x8xf32> to vector<2x8x8xf32>
    %228 = vector.extract_strided_slice %201 {offsets = [0, 40], sizes = [16, 8], strides = [1, 1]} : vector<16x96xf32> to vector<16x8xf32>
    %229 = vector.shape_cast %228 : vector<16x8xf32> to vector<2x8x8xf32>
    %230 = vector.extract_strided_slice %201 {offsets = [0, 72], sizes = [16, 8], strides = [1, 1]} : vector<16x96xf32> to vector<16x8xf32>
    %231 = vector.shape_cast %230 : vector<16x8xf32> to vector<2x8x8xf32>
    "tpu.trace_start"() <{level = 10 : i32, message = "bqd,bkd->bqk"}> : () -> ()
    %cst_65 = arith.constant dense<0.000000e+00> : vector<2x8x8xf32>
    %232 = tpu.matmul %227, %229, %cst_65 {dimension_numbers = #tpu.dot_dimension_numbers<[2], [2], [1], [1], [0, 0, 0, 1, 1, 1], [0], [0]>} : vector<2x8x8xf32>, vector<2x8x8xf32>, vector<2x8x8xf32> -> vector<2x8x8xf32>
    "tpu.trace_stop"() : () -> ()
    %233 = arith.addf %232, %24 : vector<2x8x8xf32>
    %cst_66 = arith.constant dense<0xFF800000> : vector<2x8xf32>
    %234 = vector.multi_reduction <maximumf>, %233, %cst_66 [2] : vector<2x8x8xf32> to vector<2x8xf32>
    %235 = vector.shape_cast %234 : vector<2x8xf32> to vector<2x8x1xf32>
    %236 = vector.broadcast %235 : vector<2x8x1xf32> to vector<2x8x8xf32>
    %237 = arith.subf %233, %236 : vector<2x8x8xf32>
    %238 = math.exp %237 : vector<2x8x8xf32>
    %cst_67 = arith.constant dense<0.000000e+00> : vector<2x8xf32>
    %239 = vector.multi_reduction <add>, %238, %cst_67 [2] : vector<2x8x8xf32> to vector<2x8xf32>
    %240 = vector.shape_cast %239 : vector<2x8xf32> to vector<2x8x1xf32>
    %241 = tpu.reciprocal %240 {approx = true} : vector<2x8x1xf32> -> vector<2x8x1xf32>
    %242 = vector.broadcast %241 : vector<2x8x1xf32> to vector<2x8x8xf32>
    %243 = arith.mulf %238, %242 : vector<2x8x8xf32>
    "tpu.trace_start"() <{level = 10 : i32, message = "bqk,bkd->bqd"}> : () -> ()
    %cst_68 = arith.constant dense<0.000000e+00> : vector<2x8x8xf32>
    %244 = tpu.matmul %243, %231, %cst_68 {dimension_numbers = #tpu.dot_dimension_numbers<[2], [1], [1], [2], [0, 0, 0, 1, 1, 2], [0], [0]>} : vector<2x8x8xf32>, vector<2x8x8xf32>, vector<2x8x8xf32> -> vector<2x8x8xf32>
    "tpu.trace_stop"() : () -> ()
    %245 = vector.shape_cast %244 : vector<2x8x8xf32> to vector<16x8xf32>
    %246 = vector.extract_strided_slice %201 {offsets = [0, 16], sizes = [16, 8], strides = [1, 1]} : vector<16x96xf32> to vector<16x8xf32>
    %cst_69 = arith.constant 0.353553385 : f32
    %247 = vector.broadcast %cst_69 : f32 to vector<16x8xf32>
    %248 = arith.mulf %246, %247 : vector<16x8xf32>
    %249 = vector.shape_cast %248 : vector<16x8xf32> to vector<2x8x8xf32>
    %250 = vector.extract_strided_slice %201 {offsets = [0, 48], sizes = [16, 8], strides = [1, 1]} : vector<16x96xf32> to vector<16x8xf32>
    %251 = vector.shape_cast %250 : vector<16x8xf32> to vector<2x8x8xf32>
    %252 = vector.extract_strided_slice %201 {offsets = [0, 80], sizes = [16, 8], strides = [1, 1]} : vector<16x96xf32> to vector<16x8xf32>
    %253 = vector.shape_cast %252 : vector<16x8xf32> to vector<2x8x8xf32>
    "tpu.trace_start"() <{level = 10 : i32, message = "bqd,bkd->bqk"}> : () -> ()
    %cst_70 = arith.constant dense<0.000000e+00> : vector<2x8x8xf32>
    %254 = tpu.matmul %249, %251, %cst_70 {dimension_numbers = #tpu.dot_dimension_numbers<[2], [2], [1], [1], [0, 0, 0, 1, 1, 1], [0], [0]>} : vector<2x8x8xf32>, vector<2x8x8xf32>, vector<2x8x8xf32> -> vector<2x8x8xf32>
    "tpu.trace_stop"() : () -> ()
    %255 = arith.addf %254, %24 : vector<2x8x8xf32>
    %cst_71 = arith.constant dense<0xFF800000> : vector<2x8xf32>
    %256 = vector.multi_reduction <maximumf>, %255, %cst_71 [2] : vector<2x8x8xf32> to vector<2x8xf32>
    %257 = vector.shape_cast %256 : vector<2x8xf32> to vector<2x8x1xf32>
    %258 = vector.broadcast %257 : vector<2x8x1xf32> to vector<2x8x8xf32>
    %259 = arith.subf %255, %258 : vector<2x8x8xf32>
    %260 = math.exp %259 : vector<2x8x8xf32>
    %cst_72 = arith.constant dense<0.000000e+00> : vector<2x8xf32>
    %261 = vector.multi_reduction <add>, %260, %cst_72 [2] : vector<2x8x8xf32> to vector<2x8xf32>
    %262 = vector.shape_cast %261 : vector<2x8xf32> to vector<2x8x1xf32>
    %263 = tpu.reciprocal %262 {approx = true} : vector<2x8x1xf32> -> vector<2x8x1xf32>
    %264 = vector.broadcast %263 : vector<2x8x1xf32> to vector<2x8x8xf32>
    %265 = arith.mulf %260, %264 : vector<2x8x8xf32>
    "tpu.trace_start"() <{level = 10 : i32, message = "bqk,bkd->bqd"}> : () -> ()
    %cst_73 = arith.constant dense<0.000000e+00> : vector<2x8x8xf32>
    %266 = tpu.matmul %265, %253, %cst_73 {dimension_numbers = #tpu.dot_dimension_numbers<[2], [1], [1], [2], [0, 0, 0, 1, 1, 2], [0], [0]>} : vector<2x8x8xf32>, vector<2x8x8xf32>, vector<2x8x8xf32> -> vector<2x8x8xf32>
    "tpu.trace_stop"() : () -> ()
    %267 = vector.shape_cast %266 : vector<2x8x8xf32> to vector<16x8xf32>
    %268 = vector.extract_strided_slice %201 {offsets = [0, 24], sizes = [16, 8], strides = [1, 1]} : vector<16x96xf32> to vector<16x8xf32>
    %cst_74 = arith.constant 0.353553385 : f32
    %269 = vector.broadcast %cst_74 : f32 to vector<16x8xf32>
    %270 = arith.mulf %268, %269 : vector<16x8xf32>
    %271 = vector.shape_cast %270 : vector<16x8xf32> to vector<2x8x8xf32>
    %272 = vector.extract_strided_slice %201 {offsets = [0, 56], sizes = [16, 8], strides = [1, 1]} : vector<16x96xf32> to vector<16x8xf32>
    %273 = vector.shape_cast %272 : vector<16x8xf32> to vector<2x8x8xf32>
    %274 = vector.extract_strided_slice %201 {offsets = [0, 88], sizes = [16, 8], strides = [1, 1]} : vector<16x96xf32> to vector<16x8xf32>
    %275 = vector.shape_cast %274 : vector<16x8xf32> to vector<2x8x8xf32>
    "tpu.trace_start"() <{level = 10 : i32, message = "bqd,bkd->bqk"}> : () -> ()
    %cst_75 = arith.constant dense<0.000000e+00> : vector<2x8x8xf32>
    %276 = tpu.matmul %271, %273, %cst_75 {dimension_numbers = #tpu.dot_dimension_numbers<[2], [2], [1], [1], [0, 0, 0, 1, 1, 1], [0], [0]>} : vector<2x8x8xf32>, vector<2x8x8xf32>, vector<2x8x8xf32> -> vector<2x8x8xf32>
    "tpu.trace_stop"() : () -> ()
    %277 = arith.addf %276, %24 : vector<2x8x8xf32>
    %cst_76 = arith.constant dense<0xFF800000> : vector<2x8xf32>
    %278 = vector.multi_reduction <maximumf>, %277, %cst_76 [2] : vector<2x8x8xf32> to vector<2x8xf32>
    %279 = vector.shape_cast %278 : vector<2x8xf32> to vector<2x8x1xf32>
    %280 = vector.broadcast %279 : vector<2x8x1xf32> to vector<2x8x8xf32>
    %281 = arith.subf %277, %280 : vector<2x8x8xf32>
    %282 = math.exp %281 : vector<2x8x8xf32>
    %cst_77 = arith.constant dense<0.000000e+00> : vector<2x8xf32>
    %283 = vector.multi_reduction <add>, %282, %cst_77 [2] : vector<2x8x8xf32> to vector<2x8xf32>
    %284 = vector.shape_cast %283 : vector<2x8xf32> to vector<2x8x1xf32>
    %285 = tpu.reciprocal %284 {approx = true} : vector<2x8x1xf32> -> vector<2x8x1xf32>
    %286 = vector.broadcast %285 : vector<2x8x1xf32> to vector<2x8x8xf32>
    %287 = arith.mulf %282, %286 : vector<2x8x8xf32>
    "tpu.trace_start"() <{level = 10 : i32, message = "bqk,bkd->bqd"}> : () -> ()
    %cst_78 = arith.constant dense<0.000000e+00> : vector<2x8x8xf32>
    %288 = tpu.matmul %287, %275, %cst_78 {dimension_numbers = #tpu.dot_dimension_numbers<[2], [1], [1], [2], [0, 0, 0, 1, 1, 2], [0], [0]>} : vector<2x8x8xf32>, vector<2x8x8xf32>, vector<2x8x8xf32> -> vector<2x8x8xf32>
    "tpu.trace_stop"() : () -> ()
    %289 = vector.shape_cast %288 : vector<2x8x8xf32> to vector<16x8xf32>
    %290 = tpu.concatenate %223, %245, %267, %289 in 1 : vector<16x8xf32>, vector<16x8xf32>, vector<16x8xf32>, vector<16x8xf32> -> vector<16x32xf32>
    %291 = vector.extract_strided_slice %196 {offsets = [0, 0], sizes = [32, 32], strides = [1, 1]} : vector<102x32xf32> to vector<32x32xf32>
    %cst_79 = arith.constant dense<0.000000e+00> : vector<16x32xf32>
    %292 = tpu.matmul %290, %291, %cst_79 {dimension_numbers = #tpu.dot_dimension_numbers<[1], [0], [0], [1], [0, 0, 1, 1], [], []>} : vector<16x32xf32>, vector<32x32xf32>, vector<16x32xf32> -> vector<16x32xf32>
    %293 = vector.extract_strided_slice %196 {offsets = [96, 0], sizes = [1, 32], strides = [1, 1]} : vector<102x32xf32> to vector<1x32xf32>
    %294 = vector.broadcast %293 : vector<1x32xf32> to vector<16x32xf32>
    %295 = arith.addf %292, %294 : vector<16x32xf32>
    %296 = arith.addf %190, %295 : vector<16x32xf32>
    %297 = vector.extract_strided_slice %196 {offsets = [98, 0], sizes = [1, 32], strides = [1, 1]} : vector<102x32xf32> to vector<1x32xf32>
    %298 = vector.extract_strided_slice %196 {offsets = [99, 0], sizes = [1, 32], strides = [1, 1]} : vector<102x32xf32> to vector<1x32xf32>
    %cst_80 = arith.constant dense<0.000000e+00> : vector<16xf32>
    %299 = vector.multi_reduction <add>, %296, %cst_80 [1] : vector<16x32xf32> to vector<16xf32>
    %300 = vector.shape_cast %299 : vector<16xf32> to vector<16x1xf32>
    %cst_81 = arith.constant 3.200000e+01 : f32
    %301 = vector.broadcast %cst_81 : f32 to vector<16x1xf32>
    %302 = arith.divf %300, %301 : vector<16x1xf32>
    %303 = vector.broadcast %302 : vector<16x1xf32> to vector<16x32xf32>
    %304 = arith.subf %296, %303 : vector<16x32xf32>
    %305 = arith.mulf %304, %304 : vector<16x32xf32>
    %cst_82 = arith.constant dense<0.000000e+00> : vector<16xf32>
    %306 = vector.multi_reduction <add>, %305, %cst_82 [1] : vector<16x32xf32> to vector<16xf32>
    %307 = vector.shape_cast %306 : vector<16xf32> to vector<16x1xf32>
    %cst_83 = arith.constant 3.200000e+01 : f32
    %308 = vector.broadcast %cst_83 : f32 to vector<16x1xf32>
    %309 = arith.divf %307, %308 : vector<16x1xf32>
    %cst_84 = arith.constant 9.99999974E-6 : f32
    %310 = vector.broadcast %cst_84 : f32 to vector<16x1xf32>
    %311 = arith.addf %309, %310 : vector<16x1xf32>
    %312 = math.rsqrt %311 : vector<16x1xf32>
    %313 = vector.broadcast %312 : vector<16x1xf32> to vector<16x32xf32>
    %314 = arith.mulf %304, %313 : vector<16x32xf32>
    %315 = vector.broadcast %297 : vector<1x32xf32> to vector<16x32xf32>
    %316 = arith.mulf %314, %315 : vector<16x32xf32>
    %317 = vector.broadcast %298 : vector<1x32xf32> to vector<16x32xf32>
    %318 = arith.addf %316, %317 : vector<16x32xf32>
    %319 = vector.extract_strided_slice %194 {offsets = [0, 0], sizes = [32, 64], strides = [1, 1]} : vector<33x64xf32> to vector<32x64xf32>
    %cst_85 = arith.constant dense<0.000000e+00> : vector<16x64xf32>
    %320 = tpu.matmul %318, %319, %cst_85 {dimension_numbers = #tpu.dot_dimension_numbers<[1], [0], [0], [1], [0, 0, 1, 1], [], []>} : vector<16x32xf32>, vector<32x64xf32>, vector<16x64xf32> -> vector<16x64xf32>
    %321 = vector.extract_strided_slice %194 {offsets = [32, 0], sizes = [1, 64], strides = [1, 1]} : vector<33x64xf32> to vector<1x64xf32>
    %322 = vector.broadcast %321 : vector<1x64xf32> to vector<16x64xf32>
    %323 = arith.addf %320, %322 : vector<16x64xf32>
    %cst_86 = arith.constant 0.000000e+00 : f32
    %324 = vector.broadcast %cst_86 : f32 to vector<16x64xf32>
    %325 = arith.maximumf %323, %324 : vector<16x64xf32>
    %326 = vector.extract_strided_slice %196 {offsets = [32, 0], sizes = [64, 32], strides = [1, 1]} : vector<102x32xf32> to vector<64x32xf32>
    %cst_87 = arith.constant dense<0.000000e+00> : vector<16x32xf32>
    %327 = tpu.matmul %325, %326, %cst_87 {dimension_numbers = #tpu.dot_dimension_numbers<[1], [0], [0], [1], [0, 0, 1, 1], [], []>} : vector<16x64xf32>, vector<64x32xf32>, vector<16x32xf32> -> vector<16x32xf32>
    %328 = vector.extract_strided_slice %196 {offsets = [97, 0], sizes = [1, 32], strides = [1, 1]} : vector<102x32xf32> to vector<1x32xf32>
    %329 = vector.broadcast %328 : vector<1x32xf32> to vector<16x32xf32>
    %330 = arith.addf %327, %329 : vector<16x32xf32>
    %331 = arith.addf %318, %330 : vector<16x32xf32>
    %332 = vector.extract_strided_slice %196 {offsets = [100, 0], sizes = [1, 32], strides = [1, 1]} : vector<102x32xf32> to vector<1x32xf32>
    %333 = vector.extract_strided_slice %196 {offsets = [101, 0], sizes = [1, 32], strides = [1, 1]} : vector<102x32xf32> to vector<1x32xf32>
    %cst_88 = arith.constant dense<0.000000e+00> : vector<16xf32>
    %334 = vector.multi_reduction <add>, %331, %cst_88 [1] : vector<16x32xf32> to vector<16xf32>
    %335 = vector.shape_cast %334 : vector<16xf32> to vector<16x1xf32>
    %cst_89 = arith.constant 3.200000e+01 : f32
    %336 = vector.broadcast %cst_89 : f32 to vector<16x1xf32>
    %337 = arith.divf %335, %336 : vector<16x1xf32>
    %338 = vector.broadcast %337 : vector<16x1xf32> to vector<16x32xf32>
    %339 = arith.subf %331, %338 : vector<16x32xf32>
    %340 = arith.mulf %339, %339 : vector<16x32xf32>
    %cst_90 = arith.constant dense<0.000000e+00> : vector<16xf32>
    %341 = vector.multi_reduction <add>, %340, %cst_90 [1] : vector<16x32xf32> to vector<16xf32>
    %342 = vector.shape_cast %341 : vector<16xf32> to vector<16x1xf32>
    %cst_91 = arith.constant 3.200000e+01 : f32
    %343 = vector.broadcast %cst_91 : f32 to vector<16x1xf32>
    %344 = arith.divf %342, %343 : vector<16x1xf32>
    %cst_92 = arith.constant 9.99999974E-6 : f32
    %345 = vector.broadcast %cst_92 : f32 to vector<16x1xf32>
    %346 = arith.addf %344, %345 : vector<16x1xf32>
    %347 = math.rsqrt %346 : vector<16x1xf32>
    %348 = vector.broadcast %347 : vector<16x1xf32> to vector<16x32xf32>
    %349 = arith.mulf %339, %348 : vector<16x32xf32>
    %350 = vector.broadcast %332 : vector<1x32xf32> to vector<16x32xf32>
    %351 = arith.mulf %349, %350 : vector<16x32xf32>
    %352 = vector.broadcast %333 : vector<1x32xf32> to vector<16x32xf32>
    %353 = arith.addf %351, %352 : vector<16x32xf32>
    %c2 = arith.constant 2 : index
    %c0_93 = arith.constant 0 : index
    %c0_94 = arith.constant 0 : index
    %354 = vector.load %arg2[%c2, %c0_93, %c0_94] : memref<4x33x96xf32, #tpu.memory_space<vmem>>, vector<1x33x96xf32>
    %355 = vector.shape_cast %354 : vector<1x33x96xf32> to vector<33x96xf32>
    %c2_95 = arith.constant 2 : index
    %c0_96 = arith.constant 0 : index
    %c0_97 = arith.constant 0 : index
    %356 = vector.load %arg3[%c2_95, %c0_96, %c0_97] : memref<4x33x64xf32, #tpu.memory_space<vmem>>, vector<1x33x64xf32>
    %357 = vector.shape_cast %356 : vector<1x33x64xf32> to vector<33x64xf32>
    %c2_98 = arith.constant 2 : index
    %c0_99 = arith.constant 0 : index
    %c0_100 = arith.constant 0 : index
    %358 = vector.load %arg4[%c2_98, %c0_99, %c0_100] : memref<4x102x32xf32, #tpu.memory_space<vmem>>, vector<1x102x32xf32>
    %359 = vector.shape_cast %358 : vector<1x102x32xf32> to vector<102x32xf32>
    %360 = vector.extract_strided_slice %355 {offsets = [0, 0], sizes = [32, 96], strides = [1, 1]} : vector<33x96xf32> to vector<32x96xf32>
    %cst_101 = arith.constant dense<0.000000e+00> : vector<16x96xf32>
    %361 = tpu.matmul %353, %360, %cst_101 {dimension_numbers = #tpu.dot_dimension_numbers<[1], [0], [0], [1], [0, 0, 1, 1], [], []>} : vector<16x32xf32>, vector<32x96xf32>, vector<16x96xf32> -> vector<16x96xf32>
    %362 = vector.extract_strided_slice %355 {offsets = [32, 0], sizes = [1, 96], strides = [1, 1]} : vector<33x96xf32> to vector<1x96xf32>
    %363 = vector.broadcast %362 : vector<1x96xf32> to vector<16x96xf32>
    %364 = arith.addf %361, %363 : vector<16x96xf32>
    %365 = vector.extract_strided_slice %364 {offsets = [0, 0], sizes = [16, 8], strides = [1, 1]} : vector<16x96xf32> to vector<16x8xf32>
    %cst_102 = arith.constant 0.353553385 : f32
    %366 = vector.broadcast %cst_102 : f32 to vector<16x8xf32>
    %367 = arith.mulf %365, %366 : vector<16x8xf32>
    %368 = vector.shape_cast %367 : vector<16x8xf32> to vector<2x8x8xf32>
    %369 = vector.extract_strided_slice %364 {offsets = [0, 32], sizes = [16, 8], strides = [1, 1]} : vector<16x96xf32> to vector<16x8xf32>
    %370 = vector.shape_cast %369 : vector<16x8xf32> to vector<2x8x8xf32>
    %371 = vector.extract_strided_slice %364 {offsets = [0, 64], sizes = [16, 8], strides = [1, 1]} : vector<16x96xf32> to vector<16x8xf32>
    %372 = vector.shape_cast %371 : vector<16x8xf32> to vector<2x8x8xf32>
    "tpu.trace_start"() <{level = 10 : i32, message = "bqd,bkd->bqk"}> : () -> ()
    %cst_103 = arith.constant dense<0.000000e+00> : vector<2x8x8xf32>
    %373 = tpu.matmul %368, %370, %cst_103 {dimension_numbers = #tpu.dot_dimension_numbers<[2], [2], [1], [1], [0, 0, 0, 1, 1, 1], [0], [0]>} : vector<2x8x8xf32>, vector<2x8x8xf32>, vector<2x8x8xf32> -> vector<2x8x8xf32>
    "tpu.trace_stop"() : () -> ()
    %374 = arith.addf %373, %24 : vector<2x8x8xf32>
    %cst_104 = arith.constant dense<0xFF800000> : vector<2x8xf32>
    %375 = vector.multi_reduction <maximumf>, %374, %cst_104 [2] : vector<2x8x8xf32> to vector<2x8xf32>
    %376 = vector.shape_cast %375 : vector<2x8xf32> to vector<2x8x1xf32>
    %377 = vector.broadcast %376 : vector<2x8x1xf32> to vector<2x8x8xf32>
    %378 = arith.subf %374, %377 : vector<2x8x8xf32>
    %379 = math.exp %378 : vector<2x8x8xf32>
    %cst_105 = arith.constant dense<0.000000e+00> : vector<2x8xf32>
    %380 = vector.multi_reduction <add>, %379, %cst_105 [2] : vector<2x8x8xf32> to vector<2x8xf32>
    %381 = vector.shape_cast %380 : vector<2x8xf32> to vector<2x8x1xf32>
    %382 = tpu.reciprocal %381 {approx = true} : vector<2x8x1xf32> -> vector<2x8x1xf32>
    %383 = vector.broadcast %382 : vector<2x8x1xf32> to vector<2x8x8xf32>
    %384 = arith.mulf %379, %383 : vector<2x8x8xf32>
    "tpu.trace_start"() <{level = 10 : i32, message = "bqk,bkd->bqd"}> : () -> ()
    %cst_106 = arith.constant dense<0.000000e+00> : vector<2x8x8xf32>
    %385 = tpu.matmul %384, %372, %cst_106 {dimension_numbers = #tpu.dot_dimension_numbers<[2], [1], [1], [2], [0, 0, 0, 1, 1, 2], [0], [0]>} : vector<2x8x8xf32>, vector<2x8x8xf32>, vector<2x8x8xf32> -> vector<2x8x8xf32>
    "tpu.trace_stop"() : () -> ()
    %386 = vector.shape_cast %385 : vector<2x8x8xf32> to vector<16x8xf32>
    %387 = vector.extract_strided_slice %364 {offsets = [0, 8], sizes = [16, 8], strides = [1, 1]} : vector<16x96xf32> to vector<16x8xf32>
    %cst_107 = arith.constant 0.353553385 : f32
    %388 = vector.broadcast %cst_107 : f32 to vector<16x8xf32>
    %389 = arith.mulf %387, %388 : vector<16x8xf32>
    %390 = vector.shape_cast %389 : vector<16x8xf32> to vector<2x8x8xf32>
    %391 = vector.extract_strided_slice %364 {offsets = [0, 40], sizes = [16, 8], strides = [1, 1]} : vector<16x96xf32> to vector<16x8xf32>
    %392 = vector.shape_cast %391 : vector<16x8xf32> to vector<2x8x8xf32>
    %393 = vector.extract_strided_slice %364 {offsets = [0, 72], sizes = [16, 8], strides = [1, 1]} : vector<16x96xf32> to vector<16x8xf32>
    %394 = vector.shape_cast %393 : vector<16x8xf32> to vector<2x8x8xf32>
    "tpu.trace_start"() <{level = 10 : i32, message = "bqd,bkd->bqk"}> : () -> ()
    %cst_108 = arith.constant dense<0.000000e+00> : vector<2x8x8xf32>
    %395 = tpu.matmul %390, %392, %cst_108 {dimension_numbers = #tpu.dot_dimension_numbers<[2], [2], [1], [1], [0, 0, 0, 1, 1, 1], [0], [0]>} : vector<2x8x8xf32>, vector<2x8x8xf32>, vector<2x8x8xf32> -> vector<2x8x8xf32>
    "tpu.trace_stop"() : () -> ()
    %396 = arith.addf %395, %24 : vector<2x8x8xf32>
    %cst_109 = arith.constant dense<0xFF800000> : vector<2x8xf32>
    %397 = vector.multi_reduction <maximumf>, %396, %cst_109 [2] : vector<2x8x8xf32> to vector<2x8xf32>
    %398 = vector.shape_cast %397 : vector<2x8xf32> to vector<2x8x1xf32>
    %399 = vector.broadcast %398 : vector<2x8x1xf32> to vector<2x8x8xf32>
    %400 = arith.subf %396, %399 : vector<2x8x8xf32>
    %401 = math.exp %400 : vector<2x8x8xf32>
    %cst_110 = arith.constant dense<0.000000e+00> : vector<2x8xf32>
    %402 = vector.multi_reduction <add>, %401, %cst_110 [2] : vector<2x8x8xf32> to vector<2x8xf32>
    %403 = vector.shape_cast %402 : vector<2x8xf32> to vector<2x8x1xf32>
    %404 = tpu.reciprocal %403 {approx = true} : vector<2x8x1xf32> -> vector<2x8x1xf32>
    %405 = vector.broadcast %404 : vector<2x8x1xf32> to vector<2x8x8xf32>
    %406 = arith.mulf %401, %405 : vector<2x8x8xf32>
    "tpu.trace_start"() <{level = 10 : i32, message = "bqk,bkd->bqd"}> : () -> ()
    %cst_111 = arith.constant dense<0.000000e+00> : vector<2x8x8xf32>
    %407 = tpu.matmul %406, %394, %cst_111 {dimension_numbers = #tpu.dot_dimension_numbers<[2], [1], [1], [2], [0, 0, 0, 1, 1, 2], [0], [0]>} : vector<2x8x8xf32>, vector<2x8x8xf32>, vector<2x8x8xf32> -> vector<2x8x8xf32>
    "tpu.trace_stop"() : () -> ()
    %408 = vector.shape_cast %407 : vector<2x8x8xf32> to vector<16x8xf32>
    %409 = vector.extract_strided_slice %364 {offsets = [0, 16], sizes = [16, 8], strides = [1, 1]} : vector<16x96xf32> to vector<16x8xf32>
    %cst_112 = arith.constant 0.353553385 : f32
    %410 = vector.broadcast %cst_112 : f32 to vector<16x8xf32>
    %411 = arith.mulf %409, %410 : vector<16x8xf32>
    %412 = vector.shape_cast %411 : vector<16x8xf32> to vector<2x8x8xf32>
    %413 = vector.extract_strided_slice %364 {offsets = [0, 48], sizes = [16, 8], strides = [1, 1]} : vector<16x96xf32> to vector<16x8xf32>
    %414 = vector.shape_cast %413 : vector<16x8xf32> to vector<2x8x8xf32>
    %415 = vector.extract_strided_slice %364 {offsets = [0, 80], sizes = [16, 8], strides = [1, 1]} : vector<16x96xf32> to vector<16x8xf32>
    %416 = vector.shape_cast %415 : vector<16x8xf32> to vector<2x8x8xf32>
    "tpu.trace_start"() <{level = 10 : i32, message = "bqd,bkd->bqk"}> : () -> ()
    %cst_113 = arith.constant dense<0.000000e+00> : vector<2x8x8xf32>
    %417 = tpu.matmul %412, %414, %cst_113 {dimension_numbers = #tpu.dot_dimension_numbers<[2], [2], [1], [1], [0, 0, 0, 1, 1, 1], [0], [0]>} : vector<2x8x8xf32>, vector<2x8x8xf32>, vector<2x8x8xf32> -> vector<2x8x8xf32>
    "tpu.trace_stop"() : () -> ()
    %418 = arith.addf %417, %24 : vector<2x8x8xf32>
    %cst_114 = arith.constant dense<0xFF800000> : vector<2x8xf32>
    %419 = vector.multi_reduction <maximumf>, %418, %cst_114 [2] : vector<2x8x8xf32> to vector<2x8xf32>
    %420 = vector.shape_cast %419 : vector<2x8xf32> to vector<2x8x1xf32>
    %421 = vector.broadcast %420 : vector<2x8x1xf32> to vector<2x8x8xf32>
    %422 = arith.subf %418, %421 : vector<2x8x8xf32>
    %423 = math.exp %422 : vector<2x8x8xf32>
    %cst_115 = arith.constant dense<0.000000e+00> : vector<2x8xf32>
    %424 = vector.multi_reduction <add>, %423, %cst_115 [2] : vector<2x8x8xf32> to vector<2x8xf32>
    %425 = vector.shape_cast %424 : vector<2x8xf32> to vector<2x8x1xf32>
    %426 = tpu.reciprocal %425 {approx = true} : vector<2x8x1xf32> -> vector<2x8x1xf32>
    %427 = vector.broadcast %426 : vector<2x8x1xf32> to vector<2x8x8xf32>
    %428 = arith.mulf %423, %427 : vector<2x8x8xf32>
    "tpu.trace_start"() <{level = 10 : i32, message = "bqk,bkd->bqd"}> : () -> ()
    %cst_116 = arith.constant dense<0.000000e+00> : vector<2x8x8xf32>
    %429 = tpu.matmul %428, %416, %cst_116 {dimension_numbers = #tpu.dot_dimension_numbers<[2], [1], [1], [2], [0, 0, 0, 1, 1, 2], [0], [0]>} : vector<2x8x8xf32>, vector<2x8x8xf32>, vector<2x8x8xf32> -> vector<2x8x8xf32>
    "tpu.trace_stop"() : () -> ()
    %430 = vector.shape_cast %429 : vector<2x8x8xf32> to vector<16x8xf32>
    %431 = vector.extract_strided_slice %364 {offsets = [0, 24], sizes = [16, 8], strides = [1, 1]} : vector<16x96xf32> to vector<16x8xf32>
    %cst_117 = arith.constant 0.353553385 : f32
    %432 = vector.broadcast %cst_117 : f32 to vector<16x8xf32>
    %433 = arith.mulf %431, %432 : vector<16x8xf32>
    %434 = vector.shape_cast %433 : vector<16x8xf32> to vector<2x8x8xf32>
    %435 = vector.extract_strided_slice %364 {offsets = [0, 56], sizes = [16, 8], strides = [1, 1]} : vector<16x96xf32> to vector<16x8xf32>
    %436 = vector.shape_cast %435 : vector<16x8xf32> to vector<2x8x8xf32>
    %437 = vector.extract_strided_slice %364 {offsets = [0, 88], sizes = [16, 8], strides = [1, 1]} : vector<16x96xf32> to vector<16x8xf32>
    %438 = vector.shape_cast %437 : vector<16x8xf32> to vector<2x8x8xf32>
    "tpu.trace_start"() <{level = 10 : i32, message = "bqd,bkd->bqk"}> : () -> ()
    %cst_118 = arith.constant dense<0.000000e+00> : vector<2x8x8xf32>
    %439 = tpu.matmul %434, %436, %cst_118 {dimension_numbers = #tpu.dot_dimension_numbers<[2], [2], [1], [1], [0, 0, 0, 1, 1, 1], [0], [0]>} : vector<2x8x8xf32>, vector<2x8x8xf32>, vector<2x8x8xf32> -> vector<2x8x8xf32>
    "tpu.trace_stop"() : () -> ()
    %440 = arith.addf %439, %24 : vector<2x8x8xf32>
    %cst_119 = arith.constant dense<0xFF800000> : vector<2x8xf32>
    %441 = vector.multi_reduction <maximumf>, %440, %cst_119 [2] : vector<2x8x8xf32> to vector<2x8xf32>
    %442 = vector.shape_cast %441 : vector<2x8xf32> to vector<2x8x1xf32>
    %443 = vector.broadcast %442 : vector<2x8x1xf32> to vector<2x8x8xf32>
    %444 = arith.subf %440, %443 : vector<2x8x8xf32>
    %445 = math.exp %444 : vector<2x8x8xf32>
    %cst_120 = arith.constant dense<0.000000e+00> : vector<2x8xf32>
    %446 = vector.multi_reduction <add>, %445, %cst_120 [2] : vector<2x8x8xf32> to vector<2x8xf32>
    %447 = vector.shape_cast %446 : vector<2x8xf32> to vector<2x8x1xf32>
    %448 = tpu.reciprocal %447 {approx = true} : vector<2x8x1xf32> -> vector<2x8x1xf32>
    %449 = vector.broadcast %448 : vector<2x8x1xf32> to vector<2x8x8xf32>
    %450 = arith.mulf %445, %449 : vector<2x8x8xf32>
    "tpu.trace_start"() <{level = 10 : i32, message = "bqk,bkd->bqd"}> : () -> ()
    %cst_121 = arith.constant dense<0.000000e+00> : vector<2x8x8xf32>
    %451 = tpu.matmul %450, %438, %cst_121 {dimension_numbers = #tpu.dot_dimension_numbers<[2], [1], [1], [2], [0, 0, 0, 1, 1, 2], [0], [0]>} : vector<2x8x8xf32>, vector<2x8x8xf32>, vector<2x8x8xf32> -> vector<2x8x8xf32>
    "tpu.trace_stop"() : () -> ()
    %452 = vector.shape_cast %451 : vector<2x8x8xf32> to vector<16x8xf32>
    %453 = tpu.concatenate %386, %408, %430, %452 in 1 : vector<16x8xf32>, vector<16x8xf32>, vector<16x8xf32>, vector<16x8xf32> -> vector<16x32xf32>
    %454 = vector.extract_strided_slice %359 {offsets = [0, 0], sizes = [32, 32], strides = [1, 1]} : vector<102x32xf32> to vector<32x32xf32>
    %cst_122 = arith.constant dense<0.000000e+00> : vector<16x32xf32>
    %455 = tpu.matmul %453, %454, %cst_122 {dimension_numbers = #tpu.dot_dimension_numbers<[1], [0], [0], [1], [0, 0, 1, 1], [], []>} : vector<16x32xf32>, vector<32x32xf32>, vector<16x32xf32> -> vector<16x32xf32>
    %456 = vector.extract_strided_slice %359 {offsets = [96, 0], sizes = [1, 32], strides = [1, 1]} : vector<102x32xf32> to vector<1x32xf32>
    %457 = vector.broadcast %456 : vector<1x32xf32> to vector<16x32xf32>
    %458 = arith.addf %455, %457 : vector<16x32xf32>
    %459 = arith.addf %353, %458 : vector<16x32xf32>
    %460 = vector.extract_strided_slice %359 {offsets = [98, 0], sizes = [1, 32], strides = [1, 1]} : vector<102x32xf32> to vector<1x32xf32>
    %461 = vector.extract_strided_slice %359 {offsets = [99, 0], sizes = [1, 32], strides = [1, 1]} : vector<102x32xf32> to vector<1x32xf32>
    %cst_123 = arith.constant dense<0.000000e+00> : vector<16xf32>
    %462 = vector.multi_reduction <add>, %459, %cst_123 [1] : vector<16x32xf32> to vector<16xf32>
    %463 = vector.shape_cast %462 : vector<16xf32> to vector<16x1xf32>
    %cst_124 = arith.constant 3.200000e+01 : f32
    %464 = vector.broadcast %cst_124 : f32 to vector<16x1xf32>
    %465 = arith.divf %463, %464 : vector<16x1xf32>
    %466 = vector.broadcast %465 : vector<16x1xf32> to vector<16x32xf32>
    %467 = arith.subf %459, %466 : vector<16x32xf32>
    %468 = arith.mulf %467, %467 : vector<16x32xf32>
    %cst_125 = arith.constant dense<0.000000e+00> : vector<16xf32>
    %469 = vector.multi_reduction <add>, %468, %cst_125 [1] : vector<16x32xf32> to vector<16xf32>
    %470 = vector.shape_cast %469 : vector<16xf32> to vector<16x1xf32>
    %cst_126 = arith.constant 3.200000e+01 : f32
    %471 = vector.broadcast %cst_126 : f32 to vector<16x1xf32>
    %472 = arith.divf %470, %471 : vector<16x1xf32>
    %cst_127 = arith.constant 9.99999974E-6 : f32
    %473 = vector.broadcast %cst_127 : f32 to vector<16x1xf32>
    %474 = arith.addf %472, %473 : vector<16x1xf32>
    %475 = math.rsqrt %474 : vector<16x1xf32>
    %476 = vector.broadcast %475 : vector<16x1xf32> to vector<16x32xf32>
    %477 = arith.mulf %467, %476 : vector<16x32xf32>
    %478 = vector.broadcast %460 : vector<1x32xf32> to vector<16x32xf32>
    %479 = arith.mulf %477, %478 : vector<16x32xf32>
    %480 = vector.broadcast %461 : vector<1x32xf32> to vector<16x32xf32>
    %481 = arith.addf %479, %480 : vector<16x32xf32>
    %482 = vector.extract_strided_slice %357 {offsets = [0, 0], sizes = [32, 64], strides = [1, 1]} : vector<33x64xf32> to vector<32x64xf32>
    %cst_128 = arith.constant dense<0.000000e+00> : vector<16x64xf32>
    %483 = tpu.matmul %481, %482, %cst_128 {dimension_numbers = #tpu.dot_dimension_numbers<[1], [0], [0], [1], [0, 0, 1, 1], [], []>} : vector<16x32xf32>, vector<32x64xf32>, vector<16x64xf32> -> vector<16x64xf32>
    %484 = vector.extract_strided_slice %357 {offsets = [32, 0], sizes = [1, 64], strides = [1, 1]} : vector<33x64xf32> to vector<1x64xf32>
    %485 = vector.broadcast %484 : vector<1x64xf32> to vector<16x64xf32>
    %486 = arith.addf %483, %485 : vector<16x64xf32>
    %cst_129 = arith.constant 0.000000e+00 : f32
    %487 = vector.broadcast %cst_129 : f32 to vector<16x64xf32>
    %488 = arith.maximumf %486, %487 : vector<16x64xf32>
    %489 = vector.extract_strided_slice %359 {offsets = [32, 0], sizes = [64, 32], strides = [1, 1]} : vector<102x32xf32> to vector<64x32xf32>
    %cst_130 = arith.constant dense<0.000000e+00> : vector<16x32xf32>
    %490 = tpu.matmul %488, %489, %cst_130 {dimension_numbers = #tpu.dot_dimension_numbers<[1], [0], [0], [1], [0, 0, 1, 1], [], []>} : vector<16x64xf32>, vector<64x32xf32>, vector<16x32xf32> -> vector<16x32xf32>
    %491 = vector.extract_strided_slice %359 {offsets = [97, 0], sizes = [1, 32], strides = [1, 1]} : vector<102x32xf32> to vector<1x32xf32>
    %492 = vector.broadcast %491 : vector<1x32xf32> to vector<16x32xf32>
    %493 = arith.addf %490, %492 : vector<16x32xf32>
    %494 = arith.addf %481, %493 : vector<16x32xf32>
    %495 = vector.extract_strided_slice %359 {offsets = [100, 0], sizes = [1, 32], strides = [1, 1]} : vector<102x32xf32> to vector<1x32xf32>
    %496 = vector.extract_strided_slice %359 {offsets = [101, 0], sizes = [1, 32], strides = [1, 1]} : vector<102x32xf32> to vector<1x32xf32>
    %cst_131 = arith.constant dense<0.000000e+00> : vector<16xf32>
    %497 = vector.multi_reduction <add>, %494, %cst_131 [1] : vector<16x32xf32> to vector<16xf32>
    %498 = vector.shape_cast %497 : vector<16xf32> to vector<16x1xf32>
    %cst_132 = arith.constant 3.200000e+01 : f32
    %499 = vector.broadcast %cst_132 : f32 to vector<16x1xf32>
    %500 = arith.divf %498, %499 : vector<16x1xf32>
    %501 = vector.broadcast %500 : vector<16x1xf32> to vector<16x32xf32>
    %502 = arith.subf %494, %501 : vector<16x32xf32>
    %503 = arith.mulf %502, %502 : vector<16x32xf32>
    %cst_133 = arith.constant dense<0.000000e+00> : vector<16xf32>
    %504 = vector.multi_reduction <add>, %503, %cst_133 [1] : vector<16x32xf32> to vector<16xf32>
    %505 = vector.shape_cast %504 : vector<16xf32> to vector<16x1xf32>
    %cst_134 = arith.constant 3.200000e+01 : f32
    %506 = vector.broadcast %cst_134 : f32 to vector<16x1xf32>
    %507 = arith.divf %505, %506 : vector<16x1xf32>
    %cst_135 = arith.constant 9.99999974E-6 : f32
    %508 = vector.broadcast %cst_135 : f32 to vector<16x1xf32>
    %509 = arith.addf %507, %508 : vector<16x1xf32>
    %510 = math.rsqrt %509 : vector<16x1xf32>
    %511 = vector.broadcast %510 : vector<16x1xf32> to vector<16x32xf32>
    %512 = arith.mulf %502, %511 : vector<16x32xf32>
    %513 = vector.broadcast %495 : vector<1x32xf32> to vector<16x32xf32>
    %514 = arith.mulf %512, %513 : vector<16x32xf32>
    %515 = vector.broadcast %496 : vector<1x32xf32> to vector<16x32xf32>
    %516 = arith.addf %514, %515 : vector<16x32xf32>
    %c3 = arith.constant 3 : index
    %c0_136 = arith.constant 0 : index
    %c0_137 = arith.constant 0 : index
    %517 = vector.load %arg2[%c3, %c0_136, %c0_137] : memref<4x33x96xf32, #tpu.memory_space<vmem>>, vector<1x33x96xf32>
    %518 = vector.shape_cast %517 : vector<1x33x96xf32> to vector<33x96xf32>
    %c3_138 = arith.constant 3 : index
    %c0_139 = arith.constant 0 : index
    %c0_140 = arith.constant 0 : index
    %519 = vector.load %arg3[%c3_138, %c0_139, %c0_140] : memref<4x33x64xf32, #tpu.memory_space<vmem>>, vector<1x33x64xf32>
    %520 = vector.shape_cast %519 : vector<1x33x64xf32> to vector<33x64xf32>
    %c3_141 = arith.constant 3 : index
    %c0_142 = arith.constant 0 : index
    %c0_143 = arith.constant 0 : index
    %521 = vector.load %arg4[%c3_141, %c0_142, %c0_143] : memref<4x102x32xf32, #tpu.memory_space<vmem>>, vector<1x102x32xf32>
    %522 = vector.shape_cast %521 : vector<1x102x32xf32> to vector<102x32xf32>
    %523 = vector.extract_strided_slice %518 {offsets = [0, 0], sizes = [32, 96], strides = [1, 1]} : vector<33x96xf32> to vector<32x96xf32>
    %cst_144 = arith.constant dense<0.000000e+00> : vector<16x96xf32>
    %524 = tpu.matmul %516, %523, %cst_144 {dimension_numbers = #tpu.dot_dimension_numbers<[1], [0], [0], [1], [0, 0, 1, 1], [], []>} : vector<16x32xf32>, vector<32x96xf32>, vector<16x96xf32> -> vector<16x96xf32>
    %525 = vector.extract_strided_slice %518 {offsets = [32, 0], sizes = [1, 96], strides = [1, 1]} : vector<33x96xf32> to vector<1x96xf32>
    %526 = vector.broadcast %525 : vector<1x96xf32> to vector<16x96xf32>
    %527 = arith.addf %524, %526 : vector<16x96xf32>
    %528 = vector.extract_strided_slice %527 {offsets = [0, 0], sizes = [16, 8], strides = [1, 1]} : vector<16x96xf32> to vector<16x8xf32>
    %cst_145 = arith.constant 0.353553385 : f32
    %529 = vector.broadcast %cst_145 : f32 to vector<16x8xf32>
    %530 = arith.mulf %528, %529 : vector<16x8xf32>
    %531 = vector.shape_cast %530 : vector<16x8xf32> to vector<2x8x8xf32>
    %532 = vector.extract_strided_slice %527 {offsets = [0, 32], sizes = [16, 8], strides = [1, 1]} : vector<16x96xf32> to vector<16x8xf32>
    %533 = vector.shape_cast %532 : vector<16x8xf32> to vector<2x8x8xf32>
    %534 = vector.extract_strided_slice %527 {offsets = [0, 64], sizes = [16, 8], strides = [1, 1]} : vector<16x96xf32> to vector<16x8xf32>
    %535 = vector.shape_cast %534 : vector<16x8xf32> to vector<2x8x8xf32>
    "tpu.trace_start"() <{level = 10 : i32, message = "bqd,bkd->bqk"}> : () -> ()
    %cst_146 = arith.constant dense<0.000000e+00> : vector<2x8x8xf32>
    %536 = tpu.matmul %531, %533, %cst_146 {dimension_numbers = #tpu.dot_dimension_numbers<[2], [2], [1], [1], [0, 0, 0, 1, 1, 1], [0], [0]>} : vector<2x8x8xf32>, vector<2x8x8xf32>, vector<2x8x8xf32> -> vector<2x8x8xf32>
    "tpu.trace_stop"() : () -> ()
    %537 = arith.addf %536, %24 : vector<2x8x8xf32>
    %cst_147 = arith.constant dense<0xFF800000> : vector<2x8xf32>
    %538 = vector.multi_reduction <maximumf>, %537, %cst_147 [2] : vector<2x8x8xf32> to vector<2x8xf32>
    %539 = vector.shape_cast %538 : vector<2x8xf32> to vector<2x8x1xf32>
    %540 = vector.broadcast %539 : vector<2x8x1xf32> to vector<2x8x8xf32>
    %541 = arith.subf %537, %540 : vector<2x8x8xf32>
    %542 = math.exp %541 : vector<2x8x8xf32>
    %cst_148 = arith.constant dense<0.000000e+00> : vector<2x8xf32>
    %543 = vector.multi_reduction <add>, %542, %cst_148 [2] : vector<2x8x8xf32> to vector<2x8xf32>
    %544 = vector.shape_cast %543 : vector<2x8xf32> to vector<2x8x1xf32>
    %545 = tpu.reciprocal %544 {approx = true} : vector<2x8x1xf32> -> vector<2x8x1xf32>
    %546 = vector.broadcast %545 : vector<2x8x1xf32> to vector<2x8x8xf32>
    %547 = arith.mulf %542, %546 : vector<2x8x8xf32>
    "tpu.trace_start"() <{level = 10 : i32, message = "bqk,bkd->bqd"}> : () -> ()
    %cst_149 = arith.constant dense<0.000000e+00> : vector<2x8x8xf32>
    %548 = tpu.matmul %547, %535, %cst_149 {dimension_numbers = #tpu.dot_dimension_numbers<[2], [1], [1], [2], [0, 0, 0, 1, 1, 2], [0], [0]>} : vector<2x8x8xf32>, vector<2x8x8xf32>, vector<2x8x8xf32> -> vector<2x8x8xf32>
    "tpu.trace_stop"() : () -> ()
    %549 = vector.shape_cast %548 : vector<2x8x8xf32> to vector<16x8xf32>
    %550 = vector.extract_strided_slice %527 {offsets = [0, 8], sizes = [16, 8], strides = [1, 1]} : vector<16x96xf32> to vector<16x8xf32>
    %cst_150 = arith.constant 0.353553385 : f32
    %551 = vector.broadcast %cst_150 : f32 to vector<16x8xf32>
    %552 = arith.mulf %550, %551 : vector<16x8xf32>
    %553 = vector.shape_cast %552 : vector<16x8xf32> to vector<2x8x8xf32>
    %554 = vector.extract_strided_slice %527 {offsets = [0, 40], sizes = [16, 8], strides = [1, 1]} : vector<16x96xf32> to vector<16x8xf32>
    %555 = vector.shape_cast %554 : vector<16x8xf32> to vector<2x8x8xf32>
    %556 = vector.extract_strided_slice %527 {offsets = [0, 72], sizes = [16, 8], strides = [1, 1]} : vector<16x96xf32> to vector<16x8xf32>
    %557 = vector.shape_cast %556 : vector<16x8xf32> to vector<2x8x8xf32>
    "tpu.trace_start"() <{level = 10 : i32, message = "bqd,bkd->bqk"}> : () -> ()
    %cst_151 = arith.constant dense<0.000000e+00> : vector<2x8x8xf32>
    %558 = tpu.matmul %553, %555, %cst_151 {dimension_numbers = #tpu.dot_dimension_numbers<[2], [2], [1], [1], [0, 0, 0, 1, 1, 1], [0], [0]>} : vector<2x8x8xf32>, vector<2x8x8xf32>, vector<2x8x8xf32> -> vector<2x8x8xf32>
    "tpu.trace_stop"() : () -> ()
    %559 = arith.addf %558, %24 : vector<2x8x8xf32>
    %cst_152 = arith.constant dense<0xFF800000> : vector<2x8xf32>
    %560 = vector.multi_reduction <maximumf>, %559, %cst_152 [2] : vector<2x8x8xf32> to vector<2x8xf32>
    %561 = vector.shape_cast %560 : vector<2x8xf32> to vector<2x8x1xf32>
    %562 = vector.broadcast %561 : vector<2x8x1xf32> to vector<2x8x8xf32>
    %563 = arith.subf %559, %562 : vector<2x8x8xf32>
    %564 = math.exp %563 : vector<2x8x8xf32>
    %cst_153 = arith.constant dense<0.000000e+00> : vector<2x8xf32>
    %565 = vector.multi_reduction <add>, %564, %cst_153 [2] : vector<2x8x8xf32> to vector<2x8xf32>
    %566 = vector.shape_cast %565 : vector<2x8xf32> to vector<2x8x1xf32>
    %567 = tpu.reciprocal %566 {approx = true} : vector<2x8x1xf32> -> vector<2x8x1xf32>
    %568 = vector.broadcast %567 : vector<2x8x1xf32> to vector<2x8x8xf32>
    %569 = arith.mulf %564, %568 : vector<2x8x8xf32>
    "tpu.trace_start"() <{level = 10 : i32, message = "bqk,bkd->bqd"}> : () -> ()
    %cst_154 = arith.constant dense<0.000000e+00> : vector<2x8x8xf32>
    %570 = tpu.matmul %569, %557, %cst_154 {dimension_numbers = #tpu.dot_dimension_numbers<[2], [1], [1], [2], [0, 0, 0, 1, 1, 2], [0], [0]>} : vector<2x8x8xf32>, vector<2x8x8xf32>, vector<2x8x8xf32> -> vector<2x8x8xf32>
    "tpu.trace_stop"() : () -> ()
    %571 = vector.shape_cast %570 : vector<2x8x8xf32> to vector<16x8xf32>
    %572 = vector.extract_strided_slice %527 {offsets = [0, 16], sizes = [16, 8], strides = [1, 1]} : vector<16x96xf32> to vector<16x8xf32>
    %cst_155 = arith.constant 0.353553385 : f32
    %573 = vector.broadcast %cst_155 : f32 to vector<16x8xf32>
    %574 = arith.mulf %572, %573 : vector<16x8xf32>
    %575 = vector.shape_cast %574 : vector<16x8xf32> to vector<2x8x8xf32>
    %576 = vector.extract_strided_slice %527 {offsets = [0, 48], sizes = [16, 8], strides = [1, 1]} : vector<16x96xf32> to vector<16x8xf32>
    %577 = vector.shape_cast %576 : vector<16x8xf32> to vector<2x8x8xf32>
    %578 = vector.extract_strided_slice %527 {offsets = [0, 80], sizes = [16, 8], strides = [1, 1]} : vector<16x96xf32> to vector<16x8xf32>
    %579 = vector.shape_cast %578 : vector<16x8xf32> to vector<2x8x8xf32>
    "tpu.trace_start"() <{level = 10 : i32, message = "bqd,bkd->bqk"}> : () -> ()
    %cst_156 = arith.constant dense<0.000000e+00> : vector<2x8x8xf32>
    %580 = tpu.matmul %575, %577, %cst_156 {dimension_numbers = #tpu.dot_dimension_numbers<[2], [2], [1], [1], [0, 0, 0, 1, 1, 1], [0], [0]>} : vector<2x8x8xf32>, vector<2x8x8xf32>, vector<2x8x8xf32> -> vector<2x8x8xf32>
    "tpu.trace_stop"() : () -> ()
    %581 = arith.addf %580, %24 : vector<2x8x8xf32>
    %cst_157 = arith.constant dense<0xFF800000> : vector<2x8xf32>
    %582 = vector.multi_reduction <maximumf>, %581, %cst_157 [2] : vector<2x8x8xf32> to vector<2x8xf32>
    %583 = vector.shape_cast %582 : vector<2x8xf32> to vector<2x8x1xf32>
    %584 = vector.broadcast %583 : vector<2x8x1xf32> to vector<2x8x8xf32>
    %585 = arith.subf %581, %584 : vector<2x8x8xf32>
    %586 = math.exp %585 : vector<2x8x8xf32>
    %cst_158 = arith.constant dense<0.000000e+00> : vector<2x8xf32>
    %587 = vector.multi_reduction <add>, %586, %cst_158 [2] : vector<2x8x8xf32> to vector<2x8xf32>
    %588 = vector.shape_cast %587 : vector<2x8xf32> to vector<2x8x1xf32>
    %589 = tpu.reciprocal %588 {approx = true} : vector<2x8x1xf32> -> vector<2x8x1xf32>
    %590 = vector.broadcast %589 : vector<2x8x1xf32> to vector<2x8x8xf32>
    %591 = arith.mulf %586, %590 : vector<2x8x8xf32>
    "tpu.trace_start"() <{level = 10 : i32, message = "bqk,bkd->bqd"}> : () -> ()
    %cst_159 = arith.constant dense<0.000000e+00> : vector<2x8x8xf32>
    %592 = tpu.matmul %591, %579, %cst_159 {dimension_numbers = #tpu.dot_dimension_numbers<[2], [1], [1], [2], [0, 0, 0, 1, 1, 2], [0], [0]>} : vector<2x8x8xf32>, vector<2x8x8xf32>, vector<2x8x8xf32> -> vector<2x8x8xf32>
    "tpu.trace_stop"() : () -> ()
    %593 = vector.shape_cast %592 : vector<2x8x8xf32> to vector<16x8xf32>
    %594 = vector.extract_strided_slice %527 {offsets = [0, 24], sizes = [16, 8], strides = [1, 1]} : vector<16x96xf32> to vector<16x8xf32>
    %cst_160 = arith.constant 0.353553385 : f32
    %595 = vector.broadcast %cst_160 : f32 to vector<16x8xf32>
    %596 = arith.mulf %594, %595 : vector<16x8xf32>
    %597 = vector.shape_cast %596 : vector<16x8xf32> to vector<2x8x8xf32>
    %598 = vector.extract_strided_slice %527 {offsets = [0, 56], sizes = [16, 8], strides = [1, 1]} : vector<16x96xf32> to vector<16x8xf32>
    %599 = vector.shape_cast %598 : vector<16x8xf32> to vector<2x8x8xf32>
    %600 = vector.extract_strided_slice %527 {offsets = [0, 88], sizes = [16, 8], strides = [1, 1]} : vector<16x96xf32> to vector<16x8xf32>
    %601 = vector.shape_cast %600 : vector<16x8xf32> to vector<2x8x8xf32>
    "tpu.trace_start"() <{level = 10 : i32, message = "bqd,bkd->bqk"}> : () -> ()
    %cst_161 = arith.constant dense<0.000000e+00> : vector<2x8x8xf32>
    %602 = tpu.matmul %597, %599, %cst_161 {dimension_numbers = #tpu.dot_dimension_numbers<[2], [2], [1], [1], [0, 0, 0, 1, 1, 1], [0], [0]>} : vector<2x8x8xf32>, vector<2x8x8xf32>, vector<2x8x8xf32> -> vector<2x8x8xf32>
    "tpu.trace_stop"() : () -> ()
    %603 = arith.addf %602, %24 : vector<2x8x8xf32>
    %cst_162 = arith.constant dense<0xFF800000> : vector<2x8xf32>
    %604 = vector.multi_reduction <maximumf>, %603, %cst_162 [2] : vector<2x8x8xf32> to vector<2x8xf32>
    %605 = vector.shape_cast %604 : vector<2x8xf32> to vector<2x8x1xf32>
    %606 = vector.broadcast %605 : vector<2x8x1xf32> to vector<2x8x8xf32>
    %607 = arith.subf %603, %606 : vector<2x8x8xf32>
    %608 = math.exp %607 : vector<2x8x8xf32>
    %cst_163 = arith.constant dense<0.000000e+00> : vector<2x8xf32>
    %609 = vector.multi_reduction <add>, %608, %cst_163 [2] : vector<2x8x8xf32> to vector<2x8xf32>
    %610 = vector.shape_cast %609 : vector<2x8xf32> to vector<2x8x1xf32>
    %611 = tpu.reciprocal %610 {approx = true} : vector<2x8x1xf32> -> vector<2x8x1xf32>
    %612 = vector.broadcast %611 : vector<2x8x1xf32> to vector<2x8x8xf32>
    %613 = arith.mulf %608, %612 : vector<2x8x8xf32>
    "tpu.trace_start"() <{level = 10 : i32, message = "bqk,bkd->bqd"}> : () -> ()
    %cst_164 = arith.constant dense<0.000000e+00> : vector<2x8x8xf32>
    %614 = tpu.matmul %613, %601, %cst_164 {dimension_numbers = #tpu.dot_dimension_numbers<[2], [1], [1], [2], [0, 0, 0, 1, 1, 2], [0], [0]>} : vector<2x8x8xf32>, vector<2x8x8xf32>, vector<2x8x8xf32> -> vector<2x8x8xf32>
    "tpu.trace_stop"() : () -> ()
    %615 = vector.shape_cast %614 : vector<2x8x8xf32> to vector<16x8xf32>
    %616 = tpu.concatenate %549, %571, %593, %615 in 1 : vector<16x8xf32>, vector<16x8xf32>, vector<16x8xf32>, vector<16x8xf32> -> vector<16x32xf32>
    %617 = vector.extract_strided_slice %522 {offsets = [0, 0], sizes = [32, 32], strides = [1, 1]} : vector<102x32xf32> to vector<32x32xf32>
    %cst_165 = arith.constant dense<0.000000e+00> : vector<16x32xf32>
    %618 = tpu.matmul %616, %617, %cst_165 {dimension_numbers = #tpu.dot_dimension_numbers<[1], [0], [0], [1], [0, 0, 1, 1], [], []>} : vector<16x32xf32>, vector<32x32xf32>, vector<16x32xf32> -> vector<16x32xf32>
    %619 = vector.extract_strided_slice %522 {offsets = [96, 0], sizes = [1, 32], strides = [1, 1]} : vector<102x32xf32> to vector<1x32xf32>
    %620 = vector.broadcast %619 : vector<1x32xf32> to vector<16x32xf32>
    %621 = arith.addf %618, %620 : vector<16x32xf32>
    %622 = arith.addf %516, %621 : vector<16x32xf32>
    %623 = vector.extract_strided_slice %522 {offsets = [98, 0], sizes = [1, 32], strides = [1, 1]} : vector<102x32xf32> to vector<1x32xf32>
    %624 = vector.extract_strided_slice %522 {offsets = [99, 0], sizes = [1, 32], strides = [1, 1]} : vector<102x32xf32> to vector<1x32xf32>
    %cst_166 = arith.constant dense<0.000000e+00> : vector<16xf32>
    %625 = vector.multi_reduction <add>, %622, %cst_166 [1] : vector<16x32xf32> to vector<16xf32>
    %626 = vector.shape_cast %625 : vector<16xf32> to vector<16x1xf32>
    %cst_167 = arith.constant 3.200000e+01 : f32
    %627 = vector.broadcast %cst_167 : f32 to vector<16x1xf32>
    %628 = arith.divf %626, %627 : vector<16x1xf32>
    %629 = vector.broadcast %628 : vector<16x1xf32> to vector<16x32xf32>
    %630 = arith.subf %622, %629 : vector<16x32xf32>
    %631 = arith.mulf %630, %630 : vector<16x32xf32>
    %cst_168 = arith.constant dense<0.000000e+00> : vector<16xf32>
    %632 = vector.multi_reduction <add>, %631, %cst_168 [1] : vector<16x32xf32> to vector<16xf32>
    %633 = vector.shape_cast %632 : vector<16xf32> to vector<16x1xf32>
    %cst_169 = arith.constant 3.200000e+01 : f32
    %634 = vector.broadcast %cst_169 : f32 to vector<16x1xf32>
    %635 = arith.divf %633, %634 : vector<16x1xf32>
    %cst_170 = arith.constant 9.99999974E-6 : f32
    %636 = vector.broadcast %cst_170 : f32 to vector<16x1xf32>
    %637 = arith.addf %635, %636 : vector<16x1xf32>
    %638 = math.rsqrt %637 : vector<16x1xf32>
    %639 = vector.broadcast %638 : vector<16x1xf32> to vector<16x32xf32>
    %640 = arith.mulf %630, %639 : vector<16x32xf32>
    %641 = vector.broadcast %623 : vector<1x32xf32> to vector<16x32xf32>
    %642 = arith.mulf %640, %641 : vector<16x32xf32>
    %643 = vector.broadcast %624 : vector<1x32xf32> to vector<16x32xf32>
    %644 = arith.addf %642, %643 : vector<16x32xf32>
    %645 = vector.extract_strided_slice %520 {offsets = [0, 0], sizes = [32, 64], strides = [1, 1]} : vector<33x64xf32> to vector<32x64xf32>
    %cst_171 = arith.constant dense<0.000000e+00> : vector<16x64xf32>
    %646 = tpu.matmul %644, %645, %cst_171 {dimension_numbers = #tpu.dot_dimension_numbers<[1], [0], [0], [1], [0, 0, 1, 1], [], []>} : vector<16x32xf32>, vector<32x64xf32>, vector<16x64xf32> -> vector<16x64xf32>
    %647 = vector.extract_strided_slice %520 {offsets = [32, 0], sizes = [1, 64], strides = [1, 1]} : vector<33x64xf32> to vector<1x64xf32>
    %648 = vector.broadcast %647 : vector<1x64xf32> to vector<16x64xf32>
    %649 = arith.addf %646, %648 : vector<16x64xf32>
    %cst_172 = arith.constant 0.000000e+00 : f32
    %650 = vector.broadcast %cst_172 : f32 to vector<16x64xf32>
    %651 = arith.maximumf %649, %650 : vector<16x64xf32>
    %652 = vector.extract_strided_slice %522 {offsets = [32, 0], sizes = [64, 32], strides = [1, 1]} : vector<102x32xf32> to vector<64x32xf32>
    %cst_173 = arith.constant dense<0.000000e+00> : vector<16x32xf32>
    %653 = tpu.matmul %651, %652, %cst_173 {dimension_numbers = #tpu.dot_dimension_numbers<[1], [0], [0], [1], [0, 0, 1, 1], [], []>} : vector<16x64xf32>, vector<64x32xf32>, vector<16x32xf32> -> vector<16x32xf32>
    %654 = vector.extract_strided_slice %522 {offsets = [97, 0], sizes = [1, 32], strides = [1, 1]} : vector<102x32xf32> to vector<1x32xf32>
    %655 = vector.broadcast %654 : vector<1x32xf32> to vector<16x32xf32>
    %656 = arith.addf %653, %655 : vector<16x32xf32>
    %657 = arith.addf %644, %656 : vector<16x32xf32>
    %658 = vector.extract_strided_slice %522 {offsets = [100, 0], sizes = [1, 32], strides = [1, 1]} : vector<102x32xf32> to vector<1x32xf32>
    %659 = vector.extract_strided_slice %522 {offsets = [101, 0], sizes = [1, 32], strides = [1, 1]} : vector<102x32xf32> to vector<1x32xf32>
    %cst_174 = arith.constant dense<0.000000e+00> : vector<16xf32>
    %660 = vector.multi_reduction <add>, %657, %cst_174 [1] : vector<16x32xf32> to vector<16xf32>
    %661 = vector.shape_cast %660 : vector<16xf32> to vector<16x1xf32>
    %cst_175 = arith.constant 3.200000e+01 : f32
    %662 = vector.broadcast %cst_175 : f32 to vector<16x1xf32>
    %663 = arith.divf %661, %662 : vector<16x1xf32>
    %664 = vector.broadcast %663 : vector<16x1xf32> to vector<16x32xf32>
    %665 = arith.subf %657, %664 : vector<16x32xf32>
    %666 = arith.mulf %665, %665 : vector<16x32xf32>
    %cst_176 = arith.constant dense<0.000000e+00> : vector<16xf32>
    %667 = vector.multi_reduction <add>, %666, %cst_176 [1] : vector<16x32xf32> to vector<16xf32>
    %668 = vector.shape_cast %667 : vector<16xf32> to vector<16x1xf32>
    %cst_177 = arith.constant 3.200000e+01 : f32
    %669 = vector.broadcast %cst_177 : f32 to vector<16x1xf32>
    %670 = arith.divf %668, %669 : vector<16x1xf32>
    %cst_178 = arith.constant 9.99999974E-6 : f32
    %671 = vector.broadcast %cst_178 : f32 to vector<16x1xf32>
    %672 = arith.addf %670, %671 : vector<16x1xf32>
    %673 = math.rsqrt %672 : vector<16x1xf32>
    %674 = vector.broadcast %673 : vector<16x1xf32> to vector<16x32xf32>
    %675 = arith.mulf %665, %674 : vector<16x32xf32>
    %676 = vector.broadcast %658 : vector<1x32xf32> to vector<16x32xf32>
    %677 = arith.mulf %675, %676 : vector<16x32xf32>
    %678 = vector.broadcast %659 : vector<1x32xf32> to vector<16x32xf32>
    %679 = arith.addf %677, %678 : vector<16x32xf32>
    %680 = vector.shape_cast %679 : vector<16x32xf32> to vector<2x8x32xf32>
    %681 = vector.broadcast %27 : vector<2x8x1xf32> to vector<2x8x32xf32>
    %682 = arith.mulf %680, %681 : vector<2x8x32xf32>
    %cst_179 = arith.constant dense<0.000000e+00> : vector<2x32xf32>
    %683 = vector.multi_reduction <add>, %682, %cst_179 [1] : vector<2x8x32xf32> to vector<2x32xf32>
    %cst_180 = arith.constant 0.000000e+00 : f32
    %684 = vector.broadcast %cst_180 : f32 to vector<2x32xf32>
    %685 = arith.maximumf %683, %684 : vector<2x32xf32>
    %c0_181 = arith.constant 0 : index
    %c0_182 = arith.constant 0 : index
    %686 = vector.load %arg5[%c0_181, %c0_182] : memref<33x32xf32, #tpu.memory_space<vmem>>, vector<32x32xf32>
    %cst_183 = arith.constant dense<0.000000e+00> : vector<2x32xf32>
    %687 = tpu.matmul %685, %686, %cst_183 {dimension_numbers = #tpu.dot_dimension_numbers<[1], [0], [0], [1], [0, 0, 1, 1], [], []>} : vector<2x32xf32>, vector<32x32xf32>, vector<2x32xf32> -> vector<2x32xf32>
    %c32 = arith.constant 32 : index
    %c0_184 = arith.constant 0 : index
    %688 = vector.load %arg5[%c32, %c0_184] : memref<33x32xf32, #tpu.memory_space<vmem>>, vector<1x32xf32>
    %689 = vector.broadcast %688 : vector<1x32xf32> to vector<2x32xf32>
    %690 = arith.addf %687, %689 : vector<2x32xf32>
    %c0_185 = arith.constant 0 : index
    %c0_186 = arith.constant 0 : index
    %691 = vector.load %arg6[%c0_185, %c0_186] : memref<2x32xf32, #tpu.memory_space<vmem>>, vector<2x32xf32>
    tpu.vector_store %arg6[%c0_185, %c0_186], %690 {strides = array<i32>} : memref<2x32xf32, #tpu.memory_space<vmem>>, vector<2x32xf32>,
    return
  }
}

</mosaic_0001>

<bundles_post_ra>
// kernel: definition2autoencoding_forward.1
= control target key start
LH: loop header
LB: loop body
LE: loop exit
PB: predicated region body
PF: predicated region fallthrough
CT: control target
= control target key end

     0   :  { %v25_v0 = vlaneseq  ;;  %s10162_s0 = inlined_call_operand.vmem [shape: s32[2,8], index: 0, kind: input, shape index: {}]   ;;  %s10163_s1 = inlined_call_operand.vmem [shape: f32[32,32], index: 1, kind: input, shape index: {}]   ;;  %s10164_s2 = inlined_call_operand.vmem [shape: f32[4,33,96], index: 2, kind: input, shape index: {}]   ;;  %s10165_s3 = inlined_call_operand.vmem [shape: f32[4,33,64], index: 3, kind: input, shape index: {}]   ;;  %s10166_s4 = inlined_call_operand.vmem [shape: f32[4,102,32], index: 4, kind: input, shape index: {}]   ;;  %s10167_s5 = inlined_call_operand.vmem [shape: f32[33,32], index: 5, kind: input, shape index: {}]   ;;  %s10168_s6 = inlined_call_operand.hbm [shape: f32[2,32], index: 6, kind: output, shape index: {}]  }
   0x1   :  { %v47_v1 = vld [vmem:[%s10163_s1] sm:$0xff]  ;;  %v48_v2 = vld [vmem:[%s10163_s1 + $0x8] sm:$0xff] }
   0x2   :  { %v186_v3 = vld [vmem:[%s10164_s2] sm:$0xff]  ;;  %v187_v4 = vld [vmem:[%s10164_s2 + $0x8] sm:$0xff]  ;;  %v8953_v5 = vshrl.u32 %v25_v0, 7  ;;  %v8514_v6 = vpack.c.bf16 %v48_v2, %v47_v1 }
   0x3   :  { %11 = vsyncpa [#allocation3], 0  ;;  %v8958_v7 = vld [vmem:[%s10162_s0] sm:$0x3]  ;;  %v8518_v8 = vpack.c.bf16 %v187_v4, %v186_v3  ;;  %v8887_v12 = vmov 0.0   ;;  %v26_v14 = vand.u32 127, %v25_v0 }
   0x4   :  { %v8961_v9 = vsub.s32 0, %v8953_v5  ;;  %v8964_v10 = vsub.s32 1, %v8953_v5  ;;  %8515 = vmatprep.subr.bf16.mxu0 %v8514_v6  ;;  %vm49_vm0 = vcmask 130048   ;;  %v188_v19 = vld [vmem:[%s10164_s2 + $0x10] sm:$0xff]  ;;  %v189_v20 = vld [vmem:[%s10164_s2 + $0x18] sm:$0xff]  ;;  %vm213_vm3 = vcmask 261120  }
   0x5   :  { %8517 = vmatpush3.bf16.msra.mxu0 %v8514_v6  ;;  %8519 = vmatprep.subr.bf16.mxu1 %v8518_v8  ;;  %v8522_v21 = vpack.c.bf16 %v189_v20, %v188_v19  ;;  %v131_v22 = vld [vmem:[%s10163_s1 + $0x10] sm:$0xff]  ;;  %vm8888_vm4 = vmmov 0   ;;  %v7512_v27 = vld [vmem:[%s10164_s2 + $0x20] ss:$0 sm:$0xff]  ;;  %s8889_s13 = smov 96   ;;  %vm300_vm5 = vcmask 64512  }
   0x6   :  { %v30_v11 = vrot.slane %v8958_v7, %v8961_v9  ;;  %8521 = vmatpush3.bf16.msra.mxu1 %v8518_v8  ;;  %7986 = vmatprep.subr.mxu0 %v8887_v12  ;;  %v37_v13 = vrot.slane %v8958_v7, %v8964_v10  ;;  %v8890_v36 = vmov 1966171168   ;;  %vm134_vm6 = vcmp.eq.s32.totalorder %v8958_v7, 0  ;;  %s8891_s14 = smov 64   ;;  %s8892_s15 = smov 88  }
   0x7   :  { %8523 = vmatprep.subr.bf16.mxu1 %v8522_v21  ;;  %v140_v37 = vunpack.c.l.s4 %v8890_v36  ;;  %v9028_v39 = vsel %vm134_vm6, 1.0, %v8887_v12  ;;  %s8893_s16 = smov 120   ;;  %s8894_s17 = smov 56   ;;  %vm1646_vm7 = vcmask 195584   ;;  %vm1866_vm8 = vcmask 523264  }
   0x8   :  { %32 = vbcast.lane.b32.xlu0 %v30_v11, 256  ;;  %v137_v40 = vmul.f32 -1e+30, %v9028_v39  ;;  %s8895_s18 = smov 80   ;;  %s8896_s19 = smov 112   ;;  %vm7417_vm9 = vcmask 1041409  }
   0x9   :  { %v141_v38 = vunpack.c.0.s8 %v140_v37  ;;  %s8897_s20 = smov 48   ;;  %s8898_s21 = smov 72   ;;  %vm7491_vm10 = vcmask 254976  }
   0xa   :  { %8525 = vmatpush3.bf16.msra.mxu1 %v8522_v21  ;;  %s8899_s22 = smov 104   ;;  %s8900_s23 = smov 40  }
   0xb   :  { %7996 = vmatprep.subr.mxu1 %v8887_v12  ;;  %v144_v41 = vsub.s32 %v141_v38, %v8953_v5  ;;  %s8901_s24 = smov 8   ;;  %s8902_s25 = smov 16  }
   0xc   :  { %39 = vbcast.lane.b32.xlu0 %v37_v13, 256  ;;  %s8903_s9 = smov 24   ;;  %s8905_s10 = smov [#allocation2]  }
   0xd   :  { %v145_v42 = vrot.slane %v137_v40, %v144_v41  ;;  %s7499_s11 = sshll.u32 %s8905_s10, 4  ;;  %s7500_s11 = int_to_ptr.vmem [resolvable:$true] %s7499_s11 }
   0xe   :  { %s8863_s1 = scalar_lea.vmem %s7500_s11, 32  ;;  %p8868_p1 = scmp.lt.s32.totalorder %s7500_s11, %s7500_s11 }
   0xf   :  { %v146_v43 = vcombine.high %v145_v42, %v145_v42  ;;  %v153_v44 = vrot.slane %v145_v42, %v144_v41  ;;  %p8864_p0 = scmp.ne.s32.totalorder %s7500_s11, %s8863_s1  ;;  %p8869_p2 = scmp.lt.s32.totalorder %s8863_s1, %s8863_s1 }
  0x11   :  { %v160_v45 = vrot.slane %v146_v43, %v144_v41  ;;  %v9033_v46 = vrot.slane %v153_v44, %v8961_v9  ;;  %p8870_p3 = por %p8869_p2, %p8868_p1 }
  0x13   :  { %v9036_v48 = vrot.slane %v160_v45, %v8961_v9  ;;  %p8871_p4 = pnand %p8870_p3, %p8864_p0 }
  0x7a   :  { %v33_v15 = vpop.permute.xlu0 %32 }
  0x7b   :  { %vm41_vm1 = vcmp.eq.s32.totalorder %v26_v14, %v33_v15 }
  0x7c   :  { %v7507_v16 = vsel %vm41_vm1, 1.0, %v8887_v12 }
  0x7d   :  { %7972 = vmatprep.mubr.msk.f32.mxu0 %vm49_vm0, %v7507_v16 }
  0x7e   :  { %v40_v17 = vpop.permute.xlu0 %39 }
  0x7f   :  { %vm42_vm2 = vcmp.eq.s32.totalorder %v26_v14, %v40_v17 }
  0x80   :  { %v7508_v18 = vsel %vm42_vm2, 1.0, %v8887_v12 }
  0x81   :  { %7973 = vmatmul.mubr.msk.f32.vlgmr.msra.gmra.mrb[0].mxu0 %vm49_vm0, %v7508_v18 }
  0x82   :  { %7988 = vmatprep.mubr.msk.f32.mxu0 %vm8888_vm4, %v8887_v12 }
 0x154   :  { %v7974_v23 = vpop.f32.mrb[0].mxu0 }
 0x155   :  { %v122_v24 = vpop.f32.mrb[1].mxu0  ;;  %v8987_v26 = vadd.f32 %v7974_v23, %v131_v22 }
 0x156   :  { %v8985_v25 = vadd.f32 %v131_v22, %v122_v24 }
 0x158   :  { %7983 = vmatprep.mubr.msk.f32.mxu1 %vm213_vm3, %v8985_v25 }
 0x159   :  { %7984 = vmatmul.mubr.msk.f32.vlgmr.msra.gmra.mrb[0].mxu1 %vm213_vm3, %v8987_v26 }
 0x15a   :  { %7998 = vmatprep.mubr.msk.f32.mxu1 %vm8888_vm4, %v8887_v12 }
 0x22c   :  { %v7985_v28 = vpop.f32.mrb[0].mxu1 }
 0x22d   :  { %v286_v29 = vpop.f32.mrb[1].mxu1  ;;  %v9004_v31 = vadd.f32 %v7985_v28, %v7512_v27 }
 0x22e   :  { %v9000_v30 = vadd.f32 %v7512_v27, %v286_v29 }
 0x22f   :  { %v9019_v35 = vmul.f32 0.35355338, %v9004_v31 }
 0x230   :  { %298 = vrot.lane.b32.xlu1 %v9000_v30, %s8889_s13  ;;  %v9011_v33 = vmul.f32 0.35355338, %v9000_v30 }
 0x234   :  { %377 = vrot.lane.b32.xlu1 %v9004_v31, %s8889_s13 }
 0x2a2   :  { %v299_v32 = vpop.permute.xlu1 %298 }
 0x2a3   :  { %7987 = vmatpush3.xpose.msk.msra.mxu0 %vm300_vm5, %v299_v32 }
 0x2a4   :  { %7991 = vmatprep.subr.mxu0 %v8887_v12 }
 0x2a6   :  { %v378_v34 = vpop.permute.xlu1 %377  ;;  %7989 = vmatmul.mubr.msk.f32.vlgmr.msra.gmra.mrb[2].mxu0 %vm300_vm5, %v9011_v33 }
 0x2a7   :  { %7992 = vmatpush3.xpose.msk.msra.mxu0 %vm300_vm5, %v378_v34  ;;  %7993 = vmatprep.mubr.msk.f32.mxu0 %vm8888_vm4, %v8887_v12 }
 0x2a8   :  { %8001 = vmatprep.subr.mxu0 %v8887_v12 }
 0x2aa   :  { %7994 = vmatmul.mubr.msk.f32.vlgmr.msra.gmra.mrb[4].mxu0 %vm300_vm5, %v9019_v35 }
 0x2ab   :  { %8003 = vmatprep.mubr.msk.f32.mxu0 %vm8888_vm4, %v8887_v12 }
 0x379   :  { %v372_v47 = vpop.f32.mrb[2].mxu0 }
 0x37a   :  { %v373_v49 = vadd.f32 %v372_v47, %v9033_v46  ;;  %v7990_v50 = vpop.f32.mrb[3].mxu0 }
 0x37c   :  { %v454_v51 = vsel %vm300_vm5, %v373_v49, -inf }
 0x37d   :  { %455 = vmax.xlane.f32.xlu0 %v454_v51  ;;  %v450_v52 = vpop.f32.mrb[4].mxu0 }
 0x37e   :  { %v451_v53 = vadd.f32 %v450_v52, %v9036_v48  ;;  %v7995_v54 = vpop.f32.mrb[5].mxu0 }
 0x380   :  { %v457_v55 = vsel %vm300_vm5, %v451_v53, -inf }
 0x381   :  { %458 = vmax.xlane.f32.xlu1 %v457_v55 }
 0x392   :  { %476 = vrot.lane.b32.xlu1 %v9000_v30, %s8891_s14 }
 0x393   :  { %552 = vrot.lane.b32.xlu0 %v9004_v31, %s8891_s14 }
 0x396   :  { %630 = vrot.lane.b32.xlu1 %v9000_v30, %s8892_s15 }
 0x39a   :  { %708 = vrot.lane.b32.xlu1 %v9004_v31, %s8892_s15 }
 0x39e   :  { %706 = vrot.lane.b32.xlu1 %v9019_v35, %s8893_s16 }
 0x40a   :  { %v456_v56 = vpop.xlane.xlu0 %455 }
 0x40b   :  { %v460_v57 = vsub.f32 %v373_v49, %v456_v56 }
 0x40d   :  { %v462_v58 = vmul.f32 1.442695, %v460_v57 }
 0x40e   :  { %v553_v59 = vpop.permute.xlu0 %552  ;;  %v459_v60 = vpop.xlane.xlu1 %458 }
 0x40f   :  { %8703 = vpow2.f32 %v462_v58  ;;  %v461_v61 = vsub.f32 %v451_v53, %v459_v60  ;;  %8002 = vmatpush3.msra.mxu0 %v553_v59 }
 0x410   :  { %8011 = vmatprep.subr.mxu0 %v8887_v12 }
 0x411   :  { %v464_v62 = vmul.f32 1.442695, %v461_v61 }
 0x412   :  { %v477_v63 = vpop.permute.xlu1 %476 }
 0x413   :  { %8705 = vpow2.f32 %v464_v62  ;;  %7997 = vmatpush3.msra.mxu1 %v477_v63 }
 0x414   :  { %8006 = vmatprep.subr.mxu1 %v8887_v12 }
 0x416   :  { %v631_v7 = vpop.permute.xlu1 %630 }
 0x419   :  { %v8704_v0 = vpop.eup %8703 }
 0x41a   :  { %v466_v1 = vsel %vm300_vm5, %v8704_v0, 0.0  ;;  %v709_v14 = vpop.permute.xlu1 %708 }
 0x41b   :  { %467 = vadd.xlane.f32.xlu0 %v466_v1 }
 0x41d   :  { %v8706_v2 = vpop.eup %8705 }
 0x41e   :  { %v469_v3 = vsel %vm300_vm5, %v8706_v2, 0.0  ;;  %v707_v17 = vpop.permute.xlu1 %706 }
 0x41f   :  { %470 = vadd.xlane.f32.xlu0 %v469_v3 }
 0x435   :  { %628 = vrot.lane.b32.xlu0 %v9011_v33, %s8893_s16 }
 0x4a8   :  { %v468_v4 = vpop.xlane.xlu0 %467 }
 0x4a9   :  { %8707 = vrcp.f32 %v468_v4 }
 0x4ac   :  { %v471_v6 = vpop.xlane.xlu0 %470 }
 0x4ad   :  { %8709 = vrcp.f32 %v471_v6 }
 0x4b0   :  { %v629_v16 = vpop.permute.xlu0 %628 }
 0x4b3   :  { %v8708_v8 = vpop.eup %8707 }
 0x4b4   :  { %v474_v11 = vmul.f32 %v8708_v8, %v8704_v0 }
 0x4b6   :  { %7999 = vmatmul.mubr.msk.f32.vlgmr.msra.gmra.mrb[2].mxu1 %vm300_vm5, %v474_v11 }
 0x4b7   :  { %v8710_v13 = vpop.eup %8709  ;;  %8007 = vmatpush3.xpose.msk.msra.mxu1 %vm300_vm5, %v631_v7  ;;  %8008 = vmatprep.mubr.msk.f32.mxu1 %vm8888_vm4, %v8887_v12 }
 0x4b8   :  { %v475_v15 = vmul.f32 %v8710_v13, %v8706_v2  ;;  %8016 = vmatprep.subr.mxu1 %v8887_v12 }
 0x4ba   :  { %8004 = vmatmul.mubr.msk.f32.vlgmr.msra.gmra.mrb[6].mxu0 %vm300_vm5, %v475_v15  ;;  %8009 = vmatmul.mubr.msk.f32.vlgmr.msra.gmra.mrb[4].mxu1 %vm300_vm5, %v629_v16 }
 0x4bb   :  { %8012 = vmatpush3.xpose.msk.msra.mxu0 %vm300_vm5, %v709_v14  ;;  %8013 = vmatprep.mubr.msk.f32.mxu0 %vm8888_vm4, %v8887_v12 }
 0x4bc   :  { %8021 = vmatprep.subr.mxu0 %v8887_v12  ;;  %8018 = vmatprep.mubr.msk.f32.mxu1 %vm8888_vm4, %v8887_v12 }
 0x4be   :  { %8014 = vmatmul.mubr.msk.f32.vlgmr.msra.gmra.mrb[8].mxu0 %vm300_vm5, %v707_v17 }
 0x4bf   :  { %8023 = vmatprep.mubr.msk.f32.mxu0 %vm8888_vm4, %v8887_v12 }
 0x589   :  { %v9074_v18 = vpop.f32.mrb[2].mxu1 }
 0x58a   :  { %v8000_v19 = vpop.f32.mrb[3].mxu1 }
 0x58d   :  { %v9076_v20 = vpop.f32.mrb[6].mxu0  ;;  %v702_v21 = vpop.f32.mrb[4].mxu1 }
 0x58e   :  { %v703_v22 = vadd.f32 %v702_v21, %v9033_v46  ;;  %v8005_v23 = vpop.f32.mrb[7].mxu0  ;;  %v8010_v24 = vpop.f32.mrb[5].mxu1 }
 0x590   :  { %v784_v27 = vsel %vm300_vm5, %v703_v22, -inf }
 0x591   :  { %785 = vmax.xlane.f32.xlu0 %v784_v27  ;;  %v780_v28 = vpop.f32.mrb[8].mxu0 }
 0x592   :  { %v781_v29 = vadd.f32 %v780_v28, %v9036_v48  ;;  %v8015_v32 = vpop.f32.mrb[9].mxu0 }
 0x594   :  { %v787_v34 = vsel %vm300_vm5, %v781_v29, -inf }
 0x595   :  { %788 = vmax.xlane.f32.xlu1 %v787_v34 }
 0x5a6   :  { %806 = vrot.lane.b32.xlu1 %v9000_v30, %s8894_s17 }
 0x5a7   :  { %882 = vrot.lane.b32.xlu0 %v9004_v31, %s8894_s17 }
 0x5aa   :  { %960 = vrot.lane.b32.xlu1 %v9000_v30, %s8895_s18 }
 0x5ae   :  { %1038 = vrot.lane.b32.xlu1 %v9004_v31, %s8895_s18 }
 0x5b2   :  { %1036 = vrot.lane.b32.xlu1 %v9019_v35, %s8896_s19 }
 0x61e   :  { %v786_v36 = vpop.xlane.xlu0 %785 }
 0x61f   :  { %v790_v37 = vsub.f32 %v703_v22, %v786_v36 }
 0x621   :  { %v792_v38 = vmul.f32 1.442695, %v790_v37 }
 0x622   :  { %v883_v40 = vpop.permute.xlu0 %882  ;;  %v789_v41 = vpop.xlane.xlu1 %788 }
 0x623   :  { %8711 = vpow2.f32 %v792_v38  ;;  %v791_v42 = vsub.f32 %v781_v29, %v789_v41  ;;  %8022 = vmatpush3.msra.mxu0 %v883_v40 }
 0x624   :  { %8031 = vmatprep.subr.mxu0 %v8887_v12 }
 0x625   :  { %v794_v43 = vmul.f32 1.442695, %v791_v42 }
 0x626   :  { %v807_v44 = vpop.permute.xlu1 %806 }
 0x627   :  { %8713 = vpow2.f32 %v794_v43  ;;  %8017 = vmatpush3.msra.mxu1 %v807_v44 }
 0x628   :  { %8026 = vmatprep.subr.mxu1 %v8887_v12 }
 0x62a   :  { %v961_v53 = vpop.permute.xlu1 %960 }
 0x62d   :  { %v8712_v45 = vpop.eup %8711 }
 0x62e   :  { %v796_v47 = vsel %vm300_vm5, %v8712_v45, 0.0  ;;  %v1039_v57 = vpop.permute.xlu1 %1038 }
 0x62f   :  { %797 = vadd.xlane.f32.xlu0 %v796_v47 }
 0x631   :  { %v8714_v49 = vpop.eup %8713 }
 0x632   :  { %v799_v50 = vsel %vm300_vm5, %v8714_v49, 0.0  ;;  %v1037_v60 = vpop.permute.xlu1 %1036 }
 0x633   :  { %800 = vadd.xlane.f32.xlu0 %v799_v50 }
 0x649   :  { %958 = vrot.lane.b32.xlu0 %v9011_v33, %s8896_s19 }
 0x6bc   :  { %v798_v51 = vpop.xlane.xlu0 %797 }
 0x6bd   :  { %8715 = vrcp.f32 %v798_v51 }
 0x6c0   :  { %v801_v52 = vpop.xlane.xlu0 %800 }
 0x6c1   :  { %8717 = vrcp.f32 %v801_v52 }
 0x6c4   :  { %v959_v59 = vpop.permute.xlu0 %958 }
 0x6c7   :  { %v8716_v54 = vpop.eup %8715 }
 0x6c8   :  { %v804_v55 = vmul.f32 %v8716_v54, %v8712_v45 }
 0x6ca   :  { %8019 = vmatmul.mubr.msk.f32.vlgmr.msra.gmra.mrb[6].mxu1 %vm300_vm5, %v804_v55 }
 0x6cb   :  { %v8718_v56 = vpop.eup %8717  ;;  %8027 = vmatpush3.xpose.msk.msra.mxu1 %vm300_vm5, %v961_v53  ;;  %8028 = vmatprep.mubr.msk.f32.mxu1 %vm8888_vm4, %v8887_v12 }
 0x6cc   :  { %v805_v58 = vmul.f32 %v8718_v56, %v8714_v49  ;;  %8036 = vmatprep.subr.mxu1 %v8887_v12 }
 0x6ce   :  { %8024 = vmatmul.mubr.msk.f32.vlgmr.msra.gmra.mrb[10].mxu0 %vm300_vm5, %v805_v58  ;;  %8029 = vmatmul.mubr.msk.f32.vlgmr.msra.gmra.mrb[8].mxu1 %vm300_vm5, %v959_v59 }
 0x6cf   :  { %8032 = vmatpush3.xpose.msk.msra.mxu0 %vm300_vm5, %v1039_v57  ;;  %8033 = vmatprep.mubr.msk.f32.mxu0 %vm8888_vm4, %v8887_v12 }
 0x6d0   :  { %8041 = vmatprep.subr.mxu0 %v8887_v12  ;;  %8038 = vmatprep.mubr.msk.f32.mxu1 %vm8888_vm4, %v8887_v12 }
 0x6d2   :  { %8034 = vmatmul.mubr.msk.f32.vlgmr.msra.gmra.mrb[12].mxu0 %vm300_vm5, %v1037_v60 }
 0x6d3   :  { %8043 = vmatprep.mubr.msk.f32.mxu0 %vm8888_vm4, %v8887_v12 }
 0x79d   :  { %v9114_v61 = vpop.f32.mrb[6].mxu1 }
 0x79e   :  { %v8020_v62 = vpop.f32.mrb[7].mxu1 }
 0x7a1   :  { %v9116_v63 = vpop.f32.mrb[10].mxu0  ;;  %v1032_v0 = vpop.f32.mrb[8].mxu1 }
 0x7a2   :  { %v1033_v1 = vadd.f32 %v1032_v0, %v9033_v46  ;;  %v8025_v2 = vpop.f32.mrb[11].mxu0  ;;  %v8030_v3 = vpop.f32.mrb[9].mxu1 }
 0x7a4   :  { %v1114_v4 = vsel %vm300_vm5, %v1033_v1, -inf }
 0x7a5   :  { %1115 = vmax.xlane.f32.xlu0 %v1114_v4  ;;  %v1110_v6 = vpop.f32.mrb[12].mxu0 }
 0x7a6   :  { %v1111_v7 = vadd.f32 %v1110_v6, %v9036_v48  ;;  %v8035_v8 = vpop.f32.mrb[13].mxu0 }
 0x7a8   :  { %v1117_v11 = vsel %vm300_vm5, %v1111_v7, -inf }
 0x7a9   :  { %1118 = vmax.xlane.f32.xlu1 %v1117_v11 }
 0x7ba   :  { %1136 = vrot.lane.b32.xlu1 %v9000_v30, %s8897_s20 }
 0x7bb   :  { %1212 = vrot.lane.b32.xlu0 %v9004_v31, %s8897_s20 }
 0x7be   :  { %1290 = vrot.lane.b32.xlu1 %v9000_v30, %s8898_s21 }
 0x7c2   :  { %1368 = vrot.lane.b32.xlu1 %v9004_v31, %s8898_s21 }
 0x7c6   :  { %1366 = vrot.lane.b32.xlu1 %v9019_v35, %s8899_s22 }
 0x832   :  { %v1116_v13 = vpop.xlane.xlu0 %1115 }
 0x833   :  { %v1120_v14 = vsub.f32 %v1033_v1, %v1116_v13  ;;  %v197_v13 = vld [vmem:[%s10166_s4 + $0x8] sm:$0xff] }
 0x835   :  { %v1122_v15 = vmul.f32 1.442695, %v1120_v14 }
 0x836   :  { %v1213_v16 = vpop.permute.xlu0 %1212  ;;  %v1119_v17 = vpop.xlane.xlu1 %1118 }
 0x837   :  { %8719 = vpow2.f32 %v1122_v15  ;;  %v1121_v19 = vsub.f32 %v1111_v7, %v1119_v17  ;;  %8042 = vmatpush3.msra.mxu0 %v1213_v16  ;;  %v198_v15 = vld [vmem:[%s10166_s4 + $0x10] sm:$0xff]  ;;  %v199_v16 = vld [vmem:[%s10166_s4 + $0x18] sm:$0xff] }
 0x838   :  { %8051 = vmatprep.subr.mxu0 %v8887_v12  ;;  %v8530_v17 = vpack.c.bf16 %v199_v16, %v198_v15 }
 0x839   :  { %v1124_v21 = vmul.f32 1.442695, %v1121_v19 }
 0x83a   :  { %v1137_v22 = vpop.permute.xlu1 %1136 }
 0x83b   :  { %8721 = vpow2.f32 %v1124_v21  ;;  %8037 = vmatpush3.msra.mxu1 %v1137_v22 }
 0x83c   :  { %8046 = vmatprep.subr.mxu1 %v8887_v12 }
 0x83e   :  { %v1291_v32 = vpop.permute.xlu1 %1290 }
 0x841   :  { %v8720_v23 = vpop.eup %8719 }
 0x842   :  { %v1126_v24 = vsel %vm300_vm5, %v8720_v23, 0.0  ;;  %v1369_v38 = vpop.permute.xlu1 %1368 }
 0x843   :  { %1127 = vadd.xlane.f32.xlu0 %v1126_v24 }
 0x845   :  { %v8722_v35 = vpop.eup %8721 }
 0x846   :  { %v1129_v27 = vsel %vm300_vm5, %v8722_v35, 0.0  ;;  %v1367_v41 = vpop.permute.xlu1 %1366 }
 0x847   :  { %1130 = vadd.xlane.f32.xlu0 %v1129_v27 }
 0x85d   :  { %1288 = vrot.lane.b32.xlu0 %v9011_v33, %s8899_s22 }
 0x8d0   :  { %v1128_v28 = vpop.xlane.xlu0 %1127 }
 0x8d1   :  { %8723 = vrcp.f32 %v1128_v28 }
 0x8d4   :  { %v1131_v29 = vpop.xlane.xlu0 %1130 }
 0x8d5   :  { %8725 = vrcp.f32 %v1131_v29 }
 0x8d8   :  { %v1289_v33 = vpop.permute.xlu0 %1288 }
 0x8db   :  { %v8724_v34 = vpop.eup %8723 }
 0x8dc   :  { %v1134_v36 = vmul.f32 %v8724_v34, %v8720_v23 }
 0x8de   :  { %8039 = vmatmul.mubr.msk.f32.vlgmr.msra.gmra.mrb[10].mxu1 %vm300_vm5, %v1134_v36 }
 0x8df   :  { %v8726_v37 = vpop.eup %8725  ;;  %8047 = vmatpush3.xpose.msk.msra.mxu1 %vm300_vm5, %v1291_v32  ;;  %8048 = vmatprep.mubr.msk.f32.mxu1 %vm8888_vm4, %v8887_v12 }
 0x8e0   :  { %v1135_v40 = vmul.f32 %v8726_v37, %v8722_v35  ;;  %8056 = vmatprep.subr.mxu1 %v8887_v12 }
 0x8e2   :  { %8044 = vmatmul.mubr.msk.f32.vlgmr.msra.gmra.mrb[14].mxu0 %vm300_vm5, %v1135_v40  ;;  %8049 = vmatmul.mubr.msk.f32.vlgmr.msra.gmra.mrb[12].mxu1 %vm300_vm5, %v1289_v33 }
 0x8e3   :  { %8052 = vmatpush3.xpose.msk.msra.mxu0 %vm300_vm5, %v1369_v38  ;;  %8053 = vmatprep.mubr.msk.f32.mxu0 %vm8888_vm4, %v8887_v12 }
 0x8e4   :  { %8061 = vmatprep.subr.mxu0 %v8887_v12  ;;  %8058 = vmatprep.mubr.msk.f32.mxu1 %vm8888_vm4, %v8887_v12 }
 0x8e6   :  { %8054 = vmatmul.mubr.msk.f32.vlgmr.msra.gmra.mrb[16].mxu0 %vm300_vm5, %v1367_v41 }
 0x8e7   :  { %8063 = vmatprep.mubr.msk.f32.mxu0 %vm8888_vm4, %v8887_v12 }
 0x9b1   :  { %v1208_v42 = vpop.f32.mrb[10].mxu1 }
 0x9b2   :  { %v8040_v43 = vpop.f32.mrb[11].mxu1 }
 0x9b5   :  { %v1284_v44 = vpop.f32.mrb[14].mxu0  ;;  %v1362_v45 = vpop.f32.mrb[12].mxu1 }
 0x9b6   :  { %v1363_v47 = vadd.f32 %v1362_v45, %v9033_v46  ;;  %v8045_v49 = vpop.f32.mrb[15].mxu0  ;;  %v8050_v50 = vpop.f32.mrb[13].mxu1 }
 0x9b8   :  { %v1444_v51 = vsel %vm300_vm5, %v1363_v47, -inf }
 0x9b9   :  { %1445 = vmax.xlane.f32.xlu0 %v1444_v51  ;;  %v1440_v52 = vpop.f32.mrb[16].mxu0 }
 0x9ba   :  { %v1441_v53 = vadd.f32 %v1440_v52, %v9036_v48  ;;  %v8055_v54 = vpop.f32.mrb[17].mxu0 }
 0x9bc   :  { %v1447_v55 = vsel %vm300_vm5, %v1441_v53, -inf }
 0x9bd   :  { %1448 = vmax.xlane.f32.xlu1 %v1447_v55 }
 0x9ce   :  { %1466 = vrot.lane.b32.xlu1 %v9000_v30, %s8900_s23 }
 0x9d2   :  { %1620 = vrot.lane.b32.xlu1 %v9114_v61, %s8901_s24 }
 0x9d6   :  { %1622 = vrot.lane.b32.xlu1 %v9116_v63, %s8901_s24 }
 0x9da   :  { %1630 = vrot.lane.b32.xlu1 %v1284_v44, %s8902_s25 }
 0xa46   :  { %v1446_v56 = vpop.xlane.xlu0 %1445 }
 0xa47   :  { %v1450_v57 = vsub.f32 %v1363_v47, %v1446_v56 }
 0xa49   :  { %v1452_v58 = vmul.f32 1.442695, %v1450_v57 }
 0xa4a   :  { %v1449_v59 = vpop.xlane.xlu1 %1448 }
 0xa4b   :  { %8727 = vpow2.f32 %v1452_v58  ;;  %v1451_v60 = vsub.f32 %v1441_v53, %v1449_v59 }
 0xa4d   :  { %v1454_v62 = vmul.f32 1.442695, %v1451_v60  ;;  %v192_v60 = vld [vmem:[%s10165_s3 + $0x8] sm:$0xff] }
 0xa4e   :  { %v1467_v0 = vpop.permute.xlu1 %1466 }
 0xa4f   :  { %8729 = vpow2.f32 %v1454_v62  ;;  %8057 = vmatpush3.msra.mxu1 %v1467_v0  ;;  %v193_v0 = vld [vmem:[%s10165_s3 + $0x10] sm:$0xff] }
 0xa52   :  { %v1621_v24 = vpop.permute.xlu1 %1620 }
 0xa53   :  { %v1642_v28 = vsel %vm300_vm5, %v9074_v18, %v1621_v24  ;;  %v9199_v18 = vld [vmem:[%s10166_s4 + $0x60] sm:$0x3f] }
 0xa54   :  { %v1652_v41 = vrot.slane %v9199_v18, %v8961_v9 }
 0xa55   :  { %v8728_v30 = vpop.eup %8727 }
 0xa56   :  { %v1456_v1 = vsel %vm300_vm5, %v8728_v30, 0.0  ;;  %v1623_v35 = vpop.permute.xlu1 %1622 }
 0xa57   :  { %1457 = vadd.xlane.f32.xlu0 %v1456_v1  ;;  %v1643_v37 = vsel %vm300_vm5, %v9076_v20, %v1623_v35 }
 0xa59   :  { %v8730_v61 = vpop.eup %8729 }
 0xa5a   :  { %v1459_v63 = vsel %vm300_vm5, %v8730_v61, 0.0  ;;  %v1631_v29 = vpop.permute.xlu1 %1630 }
 0xa5b   :  { %1460 = vadd.xlane.f32.xlu0 %v1459_v63  ;;  %v1645_v38 = vsel %vm49_vm0, %v1643_v37, %v1631_v29  ;;  %v201_v63 = vld [vmem:[%s10166_s4 + $0x28] sm:$0xff]  ;;  %v206_v37 = vld [vmem:[%s10166_s4 + $0x50] sm:$0xff] }
 0xa71   :  { %1542 = vrot.lane.b32.xlu0 %v9004_v31, %s8900_s23  ;;  %v196_v31 = vld [vmem:[%s10166_s4] sm:$0xff] }
 0xa72   :  { %v8526_v14 = vpack.c.bf16 %v197_v13, %v196_v31 }
 0xa74   :  { %8527 = vmatprep.subr.bf16.mxu1 %v8526_v14 }
 0xa75   :  { %1628 = vrot.lane.b32.xlu0 %v1208_v42, %s8902_s25 }
 0xae4   :  { %v1458_v2 = vpop.xlane.xlu0 %1457 }
 0xae5   :  { %8731 = vrcp.f32 %v1458_v2  ;;  %v202_v2 = vld [vmem:[%s10166_s4 + $0x30] sm:$0xff] }
 0xae8   :  { %v1461_v3 = vpop.xlane.xlu0 %1460 }
 0xae9   :  { %8733 = vrcp.f32 %v1461_v3 }
 0xaec   :  { %v1543_v4 = vpop.permute.xlu0 %1542 }
 0xaed   :  { %8062 = vmatpush3.msra.mxu0 %v1543_v4  ;;  %v203_v4 = vld [vmem:[%s10166_s4 + $0x38] sm:$0xff] }
 0xaef   :  { %v8732_v6 = vpop.eup %8731 }
 0xaf0   :  { %v1464_v7 = vmul.f32 %v8732_v6, %v8728_v30  ;;  %v1629_v27 = vpop.permute.xlu0 %1628  ;;  %v194_v30 = vld [vmem:[%s10165_s3 + $0x18] sm:$0xff]  ;;  %v8546_v6 = vpack.c.bf16 %v203_v4, %v202_v2  ;;  %v7549_v4 = vld [vmem:[%s10164_s2 + $0x40] sm:$0xff] }
 0xaf1   :  { %v1644_v32 = vsel %vm49_vm0, %v1642_v28, %v1629_v27  ;;  %v8538_v1 = vpack.c.bf16 %v194_v30, %v193_v0 }
 0xaf2   :  { %8059 = vmatmul.mubr.msk.f32.vlgmr.msra.gmra.mrb[14].mxu1 %vm300_vm5, %v1464_v7  ;;  %v204_v7 = vld [vmem:[%s10166_s4 + $0x40] sm:$0xff] }
 0xaf3   :  { %v8734_v8 = vpop.eup %8733  ;;  %8529 = vmatpush3.bf16.msra.mxu1 %v8526_v14 }
 0xaf4   :  { %v1465_v11 = vmul.f32 %v8734_v8, %v8730_v61  ;;  %8531 = vmatprep.subr.bf16.mxu1 %v8530_v17  ;;  %v200_v61 = vld [vmem:[%s10166_s4 + $0x20] sm:$0xff]  ;;  %v205_v8 = vld [vmem:[%s10166_s4 + $0x48] sm:$0xff] }
 0xaf5   :  { %v8542_v3 = vpack.c.bf16 %v201_v63, %v200_v61  ;;  %v7546_v61 = vld [vmem:[%s10164_s2 + $0x28] sm:$0xff]  ;;  %v7547_v63 = vld [vmem:[%s10164_s2 + $0x30] sm:$0xff] }
 0xaf6   :  { %8064 = vmatmul.mubr.msk.f32.vlgmr.msra.gmra.mrb[18].mxu0 %vm300_vm5, %v1465_v11  ;;  %v8550_v11 = vpack.c.bf16 %v205_v8, %v204_v7  ;;  %v8558_v2 = vpack.c.bf16 %v7547_v63, %v7546_v61 }
 0xaf7   :  { %8533 = vmatpush3.bf16.msra.mxu1 %v8530_v17 }
 0xaf8   :  { %8543 = vmatprep.subr.bf16.mxu1 %v8542_v3 }
 0xbc5   :  { %v1538_v19 = vpop.f32.mrb[14].mxu1 }
 0xbc6   :  { %1636 = vrot.lane.b32.xlu0 %v1538_v19, %s8903_s9  ;;  %v8060_v21 = vpop.f32.mrb[15].mxu1  ;;  %v9240_v19 = vsub.s32 2, %v8953_v5 }
 0xbc7   :  { %v9243_v21 = vsub.s32 3, %v8953_v5 }
 0xbc9   :  { %v1614_v22 = vpop.f32.mrb[18].mxu0  ;;  %v1772_v35 = vrot.slane %v9199_v18, %v9243_v21 }
 0xbca   :  { %1638 = vrot.lane.b32.xlu1 %v1614_v22, %s8903_s9  ;;  %v8065_v23 = vpop.f32.mrb[19].mxu0  ;;  %v1766_v22 = vrot.slane %v9199_v18, %v9240_v19 }
 0xc38   :  { %v1637_v34 = vpop.permute.xlu0 %1636 }
 0xc39   :  { %v1647_v36 = vsel %vm1646_vm7, %v1644_v32, %v1637_v34 }
 0xc3a   :  { %8074 = vmatprep.mubr.msk.f32.mxu1 %vm213_vm3, %v1647_v36 }
 0xc3c   :  { %v1639_v40 = vpop.permute.xlu1 %1638 }
 0xc3d   :  { %v1648_v33 = vsel %vm1646_vm7, %v1645_v38, %v1639_v40  ;;  %v207_v38 = vld [vmem:[%s10166_s4 + $0x58] sm:$0xff] }
 0xc3e   :  { %8075 = vmatmul.mubr.msk.f32.vlgmr.msra.gmra.mrb[16].mxu1 %vm213_vm3, %v1648_v33  ;;  %v8554_v40 = vpack.c.bf16 %v207_v38, %v206_v37  ;;  %v7541_v33 = vld [vmem:[%s10165_s3 + $0x20] ss:$0 sm:$0xff] }
 0xc3f   :  { %8545 = vmatpush3.bf16.msra.mxu1 %v8542_v3  ;;  %v7548_v3 = vld [vmem:[%s10164_s2 + $0x38] sm:$0xff] }
 0xc40   :  { %8547 = vmatprep.subr.bf16.mxu1 %v8546_v6 }
 0xc43   :  { %8549 = vmatpush3.bf16.msra.mxu1 %v8546_v6  ;;  %v8562_v6 = vpack.c.bf16 %v7549_v4, %v7548_v3 }
 0xc44   :  { %8551 = vmatprep.subr.bf16.mxu1 %v8550_v11 }
 0xc47   :  { %8553 = vmatpush3.bf16.msra.mxu1 %v8550_v11 }
 0xc48   :  { %8555 = vmatprep.subr.bf16.mxu1 %v8554_v40 }
 0xc4b   :  { %8557 = vmatpush3.bf16.msra.mxu1 %v8554_v40 }
 0xc4c   :  { %8128 = vmatprep.subr.mxu1 %v8887_v12 }
 0xd11   :  { %v8076_v42 = vpop.f32.mrb[16].mxu1 }
 0xd12   :  { %v1731_v43 = vadd.f32 %v8076_v42, %v1652_v41  ;;  %v1725_v44 = vpop.f32.mrb[17].mxu1 }
 0xd13   :  { %v1726_v45 = vadd.f32 %v1725_v44, %v1652_v41 }
 0xd14   :  { %v1735_v20 = vadd.f32 %v1731_v43, %v8987_v26 }
 0xd15   :  { %v1734_v47 = vadd.f32 %v1726_v45, %v8985_v25  ;;  %v191_v25 = vld [vmem:[%s10165_s3] sm:$0xff] }
 0xd16   :  { %v1739_v49 = vsel %vm213_vm3, %v1735_v20, 0.0  ;;  %v8534_v62 = vpack.c.bf16 %v192_v60, %v191_v25 }
 0xd17   :  { %1740 = vadd.xlane.f32.xlu1 %v1739_v49  ;;  %v1736_v50 = vsel %vm213_vm3, %v1734_v47, 0.0 }
 0xd18   :  { %1737 = vadd.xlane.f32.xlu0 %v1736_v50  ;;  %8535 = vmatprep.subr.bf16.mxu0 %v8534_v62 }
 0xd19   :  { %8537 = vmatpush3.bf16.msra.mxu0 %v8534_v62 }
 0xd1a   :  { %8539 = vmatprep.subr.bf16.mxu0 %v8538_v1 }
 0xd1d   :  { %8541 = vmatpush3.bf16.msra.mxu0 %v8538_v1 }
 0xd1e   :  { %8559 = vmatprep.subr.bf16.mxu0 %v8558_v2 }
 0xda4   :  { %v1741_v51 = vpop.xlane.xlu1 %1740 }
 0xda5   :  { %v1744_v52 = vmul.f32 0.03125, %v1741_v51  ;;  %v1738_v53 = vpop.xlane.xlu0 %1737 }
 0xda6   :  { %v1743_v54 = vmul.f32 0.03125, %v1738_v53 }
 0xda7   :  { %v1746_v55 = vsub.f32 %v1735_v20, %v1744_v52 }
 0xda8   :  { %v1745_v56 = vsub.f32 %v1734_v47, %v1743_v54  ;;  %v1865_v47 = vrot.slane %v9199_v18, %v8964_v10 }
 0xda9   :  { %v1748_v59 = vmul.f32 %v1746_v55, %v1746_v55 }
 0xdaa   :  { %v1747_v57 = vmul.f32 %v1745_v56, %v1745_v56 }
 0xdab   :  { %v1752_v26 = vsel %vm213_vm3, %v1748_v59, 0.0 }
 0xdac   :  { %v1749_v58 = vsel %vm213_vm3, %v1747_v57, 0.0 }
 0xdad   :  { %1750 = vadd.xlane.f32.xlu0 %v1749_v58 }
 0xdb1   :  { %1753 = vadd.xlane.f32.xlu0 %v1752_v26 }
 0xe3a   :  { %v1751_v31 = vpop.xlane.xlu0 %1750 }
 0xe3b   :  { %v1755_v13 = vmul.f32 0.03125, %v1751_v31 }
 0xe3d   :  { %v1757_v14 = vadd.f32 1e-05, %v1755_v13 }
 0xe3e   :  { %v1754_v15 = vpop.xlane.xlu0 %1753 }
 0xe3f   :  { %8735 = vrsqrt.f32 %v1757_v14  ;;  %v1756_v16 = vmul.f32 0.03125, %v1754_v15  ;;  %v9285_v15 = vsub.s32 4, %v8953_v5 }
 0xe41   :  { %v1758_v17 = vadd.f32 1e-05, %v1756_v16  ;;  %v9288_v16 = vsub.s32 5, %v8953_v5  ;;  %v7569_v5 = vld [vmem:[%s10164_s2 + $0x48] ss:$0 sm:$0xff] }
 0xe43   :  { %8737 = vrsqrt.f32 %v1758_v17  ;;  %v1979_v17 = vrot.slane %v9199_v18, %v9285_v15 }
 0xe49   :  { %v8736_v23 = vpop.eup %8735 }
 0xe4a   :  { %v1761_v24 = vmul.f32 %v8736_v23, %v1745_v56 }
 0xe4c   :  { %v1767_v27 = vmul.f32 %v1766_v22, %v1761_v24 }
 0xe4d   :  { %v8738_v28 = vpop.eup %8737 }
 0xe4e   :  { %v1762_v29 = vmul.f32 %v8738_v28, %v1746_v55  ;;  %v1773_v32 = vadd.f32 %v1772_v35, %v1767_v27  ;;  %v1985_v27 = vrot.slane %v9199_v18, %v9288_v16 }
 0xe50   :  { %v1768_v34 = vmul.f32 %v1766_v22, %v1762_v29  ;;  %8085 = vmatprep.mubr.msk.f32.mxu0 %vm213_vm3, %v1773_v32 }
 0xe52   :  { %v1774_v36 = vadd.f32 %v1772_v35, %v1768_v34 }
 0xe54   :  { %8086 = vmatmul.mubr.msk.f32.vlgmr.msra.gmra.mrb[20].mxu0 %vm213_vm3, %v1774_v36 }
 0xe55   :  { %8561 = vmatpush3.bf16.msra.mxu0 %v8558_v2 }
 0xe56   :  { %8563 = vmatprep.subr.bf16.mxu0 %v8562_v6 }
 0xe59   :  { %8565 = vmatpush3.bf16.msra.mxu0 %v8562_v6 }
 0xe5a   :  { %8118 = vmatprep.subr.mxu0 %v8887_v12 }
 0xf27   :  { %v8087_v41 = vpop.f32.mrb[20].mxu0 }
 0xf28   :  { %v1857_v42 = vadd.f32 %v8087_v41, %v7541_v33  ;;  %v1851_v43 = vpop.f32.mrb[21].mxu0 }
 0xf29   :  { %v1852_v44 = vadd.f32 %v7541_v33, %v1851_v43 }
 0xf2a   :  { %v1861_v20 = vmax.f32 %v1857_v42, 0.0 }
 0xf2b   :  { %v1860_v45 = vmax.f32 %v1852_v44, 0.0 }
 0xf2d   :  { %8104 = vmatprep.mubr.msk.f32.mxu1 %vm1866_vm8, %v1860_v45 }
 0xf2e   :  { %8105 = vmatmul.mubr.msk.f32.vlgmr.msra.gmra.mrb[18].mxu1 %vm1866_vm8, %v1861_v20 }
 0xf2f   :  { %8130 = vmatprep.mubr.msk.f32.mxu1 %vm8888_vm4, %v8887_v12 }
0x1001   :  { %v8106_v49 = vpop.f32.mrb[18].mxu1 }
0x1002   :  { %v1945_v50 = vadd.f32 %v8106_v49, %v1865_v47  ;;  %v1939_v51 = vpop.f32.mrb[19].mxu1 }
0x1003   :  { %v1940_v52 = vadd.f32 %v1939_v51, %v1865_v47 }
0x1004   :  { %v1949_v53 = vadd.f32 %v1945_v50, %v1774_v36 }
0x1005   :  { %v1948_v54 = vadd.f32 %v1940_v52, %v1773_v32 }
0x1006   :  { %v1953_v55 = vsel %vm213_vm3, %v1949_v53, 0.0 }
0x1007   :  { %1954 = vadd.xlane.f32.xlu0 %v1953_v55  ;;  %v1950_v56 = vsel %vm213_vm3, %v1948_v54, 0.0 }
0x1008   :  { %1951 = vadd.xlane.f32.xlu1 %v1950_v56 }
0x1094   :  { %v1955_v57 = vpop.xlane.xlu0 %1954 }
0x1095   :  { %v1957_v58 = vmul.f32 0.03125, %v1955_v57  ;;  %v1952_v59 = vpop.xlane.xlu1 %1951 }
0x1096   :  { %v1956_v26 = vmul.f32 0.03125, %v1952_v59 }
0x1097   :  { %v1959_v25 = vsub.f32 %v1949_v53, %v1957_v58 }
0x1098   :  { %v1958_v60 = vsub.f32 %v1948_v54, %v1956_v26 }
0x1099   :  { %v1961_v62 = vmul.f32 %v1959_v25, %v1959_v25 }
0x109a   :  { %v1960_v0 = vmul.f32 %v1958_v60, %v1958_v60 }
0x109b   :  { %v1965_v30 = vsel %vm213_vm3, %v1961_v62, 0.0 }
0x109c   :  { %1966 = vadd.xlane.f32.xlu0 %v1965_v30  ;;  %v1962_v1 = vsel %vm213_vm3, %v1960_v0, 0.0 }
0x109d   :  { %1963 = vadd.xlane.f32.xlu1 %v1962_v1 }
0x1129   :  { %v1967_v7 = vpop.xlane.xlu0 %1966 }
0x112a   :  { %v1969_v8 = vmul.f32 0.03125, %v1967_v7  ;;  %v1964_v11 = vpop.xlane.xlu1 %1963 }
0x112b   :  { %v1968_v31 = vmul.f32 0.03125, %v1964_v11 }
0x112c   :  { %v1971_v13 = vadd.f32 1e-05, %v1969_v8 }
0x112d   :  { %v1970_v14 = vadd.f32 1e-05, %v1968_v31 }
0x112e   :  { %8739 = vrsqrt.f32 %v1971_v13 }
0x112f   :  { %8741 = vrsqrt.f32 %v1970_v14 }
0x1138   :  { %v8740_v22 = vpop.eup %8739 }
0x1139   :  { %v8742_v23 = vpop.eup %8741  ;;  %v1975_v24 = vmul.f32 %v8740_v22, %v1959_v25 }
0x113a   :  { %v1974_v35 = vmul.f32 %v8742_v23, %v1958_v60 }
0x113b   :  { %v1981_v28 = vmul.f32 %v1979_v17, %v1975_v24 }
0x113c   :  { %v1980_v29 = vmul.f32 %v1979_v17, %v1974_v35 }
0x113d   :  { %v9296_v34 = vadd.f32 %v1985_v27, %v1981_v28 }
0x113e   :  { %v9294_v32 = vadd.f32 %v1985_v27, %v1980_v29 }
0x1140   :  { %8115 = vmatprep.mubr.msk.f32.mxu0 %vm213_vm3, %v9294_v32 }
0x1141   :  { %8116 = vmatmul.mubr.msk.f32.vlgmr.msra.gmra.mrb[22].mxu0 %vm213_vm3, %v9296_v34 }
0x1142   :  { %8120 = vmatprep.mubr.msk.f32.mxu0 %vm8888_vm4, %v8887_v12 }
0x1214   :  { %v8117_v18 = vpop.f32.mrb[22].mxu0 }
0x1215   :  { %v9307_v36 = vadd.f32 %v8117_v18, %v7569_v5  ;;  %v2090_v37 = vpop.f32.mrb[23].mxu0 }
0x1216   :  { %v9309_v38 = vadd.f32 %v7569_v5, %v2090_v37 }
0x1217   :  { %2180 = vrot.lane.b32.xlu0 %v9307_v36, %s8889_s13  ;;  %v9326_v42 = vmul.f32 0.35355338, %v9307_v36 }
0x1218   :  { %2102 = vrot.lane.b32.xlu1 %v9309_v38, %s8889_s13  ;;  %v9317_v33 = vmul.f32 0.35355338, %v9309_v38 }
0x1289   :  { %v2181_v41 = vpop.permute.xlu0 %2180 }
0x128a   :  { %v2103_v40 = vpop.permute.xlu1 %2102 }
0x128b   :  { %8119 = vmatpush3.xpose.msk.msra.mxu0 %vm300_vm5, %v2103_v40 }
0x128c   :  { %8123 = vmatprep.subr.mxu0 %v8887_v12 }
0x128e   :  { %8121 = vmatmul.mubr.msk.f32.vlgmr.msra.gmra.mrb[24].mxu0 %vm300_vm5, %v9317_v33 }
0x128f   :  { %8124 = vmatpush3.xpose.msk.msra.mxu0 %vm300_vm5, %v2181_v41  ;;  %8125 = vmatprep.mubr.msk.f32.mxu0 %vm8888_vm4, %v8887_v12 }
0x1290   :  { %8133 = vmatprep.subr.mxu0 %v8887_v12 }
0x1292   :  { %8126 = vmatmul.mubr.msk.f32.vlgmr.msra.gmra.mrb[26].mxu0 %vm300_vm5, %v9326_v42 }
0x1293   :  { %8135 = vmatprep.mubr.msk.f32.mxu0 %vm8888_vm4, %v8887_v12 }
0x1361   :  { %v2175_v43 = vpop.f32.mrb[24].mxu0 }
0x1362   :  { %v2176_v44 = vadd.f32 %v2175_v43, %v9033_v46  ;;  %v8122_v45 = vpop.f32.mrb[25].mxu0 }
0x1364   :  { %v2257_v20 = vsel %vm300_vm5, %v2176_v44, -inf }
0x1365   :  { %2258 = vmax.xlane.f32.xlu1 %v2257_v20  ;;  %v2253_v47 = vpop.f32.mrb[26].mxu0 }
0x1366   :  { %v2254_v49 = vadd.f32 %v2253_v47, %v9036_v48  ;;  %v8127_v50 = vpop.f32.mrb[27].mxu0 }
0x1368   :  { %v2260_v51 = vsel %vm300_vm5, %v2254_v49, -inf }
0x1369   :  { %2261 = vmax.xlane.f32.xlu0 %v2260_v51 }
0x1376   :  { %2279 = vrot.lane.b32.xlu1 %v9309_v38, %s8891_s14 }
0x137a   :  { %2433 = vrot.lane.b32.xlu1 %v9309_v38, %s8892_s15 }
0x137e   :  { %2511 = vrot.lane.b32.xlu1 %v9307_v36, %s8892_s15 }
0x137f   :  { %2355 = vrot.lane.b32.xlu0 %v9307_v36, %s8891_s14 }
0x13f2   :  { %v2259_v52 = vpop.xlane.xlu1 %2258 }
0x13f3   :  { %v2263_v53 = vsub.f32 %v2176_v44, %v2259_v52 }
0x13f5   :  { %v2265_v54 = vmul.f32 1.442695, %v2263_v53 }
0x13f6   :  { %v2280_v55 = vpop.permute.xlu1 %2279  ;;  %v2262_v56 = vpop.xlane.xlu0 %2261 }
0x13f7   :  { %8743 = vpow2.f32 %v2265_v54  ;;  %v2264_v57 = vsub.f32 %v2254_v49, %v2262_v56  ;;  %8129 = vmatpush3.msra.mxu1 %v2280_v55 }
0x13f8   :  { %8138 = vmatprep.subr.mxu1 %v8887_v12 }
0x13f9   :  { %v2267_v58 = vmul.f32 1.442695, %v2264_v57 }
0x13fa   :  { %v2356_v59 = vpop.permute.xlu0 %2355  ;;  %v2434_v0 = vpop.permute.xlu1 %2433 }
0x13fb   :  { %8745 = vpow2.f32 %v2267_v58  ;;  %8134 = vmatpush3.msra.mxu0 %v2356_v59 }
0x13fc   :  { %8143 = vmatprep.subr.mxu0 %v8887_v12 }
0x13fe   :  { %v2512_v30 = vpop.permute.xlu1 %2511 }
0x1401   :  { %v8744_v26 = vpop.eup %8743 }
0x1402   :  { %v2269_v25 = vsel %vm300_vm5, %v8744_v26, 0.0 }
0x1403   :  { %2270 = vadd.xlane.f32.xlu1 %v2269_v25 }
0x1405   :  { %v8746_v60 = vpop.eup %8745 }
0x1406   :  { %v2272_v62 = vsel %vm300_vm5, %v8746_v60, 0.0 }
0x1407   :  { %2273 = vadd.xlane.f32.xlu0 %v2272_v62 }
0x1414   :  { %2509 = vrot.lane.b32.xlu1 %v9326_v42, %s8893_s16 }
0x141d   :  { %2431 = vrot.lane.b32.xlu0 %v9317_v33, %s8893_s16 }
0x1490   :  { %v2271_v1 = vpop.xlane.xlu1 %2270 }
0x1491   :  { %8747 = vrcp.f32 %v2271_v1 }
0x1494   :  { %v2274_v61 = vpop.xlane.xlu0 %2273  ;;  %v2510_v7 = vpop.permute.xlu1 %2509 }
0x1495   :  { %8749 = vrcp.f32 %v2274_v61 }
0x1498   :  { %v2432_v6 = vpop.permute.xlu0 %2431 }
0x149b   :  { %v8748_v63 = vpop.eup %8747 }
0x149c   :  { %v2277_v2 = vmul.f32 %v8748_v63, %v8744_v26 }
0x149e   :  { %8131 = vmatmul.mubr.msk.f32.vlgmr.msra.gmra.mrb[20].mxu1 %vm300_vm5, %v2277_v2 }
0x149f   :  { %v8750_v3 = vpop.eup %8749  ;;  %8139 = vmatpush3.xpose.msk.msra.mxu1 %vm300_vm5, %v2434_v0  ;;  %8140 = vmatprep.mubr.msk.f32.mxu1 %vm8888_vm4, %v8887_v12 }
0x14a0   :  { %v2278_v4 = vmul.f32 %v8750_v3, %v8746_v60  ;;  %8148 = vmatprep.subr.mxu1 %v8887_v12 }
0x14a2   :  { %8136 = vmatmul.mubr.msk.f32.vlgmr.msra.gmra.mrb[28].mxu0 %vm300_vm5, %v2278_v4  ;;  %8141 = vmatmul.mubr.msk.f32.vlgmr.msra.gmra.mrb[22].mxu1 %vm300_vm5, %v2432_v6 }
0x14a3   :  { %8144 = vmatpush3.xpose.msk.msra.mxu0 %vm300_vm5, %v2512_v30  ;;  %8145 = vmatprep.mubr.msk.f32.mxu0 %vm8888_vm4, %v8887_v12 }
0x14a4   :  { %8153 = vmatprep.subr.mxu0 %v8887_v12  ;;  %8150 = vmatprep.mubr.msk.f32.mxu1 %vm8888_vm4, %v8887_v12 }
0x14a6   :  { %8146 = vmatmul.mubr.msk.f32.vlgmr.msra.gmra.mrb[30].mxu0 %vm300_vm5, %v2510_v7 }
0x14a7   :  { %8155 = vmatprep.mubr.msk.f32.mxu0 %vm8888_vm4, %v8887_v12 }
0x1571   :  { %v9369_v8 = vpop.f32.mrb[20].mxu1 }
0x1572   :  { %v8132_v11 = vpop.f32.mrb[21].mxu1 }
0x1575   :  { %v9371_v31 = vpop.f32.mrb[28].mxu0  ;;  %v2505_v13 = vpop.f32.mrb[22].mxu1 }
0x1576   :  { %v2506_v14 = vadd.f32 %v2505_v13, %v9033_v46  ;;  %v8137_v17 = vpop.f32.mrb[29].mxu0  ;;  %v8142_v22 = vpop.f32.mrb[23].mxu1 }
0x1578   :  { %v2587_v23 = vsel %vm300_vm5, %v2506_v14, -inf }
0x1579   :  { %2588 = vmax.xlane.f32.xlu0 %v2587_v23  ;;  %v2583_v24 = vpop.f32.mrb[30].mxu0 }
0x157a   :  { %v2584_v35 = vadd.f32 %v2583_v24, %v9036_v48  ;;  %v8147_v27 = vpop.f32.mrb[31].mxu0 }
0x157c   :  { %v2590_v28 = vsel %vm300_vm5, %v2584_v35, -inf }
0x157d   :  { %2591 = vmax.xlane.f32.xlu1 %v2590_v28 }
0x158e   :  { %2609 = vrot.lane.b32.xlu1 %v9309_v38, %s8894_s17 }
0x158f   :  { %2685 = vrot.lane.b32.xlu0 %v9307_v36, %s8894_s17 }
0x1592   :  { %2763 = vrot.lane.b32.xlu1 %v9309_v38, %s8895_s18 }
0x1596   :  { %2841 = vrot.lane.b32.xlu1 %v9307_v36, %s8895_s18 }
0x159a   :  { %2839 = vrot.lane.b32.xlu1 %v9326_v42, %s8896_s19 }
0x1606   :  { %v2589_v29 = vpop.xlane.xlu0 %2588 }
0x1607   :  { %v2593_v5 = vsub.f32 %v2506_v14, %v2589_v29 }
0x1609   :  { %v2595_v18 = vmul.f32 1.442695, %v2593_v5 }
0x160a   :  { %v2686_v37 = vpop.permute.xlu0 %2685  ;;  %v2592_v40 = vpop.xlane.xlu1 %2591 }
0x160b   :  { %8751 = vpow2.f32 %v2595_v18  ;;  %v2594_v41 = vsub.f32 %v2584_v35, %v2592_v40  ;;  %8154 = vmatpush3.msra.mxu0 %v2686_v37 }
0x160c   :  { %8163 = vmatprep.subr.mxu0 %v8887_v12 }
0x160d   :  { %v2597_v43 = vmul.f32 1.442695, %v2594_v41 }
0x160e   :  { %v2610_v44 = vpop.permute.xlu1 %2609 }
0x160f   :  { %8753 = vpow2.f32 %v2597_v43  ;;  %8149 = vmatpush3.msra.mxu1 %v2610_v44 }
0x1610   :  { %8158 = vmatprep.subr.mxu1 %v8887_v12 }
0x1612   :  { %v2764_v52 = vpop.permute.xlu1 %2763 }
0x1615   :  { %v8752_v45 = vpop.eup %8751 }
0x1616   :  { %v2599_v20 = vsel %vm300_vm5, %v8752_v45, 0.0  ;;  %v2842_v56 = vpop.permute.xlu1 %2841 }
0x1617   :  { %2600 = vadd.xlane.f32.xlu0 %v2599_v20 }
0x1619   :  { %v8754_v47 = vpop.eup %8753 }
0x161a   :  { %v2602_v49 = vsel %vm300_vm5, %v8754_v47, 0.0  ;;  %v2840_v59 = vpop.permute.xlu1 %2839 }
0x161b   :  { %2603 = vadd.xlane.f32.xlu0 %v2602_v49 }
0x1631   :  { %2761 = vrot.lane.b32.xlu0 %v9317_v33, %s8896_s19 }
0x16a4   :  { %v2601_v50 = vpop.xlane.xlu0 %2600 }
0x16a5   :  { %8755 = vrcp.f32 %v2601_v50 }
0x16a8   :  { %v2604_v51 = vpop.xlane.xlu0 %2603 }
0x16a9   :  { %8757 = vrcp.f32 %v2604_v51 }
0x16ac   :  { %v2762_v58 = vpop.permute.xlu0 %2761 }
0x16af   :  { %v8756_v53 = vpop.eup %8755 }
0x16b0   :  { %v2607_v54 = vmul.f32 %v8756_v53, %v8752_v45 }
0x16b2   :  { %8151 = vmatmul.mubr.msk.f32.vlgmr.msra.gmra.mrb[24].mxu1 %vm300_vm5, %v2607_v54 }
0x16b3   :  { %v8758_v55 = vpop.eup %8757  ;;  %8159 = vmatpush3.xpose.msk.msra.mxu1 %vm300_vm5, %v2764_v52  ;;  %8160 = vmatprep.mubr.msk.f32.mxu1 %vm8888_vm4, %v8887_v12 }
0x16b4   :  { %v2608_v57 = vmul.f32 %v8758_v55, %v8754_v47  ;;  %8168 = vmatprep.subr.mxu1 %v8887_v12 }
0x16b6   :  { %8156 = vmatmul.mubr.msk.f32.vlgmr.msra.gmra.mrb[32].mxu0 %vm300_vm5, %v2608_v57  ;;  %8161 = vmatmul.mubr.msk.f32.vlgmr.msra.gmra.mrb[26].mxu1 %vm300_vm5, %v2762_v58 }
0x16b7   :  { %8164 = vmatpush3.xpose.msk.msra.mxu0 %vm300_vm5, %v2842_v56  ;;  %8165 = vmatprep.mubr.msk.f32.mxu0 %vm8888_vm4, %v8887_v12 }
0x16b8   :  { %8173 = vmatprep.subr.mxu0 %v8887_v12  ;;  %8170 = vmatprep.mubr.msk.f32.mxu1 %vm8888_vm4, %v8887_v12 }
0x16ba   :  { %8166 = vmatmul.mubr.msk.f32.vlgmr.msra.gmra.mrb[34].mxu0 %vm300_vm5, %v2840_v59 }
0x16bb   :  { %8175 = vmatprep.mubr.msk.f32.mxu0 %vm8888_vm4, %v8887_v12 }
0x1785   :  { %v9409_v26 = vpop.f32.mrb[24].mxu1 }
0x1786   :  { %v8152_v25 = vpop.f32.mrb[25].mxu1 }
0x1789   :  { %v9411_v60 = vpop.f32.mrb[32].mxu0  ;;  %v2835_v62 = vpop.f32.mrb[26].mxu1 }
0x178a   :  { %v2836_v0 = vadd.f32 %v2835_v62, %v9033_v46  ;;  %v8157_v30 = vpop.f32.mrb[33].mxu0  ;;  %v8162_v1 = vpop.f32.mrb[27].mxu1 }
0x178c   :  { %v2917_v61 = vsel %vm300_vm5, %v2836_v0, -inf }
0x178d   :  { %2918 = vmax.xlane.f32.xlu0 %v2917_v61  ;;  %v2913_v63 = vpop.f32.mrb[34].mxu0 }
0x178e   :  { %v2914_v2 = vadd.f32 %v2913_v63, %v9036_v48  ;;  %v8167_v3 = vpop.f32.mrb[35].mxu0 }
0x1790   :  { %v2920_v4 = vsel %vm300_vm5, %v2914_v2, -inf }
0x1791   :  { %2921 = vmax.xlane.f32.xlu1 %v2920_v4 }
0x17a2   :  { %2939 = vrot.lane.b32.xlu1 %v9309_v38, %s8897_s20 }
0x17a3   :  { %3015 = vrot.lane.b32.xlu0 %v9307_v36, %s8897_s20 }
0x17a6   :  { %3093 = vrot.lane.b32.xlu1 %v9309_v38, %s8898_s21 }
0x17aa   :  { %3171 = vrot.lane.b32.xlu1 %v9307_v36, %s8898_s21 }
0x17ae   :  { %3169 = vrot.lane.b32.xlu1 %v9326_v42, %s8899_s22 }
0x181a   :  { %v2919_v6 = vpop.xlane.xlu0 %2918 }
0x181b   :  { %v2923_v7 = vsub.f32 %v2836_v0, %v2919_v6 }
0x181d   :  { %v2925_v11 = vmul.f32 1.442695, %v2923_v7 }
0x181e   :  { %v3016_v13 = vpop.permute.xlu0 %3015  ;;  %v2922_v14 = vpop.xlane.xlu1 %2921 }
0x181f   :  { %8759 = vpow2.f32 %v2925_v11  ;;  %v2924_v17 = vsub.f32 %v2914_v2, %v2922_v14  ;;  %8174 = vmatpush3.msra.mxu0 %v3016_v13  ;;  %v7557_v13 = vld [vmem:[%s10166_s4 + $0x70] sm:$0xff] }
0x1820   :  { %8183 = vmatprep.subr.mxu0 %v8887_v12 }
0x1821   :  { %v2927_v22 = vmul.f32 1.442695, %v2924_v17  ;;  %v7558_v17 = vld [vmem:[%s10166_s4 + $0x78] sm:$0xff] }
0x1822   :  { %v2940_v23 = vpop.permute.xlu1 %2939 }
0x1823   :  { %8761 = vpow2.f32 %v2927_v22  ;;  %8169 = vmatpush3.msra.mxu1 %v2940_v23  ;;  %v7559_v22 = vld [vmem:[%s10166_s4 + $0x80] sm:$0xff] }
0x1824   :  { %8178 = vmatprep.subr.mxu1 %v8887_v12  ;;  %v8570_v23 = vpack.c.bf16 %v7559_v22, %v7558_v17 }
0x1826   :  { %v3094_v5 = vpop.permute.xlu1 %3093 }
0x1829   :  { %v8760_v24 = vpop.eup %8759 }
0x182a   :  { %v2929_v35 = vsel %vm300_vm5, %v8760_v24, 0.0  ;;  %v3172_v41 = vpop.permute.xlu1 %3171 }
0x182b   :  { %2930 = vadd.xlane.f32.xlu0 %v2929_v35 }
0x182d   :  { %v8762_v42 = vpop.eup %8761 }
0x182e   :  { %v2932_v27 = vsel %vm300_vm5, %v8762_v42, 0.0  ;;  %v3170_v44 = vpop.permute.xlu1 %3169 }
0x182f   :  { %2933 = vadd.xlane.f32.xlu0 %v2932_v27 }
0x1845   :  { %3091 = vrot.lane.b32.xlu0 %v9317_v33, %s8899_s22 }
0x18b8   :  { %v2931_v28 = vpop.xlane.xlu0 %2930 }
0x18b9   :  { %8763 = vrcp.f32 %v2931_v28 }
0x18bc   :  { %v2934_v29 = vpop.xlane.xlu0 %2933 }
0x18bd   :  { %8765 = vrcp.f32 %v2934_v29 }
0x18c0   :  { %v3092_v33 = vpop.permute.xlu0 %3091 }
0x18c3   :  { %v8764_v18 = vpop.eup %8763 }
0x18c4   :  { %v2937_v37 = vmul.f32 %v8764_v18, %v8760_v24 }
0x18c6   :  { %8171 = vmatmul.mubr.msk.f32.vlgmr.msra.gmra.mrb[28].mxu1 %vm300_vm5, %v2937_v37 }
0x18c7   :  { %v8766_v40 = vpop.eup %8765  ;;  %8179 = vmatpush3.xpose.msk.msra.mxu1 %vm300_vm5, %v3094_v5  ;;  %8180 = vmatprep.mubr.msk.f32.mxu1 %vm8888_vm4, %v8887_v12 }
0x18c8   :  { %v2938_v43 = vmul.f32 %v8766_v40, %v8762_v42  ;;  %8188 = vmatprep.subr.mxu1 %v8887_v12 }
0x18ca   :  { %8176 = vmatmul.mubr.msk.f32.vlgmr.msra.gmra.mrb[36].mxu0 %vm300_vm5, %v2938_v43  ;;  %8181 = vmatmul.mubr.msk.f32.vlgmr.msra.gmra.mrb[30].mxu1 %vm300_vm5, %v3092_v33 }
0x18cb   :  { %8184 = vmatpush3.xpose.msk.msra.mxu0 %vm300_vm5, %v3172_v41  ;;  %8185 = vmatprep.mubr.msk.f32.mxu0 %vm8888_vm4, %v8887_v12 }
0x18cc   :  { %8193 = vmatprep.subr.mxu0 %v8887_v12  ;;  %8190 = vmatprep.mubr.msk.f32.mxu1 %vm8888_vm4, %v8887_v12 }
0x18ce   :  { %8186 = vmatmul.mubr.msk.f32.vlgmr.msra.gmra.mrb[38].mxu0 %vm300_vm5, %v3170_v44 }
0x18cf   :  { %8195 = vmatprep.mubr.msk.f32.mxu0 %vm8888_vm4, %v8887_v12 }
0x1999   :  { %v3011_v45 = vpop.f32.mrb[28].mxu1 }
0x199a   :  { %v8172_v20 = vpop.f32.mrb[29].mxu1 }
0x199d   :  { %v3087_v47 = vpop.f32.mrb[36].mxu0  ;;  %v3165_v49 = vpop.f32.mrb[30].mxu1 }
0x199e   :  { %v3166_v50 = vadd.f32 %v3165_v49, %v9033_v46  ;;  %v8177_v51 = vpop.f32.mrb[37].mxu0  ;;  %v8182_v52 = vpop.f32.mrb[31].mxu1 }
0x19a0   :  { %v3247_v53 = vsel %vm300_vm5, %v3166_v50, -inf }
0x19a1   :  { %3248 = vmax.xlane.f32.xlu0 %v3247_v53  ;;  %v3243_v54 = vpop.f32.mrb[38].mxu0 }
0x19a2   :  { %v3244_v55 = vadd.f32 %v3243_v54, %v9036_v48  ;;  %v8187_v56 = vpop.f32.mrb[39].mxu0 }
0x19a4   :  { %v3250_v57 = vsel %vm300_vm5, %v3244_v55, -inf }
0x19a5   :  { %3251 = vmax.xlane.f32.xlu1 %v3250_v57 }
0x19b6   :  { %3269 = vrot.lane.b32.xlu1 %v9309_v38, %s8900_s23 }
0x19ba   :  { %3423 = vrot.lane.b32.xlu1 %v9409_v26, %s8901_s24 }
0x19be   :  { %3425 = vrot.lane.b32.xlu1 %v9411_v60, %s8901_s24 }
0x19c2   :  { %3433 = vrot.lane.b32.xlu1 %v3087_v47, %s8902_s25 }
0x1a2e   :  { %v3249_v58 = vpop.xlane.xlu0 %3248 }
0x1a2f   :  { %v3253_v59 = vsub.f32 %v3166_v50, %v3249_v58 }
0x1a31   :  { %v3255_v25 = vmul.f32 1.442695, %v3253_v59 }
0x1a32   :  { %v3252_v62 = vpop.xlane.xlu1 %3251 }
0x1a33   :  { %8767 = vpow2.f32 %v3255_v25  ;;  %v3254_v0 = vsub.f32 %v3244_v55, %v3252_v62 }
0x1a35   :  { %v3257_v30 = vmul.f32 1.442695, %v3254_v0 }
0x1a36   :  { %v3270_v1 = vpop.permute.xlu1 %3269 }
0x1a37   :  { %8769 = vpow2.f32 %v3257_v30  ;;  %8189 = vmatpush3.msra.mxu1 %v3270_v1 }
0x1a3a   :  { %v3424_v28 = vpop.permute.xlu1 %3423 }
0x1a3b   :  { %v3445_v18 = vsel %vm300_vm5, %v9369_v8, %v3424_v28  ;;  %v9494_v8 = vld [vmem:[%s10166_s4 + $0xc8] sm:$0x3f] }
0x1a3c   :  { %v3454_v47 = vrot.slane %v9494_v8, %v8961_v9 }
0x1a3d   :  { %v8768_v61 = vpop.eup %8767 }
0x1a3e   :  { %v3259_v38 = vsel %vm300_vm5, %v8768_v61, 0.0  ;;  %v3426_v29 = vpop.permute.xlu1 %3425 }
0x1a3f   :  { %3260 = vadd.xlane.f32.xlu0 %v3259_v38  ;;  %v3446_v33 = vsel %vm300_vm5, %v9371_v31, %v3426_v29 }
0x1a41   :  { %v8770_v26 = vpop.eup %8769 }
0x1a42   :  { %v3262_v63 = vsel %vm300_vm5, %v8770_v26, 0.0  ;;  %v3434_v37 = vpop.permute.xlu1 %3433 }
0x1a43   :  { %3263 = vadd.xlane.f32.xlu0 %v3262_v63  ;;  %v3448_v44 = vsel %vm49_vm0, %v3446_v33, %v3434_v37  ;;  %v7554_v63 = vld [vmem:[%s10165_s3 + $0x40] sm:$0xff] }
0x1a59   :  { %3345 = vrot.lane.b32.xlu0 %v9307_v36, %s8900_s23  ;;  %v7556_v36 = vld [vmem:[%s10166_s4 + $0x68] sm:$0xff] }
0x1a5a   :  { %v8566_v14 = vpack.c.bf16 %v7557_v13, %v7556_v36  ;;  %v7564_v36 = vld [vmem:[%s10166_s4 + $0xa8] sm:$0xff]  ;;  %v7565_v13 = vld [vmem:[%s10166_s4 + $0xb0] sm:$0xff] }
0x1a5c   :  { %8567 = vmatprep.subr.bf16.mxu1 %v8566_v14 }
0x1a5d   :  { %3431 = vrot.lane.b32.xlu0 %v3011_v45, %s8902_s25 }
0x1acc   :  { %v3261_v60 = vpop.xlane.xlu0 %3260 }
0x1acd   :  { %8771 = vrcp.f32 %v3261_v60 }
0x1ad0   :  { %v3264_v2 = vpop.xlane.xlu0 %3263 }
0x1ad1   :  { %8773 = vrcp.f32 %v3264_v2  ;;  %v7560_v2 = vld [vmem:[%s10166_s4 + $0x88] sm:$0xff] }
0x1ad4   :  { %v3346_v3 = vpop.permute.xlu0 %3345 }
0x1ad5   :  { %8194 = vmatpush3.msra.mxu0 %v3346_v3  ;;  %v7561_v3 = vld [vmem:[%s10166_s4 + $0x90] sm:$0xff] }
0x1ad7   :  { %v8772_v4 = vpop.eup %8771 }
0x1ad8   :  { %v3267_v6 = vmul.f32 %v8772_v4, %v8768_v61  ;;  %v3432_v5 = vpop.permute.xlu0 %3431  ;;  %v7552_v61 = vld [vmem:[%s10165_s3 + $0x30] sm:$0xff]  ;;  %v7562_v4 = vld [vmem:[%s10166_s4 + $0x98] sm:$0xff] }
0x1ad9   :  { %v3447_v40 = vsel %vm49_vm0, %v3445_v18, %v3432_v5  ;;  %v3573_v5 = vrot.slane %v9494_v8, %v9243_v21 }
0x1ada   :  { %8191 = vmatmul.mubr.msk.f32.vlgmr.msra.gmra.mrb[32].mxu1 %vm300_vm5, %v3267_v6  ;;  %v8582_v6 = vpack.c.bf16 %v7561_v3, %v7560_v2  ;;  %v7603_v3 = vld [vmem:[%s10164_s2 + $0x50] sm:$0xff] }
0x1adb   :  { %v8774_v7 = vpop.eup %8773  ;;  %8569 = vmatpush3.bf16.msra.mxu1 %v8566_v14  ;;  %v8590_v14 = vpack.c.bf16 %v7565_v13, %v7564_v36 }
0x1adc   :  { %v3268_v11 = vmul.f32 %v8774_v7, %v8770_v26  ;;  %8571 = vmatprep.subr.bf16.mxu1 %v8570_v23  ;;  %v7553_v26 = vld [vmem:[%s10165_s3 + $0x38] sm:$0xff]  ;;  %v7563_v7 = vld [vmem:[%s10166_s4 + $0xa0] sm:$0xff] }
0x1add   :  { %v8578_v60 = vpack.c.bf16 %v7554_v63, %v7553_v26 }
0x1ade   :  { %8196 = vmatmul.mubr.msk.f32.vlgmr.msra.gmra.mrb[40].mxu0 %vm300_vm5, %v3268_v11  ;;  %v8586_v11 = vpack.c.bf16 %v7563_v7, %v7562_v4  ;;  %v7604_v4 = vld [vmem:[%s10164_s2 + $0x58] sm:$0xff]  ;;  %v7605_v7 = vld [vmem:[%s10164_s2 + $0x60] sm:$0xff] }
0x1adf   :  { %8573 = vmatpush3.bf16.msra.mxu1 %v8570_v23 }
0x1ae0   :  { %8583 = vmatprep.subr.bf16.mxu1 %v8582_v6 }
0x1bad   :  { %v3341_v24 = vpop.f32.mrb[32].mxu1 }
0x1bae   :  { %3439 = vrot.lane.b32.xlu0 %v3341_v24, %s8903_s9  ;;  %v8192_v35 = vpop.f32.mrb[33].mxu1 }
0x1bb1   :  { %v3417_v42 = vpop.f32.mrb[40].mxu0 }
0x1bb2   :  { %3441 = vrot.lane.b32.xlu1 %v3417_v42, %s8903_s9  ;;  %v8197_v27 = vpop.f32.mrb[41].mxu0 }
0x1bb3   :  { %v3567_v27 = vrot.slane %v9494_v8, %v9240_v19 }
0x1c20   :  { %v3440_v41 = vpop.permute.xlu0 %3439 }
0x1c21   :  { %v3449_v43 = vsel %vm1646_vm7, %v3447_v40, %v3440_v41 }
0x1c22   :  { %8206 = vmatprep.mubr.msk.f32.mxu1 %vm213_vm3, %v3449_v43 }
0x1c24   :  { %v3442_v45 = vpop.permute.xlu1 %3441 }
0x1c25   :  { %v3450_v20 = vsel %vm1646_vm7, %v3448_v44, %v3442_v45  ;;  %v7566_v44 = vld [vmem:[%s10166_s4 + $0xb8] sm:$0xff]  ;;  %v7567_v45 = vld [vmem:[%s10166_s4 + $0xc0] sm:$0xff] }
0x1c26   :  { %8207 = vmatmul.mubr.msk.f32.vlgmr.msra.gmra.mrb[34].mxu1 %vm213_vm3, %v3450_v20  ;;  %v8594_v20 = vpack.c.bf16 %v7567_v45, %v7566_v44 }
0x1c27   :  { %8585 = vmatpush3.bf16.msra.mxu1 %v8582_v6  ;;  %v8598_v6 = vpack.c.bf16 %v7604_v4, %v7603_v3 }
0x1c28   :  { %8587 = vmatprep.subr.bf16.mxu1 %v8586_v11 }
0x1c2b   :  { %8589 = vmatpush3.bf16.msra.mxu1 %v8586_v11  ;;  %v7606_v11 = vld [vmem:[%s10164_s2 + $0x68] sm:$0xff] }
0x1c2c   :  { %8591 = vmatprep.subr.bf16.mxu1 %v8590_v14  ;;  %v8602_v36 = vpack.c.bf16 %v7606_v11, %v7605_v7 }
0x1c2f   :  { %8593 = vmatpush3.bf16.msra.mxu1 %v8590_v14 }
0x1c30   :  { %8595 = vmatprep.subr.bf16.mxu1 %v8594_v20 }
0x1c33   :  { %8597 = vmatpush3.bf16.msra.mxu1 %v8594_v20 }
0x1c34   :  { %8260 = vmatprep.subr.mxu1 %v8887_v12 }
0x1cf9   :  { %v8208_v49 = vpop.f32.mrb[34].mxu1 }
0x1cfa   :  { %v3533_v50 = vadd.f32 %v8208_v49, %v3454_v47  ;;  %v3527_v51 = vpop.f32.mrb[35].mxu1 }
0x1cfb   :  { %v3528_v52 = vadd.f32 %v3527_v51, %v3454_v47  ;;  %v7598_v47 = vld [vmem:[%s10165_s3 + $0x48] ss:$0 sm:$0xff] }
0x1cfc   :  { %v3537_v31 = vadd.f32 %v3533_v50, %v9296_v34 }
0x1cfd   :  { %v3536_v53 = vadd.f32 %v3528_v52, %v9294_v32  ;;  %v7551_v32 = vld [vmem:[%s10165_s3 + $0x28] sm:$0xff] }
0x1cfe   :  { %v3541_v54 = vsel %vm213_vm3, %v3537_v31, 0.0  ;;  %v8574_v38 = vpack.c.bf16 %v7552_v61, %v7551_v32 }
0x1cff   :  { %3542 = vadd.xlane.f32.xlu1 %v3541_v54  ;;  %v3538_v55 = vsel %vm213_vm3, %v3536_v53, 0.0  ;;  %v3666_v54 = vrot.slane %v9494_v8, %v8964_v10 }
0x1d00   :  { %3539 = vadd.xlane.f32.xlu0 %v3538_v55  ;;  %8575 = vmatprep.subr.bf16.mxu0 %v8574_v38 }
0x1d01   :  { %8577 = vmatpush3.bf16.msra.mxu0 %v8574_v38 }
0x1d02   :  { %8579 = vmatprep.subr.bf16.mxu0 %v8578_v60 }
0x1d05   :  { %8581 = vmatpush3.bf16.msra.mxu0 %v8578_v60 }
0x1d06   :  { %8599 = vmatprep.subr.bf16.mxu0 %v8598_v6 }
0x1d8c   :  { %v3543_v56 = vpop.xlane.xlu1 %3542 }
0x1d8d   :  { %v3545_v57 = vmul.f32 0.03125, %v3543_v56  ;;  %v3540_v58 = vpop.xlane.xlu0 %3539 }
0x1d8e   :  { %v3544_v59 = vmul.f32 0.03125, %v3540_v58 }
0x1d8f   :  { %v3547_v25 = vsub.f32 %v3537_v31, %v3545_v57 }
0x1d90   :  { %v3546_v62 = vsub.f32 %v3536_v53, %v3544_v59 }
0x1d91   :  { %v3549_v1 = vmul.f32 %v3547_v25, %v3547_v25 }
0x1d92   :  { %v3548_v0 = vmul.f32 %v3546_v62, %v3546_v62 }
0x1d93   :  { %v3553_v34 = vsel %vm213_vm3, %v3549_v1, 0.0 }
0x1d94   :  { %v3550_v30 = vsel %vm213_vm3, %v3548_v0, 0.0 }
0x1d95   :  { %3551 = vadd.xlane.f32.xlu0 %v3550_v30 }
0x1d99   :  { %3554 = vadd.xlane.f32.xlu0 %v3553_v34 }
0x1e22   :  { %v3552_v17 = vpop.xlane.xlu0 %3551 }
0x1e23   :  { %v3556_v22 = vmul.f32 0.03125, %v3552_v17 }
0x1e25   :  { %v3558_v23 = vadd.f32 1e-05, %v3556_v22 }
0x1e26   :  { %v3555_v24 = vpop.xlane.xlu0 %3554 }
0x1e27   :  { %8775 = vrsqrt.f32 %v3558_v23  ;;  %v3557_v35 = vmul.f32 0.03125, %v3555_v24 }
0x1e29   :  { %v3559_v42 = vadd.f32 1e-05, %v3557_v35  ;;  %v3779_v35 = vrot.slane %v9494_v8, %v9285_v15 }
0x1e2b   :  { %8777 = vrsqrt.f32 %v3559_v42 }
0x1e31   :  { %v8776_v28 = vpop.eup %8775 }
0x1e32   :  { %v3562_v29 = vmul.f32 %v8776_v28, %v3546_v62 }
0x1e34   :  { %v3568_v18 = vmul.f32 %v3567_v27, %v3562_v29 }
0x1e35   :  { %v8778_v37 = vpop.eup %8777 }
0x1e36   :  { %v3563_v40 = vmul.f32 %v8778_v37, %v3547_v25  ;;  %v3574_v41 = vadd.f32 %v3573_v5, %v3568_v18 }
0x1e38   :  { %v3569_v43 = vmul.f32 %v3567_v27, %v3563_v40  ;;  %8217 = vmatprep.mubr.msk.f32.mxu0 %vm213_vm3, %v3574_v41 }
0x1e3a   :  { %v3575_v33 = vadd.f32 %v3573_v5, %v3569_v43  ;;  %v3785_v5 = vrot.slane %v9494_v8, %v9288_v16  ;;  %v7626_v43 = vld [vmem:[%s10164_s2 + $0x70] ss:$0 sm:$0xff] }
0x1e3c   :  { %8218 = vmatmul.mubr.msk.f32.vlgmr.msra.gmra.mrb[42].mxu0 %vm213_vm3, %v3575_v33 }
0x1e3d   :  { %8601 = vmatpush3.bf16.msra.mxu0 %v8598_v6 }
0x1e3e   :  { %8603 = vmatprep.subr.bf16.mxu0 %v8602_v36 }
0x1e41   :  { %8605 = vmatpush3.bf16.msra.mxu0 %v8602_v36 }
0x1e42   :  { %8250 = vmatprep.subr.mxu0 %v8887_v12 }
0x1f0f   :  { %v8219_v49 = vpop.f32.mrb[42].mxu0 }
0x1f10   :  { %v3658_v50 = vadd.f32 %v8219_v49, %v7598_v47  ;;  %v3652_v51 = vpop.f32.mrb[43].mxu0 }
0x1f11   :  { %v3653_v52 = vadd.f32 %v7598_v47, %v3652_v51 }
0x1f12   :  { %v3662_v53 = vmax.f32 %v3658_v50, 0.0 }
0x1f13   :  { %v3661_v31 = vmax.f32 %v3653_v52, 0.0 }
0x1f15   :  { %8236 = vmatprep.mubr.msk.f32.mxu1 %vm1866_vm8, %v3661_v31 }
0x1f16   :  { %8237 = vmatmul.mubr.msk.f32.vlgmr.msra.gmra.mrb[36].mxu1 %vm1866_vm8, %v3662_v53 }
0x1f17   :  { %8262 = vmatprep.mubr.msk.f32.mxu1 %vm8888_vm4, %v8887_v12 }
0x1fe9   :  { %v8238_v55 = vpop.f32.mrb[36].mxu1 }
0x1fea   :  { %v3745_v56 = vadd.f32 %v8238_v55, %v3666_v54  ;;  %v3739_v57 = vpop.f32.mrb[37].mxu1 }
0x1feb   :  { %v3740_v58 = vadd.f32 %v3739_v57, %v3666_v54 }
0x1fec   :  { %v3749_v59 = vadd.f32 %v3745_v56, %v3575_v33 }
0x1fed   :  { %v3748_v25 = vadd.f32 %v3740_v58, %v3574_v41 }
0x1fee   :  { %v3753_v62 = vsel %vm213_vm3, %v3749_v59, 0.0 }
0x1fef   :  { %3754 = vadd.xlane.f32.xlu0 %v3753_v62  ;;  %v3750_v0 = vsel %vm213_vm3, %v3748_v25, 0.0 }
0x1ff0   :  { %3751 = vadd.xlane.f32.xlu1 %v3750_v0 }
0x207c   :  { %v3755_v30 = vpop.xlane.xlu0 %3754 }
0x207d   :  { %v3757_v1 = vmul.f32 0.03125, %v3755_v30  ;;  %v3752_v34 = vpop.xlane.xlu1 %3751 }
0x207e   :  { %v3756_v32 = vmul.f32 0.03125, %v3752_v34 }
0x207f   :  { %v3759_v61 = vsub.f32 %v3749_v59, %v3757_v1 }
0x2080   :  { %v3758_v38 = vsub.f32 %v3748_v25, %v3756_v32 }
0x2081   :  { %v3761_v26 = vmul.f32 %v3759_v61, %v3759_v61 }
0x2082   :  { %v3760_v63 = vmul.f32 %v3758_v38, %v3758_v38 }
0x2083   :  { %v3765_v60 = vsel %vm213_vm3, %v3761_v26, 0.0 }
0x2084   :  { %3766 = vadd.xlane.f32.xlu0 %v3765_v60  ;;  %v3762_v2 = vsel %vm213_vm3, %v3760_v63, 0.0 }
0x2085   :  { %3763 = vadd.xlane.f32.xlu1 %v3762_v2 }
0x2111   :  { %v3767_v13 = vpop.xlane.xlu0 %3766 }
0x2112   :  { %v3769_v14 = vmul.f32 0.03125, %v3767_v13  ;;  %v3764_v17 = vpop.xlane.xlu1 %3763 }
0x2113   :  { %v3768_v22 = vmul.f32 0.03125, %v3764_v17 }
0x2114   :  { %v3771_v23 = vadd.f32 1e-05, %v3769_v14 }
0x2115   :  { %v3770_v24 = vadd.f32 1e-05, %v3768_v22 }
0x2116   :  { %8779 = vrsqrt.f32 %v3771_v23 }
0x2117   :  { %8781 = vrsqrt.f32 %v3770_v24 }
0x2120   :  { %v8780_v42 = vpop.eup %8779 }
0x2121   :  { %v8782_v27 = vpop.eup %8781  ;;  %v3775_v28 = vmul.f32 %v8780_v42, %v3759_v61 }
0x2122   :  { %v3774_v29 = vmul.f32 %v8782_v27, %v3758_v38 }
0x2123   :  { %v3781_v18 = vmul.f32 %v3779_v35, %v3775_v28 }
0x2124   :  { %v3780_v37 = vmul.f32 %v3779_v35, %v3774_v29 }
0x2125   :  { %v9579_v41 = vadd.f32 %v3785_v5, %v3781_v18 }
0x2126   :  { %v9577_v40 = vadd.f32 %v3785_v5, %v3780_v37 }
0x2128   :  { %8247 = vmatprep.mubr.msk.f32.mxu0 %vm213_vm3, %v9577_v40 }
0x2129   :  { %8248 = vmatmul.mubr.msk.f32.vlgmr.msra.gmra.mrb[44].mxu0 %vm213_vm3, %v9579_v41 }
0x212a   :  { %8252 = vmatprep.mubr.msk.f32.mxu0 %vm8888_vm4, %v8887_v12 }
0x21fc   :  { %v8249_v8 = vpop.f32.mrb[44].mxu0 }
0x21fd   :  { %v9590_v33 = vadd.f32 %v8249_v8, %v7626_v43  ;;  %v3890_v44 = vpop.f32.mrb[45].mxu0 }
0x21fe   :  { %v9592_v45 = vadd.f32 %v7626_v43, %v3890_v44 }
0x21ff   :  { %3980 = vrot.lane.b32.xlu0 %v9590_v33, %s8889_s13  ;;  %v9609_v50 = vmul.f32 0.35355338, %v9590_v33 }
0x2200   :  { %3902 = vrot.lane.b32.xlu1 %v9592_v45, %s8889_s13  ;;  %v9600_v47 = vmul.f32 0.35355338, %v9592_v45 }
0x2271   :  { %v3981_v49 = vpop.permute.xlu0 %3980 }
0x2272   :  { %v3903_v20 = vpop.permute.xlu1 %3902 }
0x2273   :  { %8251 = vmatpush3.xpose.msk.msra.mxu0 %vm300_vm5, %v3903_v20 }
0x2274   :  { %8255 = vmatprep.subr.mxu0 %v8887_v12 }
0x2276   :  { %8253 = vmatmul.mubr.msk.f32.vlgmr.msra.gmra.mrb[46].mxu0 %vm300_vm5, %v9600_v47 }
0x2277   :  { %8256 = vmatpush3.xpose.msk.msra.mxu0 %vm300_vm5, %v3981_v49  ;;  %8257 = vmatprep.mubr.msk.f32.mxu0 %vm8888_vm4, %v8887_v12 }
0x2278   :  { %8265 = vmatprep.subr.mxu0 %v8887_v12 }
0x227a   :  { %8258 = vmatmul.mubr.msk.f32.vlgmr.msra.gmra.mrb[48].mxu0 %vm300_vm5, %v9609_v50 }
0x227b   :  { %8267 = vmatprep.mubr.msk.f32.mxu0 %vm8888_vm4, %v8887_v12 }
0x2349   :  { %v3975_v51 = vpop.f32.mrb[46].mxu0 }
0x234a   :  { %v3976_v52 = vadd.f32 %v3975_v51, %v9033_v46  ;;  %v8254_v31 = vpop.f32.mrb[47].mxu0 }
0x234c   :  { %v4057_v53 = vsel %vm300_vm5, %v3976_v52, -inf }
0x234d   :  { %4058 = vmax.xlane.f32.xlu1 %v4057_v53  ;;  %v4053_v54 = vpop.f32.mrb[48].mxu0 }
0x234e   :  { %v4054_v55 = vadd.f32 %v4053_v54, %v9036_v48  ;;  %v8259_v56 = vpop.f32.mrb[49].mxu0 }
0x2350   :  { %v4060_v57 = vsel %vm300_vm5, %v4054_v55, -inf }
0x2351   :  { %4061 = vmax.xlane.f32.xlu0 %v4060_v57 }
0x235e   :  { %4079 = vrot.lane.b32.xlu1 %v9592_v45, %s8891_s14 }
0x2362   :  { %4233 = vrot.lane.b32.xlu1 %v9592_v45, %s8892_s15 }
0x2366   :  { %4311 = vrot.lane.b32.xlu1 %v9590_v33, %s8892_s15 }
0x2367   :  { %4155 = vrot.lane.b32.xlu0 %v9590_v33, %s8891_s14 }
0x23da   :  { %v4059_v58 = vpop.xlane.xlu1 %4058 }
0x23db   :  { %v4063_v59 = vsub.f32 %v3976_v52, %v4059_v58 }
0x23dd   :  { %v4065_v25 = vmul.f32 1.442695, %v4063_v59 }
0x23de   :  { %v4080_v62 = vpop.permute.xlu1 %4079  ;;  %v4062_v0 = vpop.xlane.xlu0 %4061 }
0x23df   :  { %8783 = vpow2.f32 %v4065_v25  ;;  %v4064_v30 = vsub.f32 %v4054_v55, %v4062_v0  ;;  %8261 = vmatpush3.msra.mxu1 %v4080_v62 }
0x23e0   :  { %8270 = vmatprep.subr.mxu1 %v8887_v12 }
0x23e1   :  { %v4067_v1 = vmul.f32 1.442695, %v4064_v30 }
0x23e2   :  { %v4156_v34 = vpop.permute.xlu0 %4155  ;;  %v4234_v63 = vpop.permute.xlu1 %4233 }
0x23e3   :  { %8785 = vpow2.f32 %v4067_v1  ;;  %8266 = vmatpush3.msra.mxu0 %v4156_v34 }
0x23e4   :  { %8275 = vmatprep.subr.mxu0 %v8887_v12 }
0x23e6   :  { %v4312_v60 = vpop.permute.xlu1 %4311 }
0x23e9   :  { %v8784_v32 = vpop.eup %8783 }
0x23ea   :  { %v4069_v61 = vsel %vm300_vm5, %v8784_v32, 0.0 }
0x23eb   :  { %4070 = vadd.xlane.f32.xlu1 %v4069_v61 }
0x23ed   :  { %v8786_v38 = vpop.eup %8785 }
0x23ee   :  { %v4072_v26 = vsel %vm300_vm5, %v8786_v38, 0.0 }
0x23ef   :  { %4073 = vadd.xlane.f32.xlu0 %v4072_v26 }
0x23fc   :  { %4309 = vrot.lane.b32.xlu1 %v9609_v50, %s8893_s16 }
0x2405   :  { %4231 = vrot.lane.b32.xlu0 %v9600_v47, %s8893_s16 }
0x2478   :  { %v4071_v2 = vpop.xlane.xlu1 %4070 }
0x2479   :  { %8787 = vrcp.f32 %v4071_v2 }
0x247c   :  { %v4074_v3 = vpop.xlane.xlu0 %4073  ;;  %v4310_v13 = vpop.permute.xlu1 %4309 }
0x247d   :  { %8789 = vrcp.f32 %v4074_v3 }
0x2480   :  { %v4232_v36 = vpop.permute.xlu0 %4231 }
0x2483   :  { %v8788_v4 = vpop.eup %8787 }
0x2484   :  { %v4077_v6 = vmul.f32 %v8788_v4, %v8784_v32 }
0x2486   :  { %8263 = vmatmul.mubr.msk.f32.vlgmr.msra.gmra.mrb[38].mxu1 %vm300_vm5, %v4077_v6 }
0x2487   :  { %v8790_v7 = vpop.eup %8789  ;;  %8271 = vmatpush3.xpose.msk.msra.mxu1 %vm300_vm5, %v4234_v63  ;;  %8272 = vmatprep.mubr.msk.f32.mxu1 %vm8888_vm4, %v8887_v12 }
0x2488   :  { %v4078_v11 = vmul.f32 %v8790_v7, %v8786_v38  ;;  %8280 = vmatprep.subr.mxu1 %v8887_v12 }
0x248a   :  { %8268 = vmatmul.mubr.msk.f32.vlgmr.msra.gmra.mrb[50].mxu0 %vm300_vm5, %v4078_v11  ;;  %8273 = vmatmul.mubr.msk.f32.vlgmr.msra.gmra.mrb[40].mxu1 %vm300_vm5, %v4232_v36 }
0x248b   :  { %8276 = vmatpush3.xpose.msk.msra.mxu0 %vm300_vm5, %v4312_v60  ;;  %8277 = vmatprep.mubr.msk.f32.mxu0 %vm8888_vm4, %v8887_v12 }
0x248c   :  { %8285 = vmatprep.subr.mxu0 %v8887_v12  ;;  %8282 = vmatprep.mubr.msk.f32.mxu1 %vm8888_vm4, %v8887_v12 }
0x248e   :  { %8278 = vmatmul.mubr.msk.f32.vlgmr.msra.gmra.mrb[52].mxu0 %vm300_vm5, %v4310_v13 }
0x248f   :  { %8287 = vmatprep.mubr.msk.f32.mxu0 %vm8888_vm4, %v8887_v12 }
0x2559   :  { %v9652_v14 = vpop.f32.mrb[38].mxu1 }
0x255a   :  { %v8264_v17 = vpop.f32.mrb[39].mxu1 }
0x255d   :  { %v9654_v22 = vpop.f32.mrb[50].mxu0  ;;  %v4305_v23 = vpop.f32.mrb[40].mxu1 }
0x255e   :  { %v4306_v24 = vadd.f32 %v4305_v23, %v9033_v46  ;;  %v8269_v35 = vpop.f32.mrb[51].mxu0  ;;  %v8274_v42 = vpop.f32.mrb[41].mxu1 }
0x2560   :  { %v4387_v27 = vsel %vm300_vm5, %v4306_v24, -inf }
0x2561   :  { %4388 = vmax.xlane.f32.xlu0 %v4387_v27  ;;  %v4383_v28 = vpop.f32.mrb[52].mxu0 }
0x2562   :  { %v4384_v29 = vadd.f32 %v4383_v28, %v9036_v48  ;;  %v8279_v5 = vpop.f32.mrb[53].mxu0 }
0x2564   :  { %v4390_v18 = vsel %vm300_vm5, %v4384_v29, -inf }
0x2565   :  { %4391 = vmax.xlane.f32.xlu1 %v4390_v18 }
0x2576   :  { %4409 = vrot.lane.b32.xlu1 %v9592_v45, %s8894_s17 }
0x2577   :  { %4485 = vrot.lane.b32.xlu0 %v9590_v33, %s8894_s17 }
0x257a   :  { %4563 = vrot.lane.b32.xlu1 %v9592_v45, %s8895_s18 }
0x257e   :  { %4641 = vrot.lane.b32.xlu1 %v9590_v33, %s8895_s18 }
0x2582   :  { %4639 = vrot.lane.b32.xlu1 %v9609_v50, %s8896_s19 }
0x25ee   :  { %v4389_v37 = vpop.xlane.xlu0 %4388 }
0x25ef   :  { %v4393_v43 = vsub.f32 %v4306_v24, %v4389_v37 }
0x25f1   :  { %v4395_v8 = vmul.f32 1.442695, %v4393_v43 }
0x25f2   :  { %v4486_v44 = vpop.permute.xlu0 %4485  ;;  %v4392_v20 = vpop.xlane.xlu1 %4391 }
0x25f3   :  { %8791 = vpow2.f32 %v4395_v8  ;;  %v4394_v49 = vsub.f32 %v4384_v29, %v4392_v20  ;;  %8286 = vmatpush3.msra.mxu0 %v4486_v44 }
0x25f4   :  { %8295 = vmatprep.subr.mxu0 %v8887_v12 }
0x25f5   :  { %v4397_v51 = vmul.f32 1.442695, %v4394_v49 }
0x25f6   :  { %v4410_v52 = vpop.permute.xlu1 %4409 }
0x25f7   :  { %8793 = vpow2.f32 %v4397_v51  ;;  %8281 = vmatpush3.msra.mxu1 %v4410_v52 }
0x25f8   :  { %8290 = vmatprep.subr.mxu1 %v8887_v12 }
0x25fa   :  { %v4564_v58 = vpop.permute.xlu1 %4563 }
0x25fd   :  { %v8792_v31 = vpop.eup %8791 }
0x25fe   :  { %v4399_v53 = vsel %vm300_vm5, %v8792_v31, 0.0  ;;  %v4642_v0 = vpop.permute.xlu1 %4641 }
0x25ff   :  { %4400 = vadd.xlane.f32.xlu0 %v4399_v53 }
0x2601   :  { %v8794_v54 = vpop.eup %8793 }
0x2602   :  { %v4402_v55 = vsel %vm300_vm5, %v8794_v54, 0.0  ;;  %v4640_v34 = vpop.permute.xlu1 %4639 }
0x2603   :  { %4403 = vadd.xlane.f32.xlu0 %v4402_v55 }
0x2619   :  { %4561 = vrot.lane.b32.xlu0 %v9600_v47, %s8896_s19 }
0x268c   :  { %v4401_v56 = vpop.xlane.xlu0 %4400 }
0x268d   :  { %8795 = vrcp.f32 %v4401_v56 }
0x2690   :  { %v4404_v57 = vpop.xlane.xlu0 %4403 }
0x2691   :  { %8797 = vrcp.f32 %v4404_v57 }
0x2694   :  { %v4562_v1 = vpop.permute.xlu0 %4561 }
0x2697   :  { %v8796_v59 = vpop.eup %8795 }
0x2698   :  { %v4407_v25 = vmul.f32 %v8796_v59, %v8792_v31 }
0x269a   :  { %8283 = vmatmul.mubr.msk.f32.vlgmr.msra.gmra.mrb[42].mxu1 %vm300_vm5, %v4407_v25 }
0x269b   :  { %v8798_v62 = vpop.eup %8797  ;;  %8291 = vmatpush3.xpose.msk.msra.mxu1 %vm300_vm5, %v4564_v58  ;;  %8292 = vmatprep.mubr.msk.f32.mxu1 %vm8888_vm4, %v8887_v12 }
0x269c   :  { %v4408_v30 = vmul.f32 %v8798_v62, %v8794_v54  ;;  %8300 = vmatprep.subr.mxu1 %v8887_v12 }
0x269e   :  { %8288 = vmatmul.mubr.msk.f32.vlgmr.msra.gmra.mrb[54].mxu0 %vm300_vm5, %v4408_v30  ;;  %8293 = vmatmul.mubr.msk.f32.vlgmr.msra.gmra.mrb[44].mxu1 %vm300_vm5, %v4562_v1 }
0x269f   :  { %8296 = vmatpush3.xpose.msk.msra.mxu0 %vm300_vm5, %v4642_v0  ;;  %8297 = vmatprep.mubr.msk.f32.mxu0 %vm8888_vm4, %v8887_v12 }
0x26a0   :  { %8305 = vmatprep.subr.mxu0 %v8887_v12  ;;  %8302 = vmatprep.mubr.msk.f32.mxu1 %vm8888_vm4, %v8887_v12 }
0x26a2   :  { %8298 = vmatmul.mubr.msk.f32.vlgmr.msra.gmra.mrb[56].mxu0 %vm300_vm5, %v4640_v34 }
0x26a3   :  { %8307 = vmatprep.mubr.msk.f32.mxu0 %vm8888_vm4, %v8887_v12 }
0x276d   :  { %v9692_v32 = vpop.f32.mrb[42].mxu1 }
0x276e   :  { %v8284_v61 = vpop.f32.mrb[43].mxu1 }
0x2771   :  { %v9694_v38 = vpop.f32.mrb[54].mxu0  ;;  %v4635_v26 = vpop.f32.mrb[44].mxu1 }
0x2772   :  { %v4636_v63 = vadd.f32 %v4635_v26, %v9033_v46  ;;  %v8289_v60 = vpop.f32.mrb[55].mxu0  ;;  %v8294_v2 = vpop.f32.mrb[45].mxu1 }
0x2774   :  { %v4717_v3 = vsel %vm300_vm5, %v4636_v63, -inf }
0x2775   :  { %4718 = vmax.xlane.f32.xlu0 %v4717_v3  ;;  %v4713_v4 = vpop.f32.mrb[56].mxu0 }
0x2776   :  { %v4714_v6 = vadd.f32 %v4713_v4, %v9036_v48  ;;  %v8299_v7 = vpop.f32.mrb[57].mxu0 }
0x2778   :  { %v4720_v11 = vsel %vm300_vm5, %v4714_v6, -inf }
0x2779   :  { %4721 = vmax.xlane.f32.xlu1 %v4720_v11 }
0x278a   :  { %4739 = vrot.lane.b32.xlu1 %v9592_v45, %s8897_s20 }
0x278b   :  { %4815 = vrot.lane.b32.xlu0 %v9590_v33, %s8897_s20 }
0x278e   :  { %4893 = vrot.lane.b32.xlu1 %v9592_v45, %s8898_s21 }
0x2792   :  { %4971 = vrot.lane.b32.xlu1 %v9590_v33, %s8898_s21 }
0x2796   :  { %4969 = vrot.lane.b32.xlu1 %v9609_v50, %s8899_s22 }
0x2802   :  { %v4719_v36 = vpop.xlane.xlu0 %4718 }
0x2803   :  { %v4723_v13 = vsub.f32 %v4636_v63, %v4719_v36 }
0x2805   :  { %v4725_v17 = vmul.f32 1.442695, %v4723_v13 }
0x2806   :  { %v4816_v23 = vpop.permute.xlu0 %4815  ;;  %v4722_v24 = vpop.xlane.xlu1 %4721 }
0x2807   :  { %8799 = vpow2.f32 %v4725_v17  ;;  %v4724_v35 = vsub.f32 %v4714_v6, %v4722_v24  ;;  %8306 = vmatpush3.msra.mxu0 %v4816_v23  ;;  %v7614_v23 = vld [vmem:[%s10166_s4 + $0xd8] sm:$0xff] }
0x2808   :  { %8315 = vmatprep.subr.mxu0 %v8887_v12 }
0x2809   :  { %v4727_v42 = vmul.f32 1.442695, %v4724_v35  ;;  %v7615_v35 = vld [vmem:[%s10166_s4 + $0xe0] sm:$0xff] }
0x280a   :  { %v4740_v27 = vpop.permute.xlu1 %4739 }
0x280b   :  { %8801 = vpow2.f32 %v4727_v42  ;;  %8301 = vmatpush3.msra.mxu1 %v4740_v27  ;;  %v7616_v42 = vld [vmem:[%s10166_s4 + $0xe8] sm:$0xff] }
0x280c   :  { %8310 = vmatprep.subr.mxu1 %v8887_v12  ;;  %v8610_v27 = vpack.c.bf16 %v7616_v42, %v7615_v35 }
0x280e   :  { %v4894_v43 = vpop.permute.xlu1 %4893 }
0x2811   :  { %v8800_v28 = vpop.eup %8799 }
0x2812   :  { %v4729_v29 = vsel %vm300_vm5, %v8800_v28, 0.0  ;;  %v4972_v49 = vpop.permute.xlu1 %4971 }
0x2813   :  { %4730 = vadd.xlane.f32.xlu0 %v4729_v29 }
0x2815   :  { %v8802_v50 = vpop.eup %8801 }
0x2816   :  { %v4732_v5 = vsel %vm300_vm5, %v8802_v50, 0.0  ;;  %v4970_v52 = vpop.permute.xlu1 %4969 }
0x2817   :  { %4733 = vadd.xlane.f32.xlu0 %v4732_v5 }
0x282d   :  { %4891 = vrot.lane.b32.xlu0 %v9600_v47, %s8899_s22 }
0x28a0   :  { %v4731_v18 = vpop.xlane.xlu0 %4730 }
0x28a1   :  { %8803 = vrcp.f32 %v4731_v18 }
0x28a4   :  { %v4734_v37 = vpop.xlane.xlu0 %4733 }
0x28a5   :  { %8805 = vrcp.f32 %v4734_v37 }
0x28a8   :  { %v4892_v47 = vpop.permute.xlu0 %4891 }
0x28ab   :  { %v8804_v8 = vpop.eup %8803 }
0x28ac   :  { %v4737_v44 = vmul.f32 %v8804_v8, %v8800_v28 }
0x28ae   :  { %8303 = vmatmul.mubr.msk.f32.vlgmr.msra.gmra.mrb[46].mxu1 %vm300_vm5, %v4737_v44 }
0x28af   :  { %v8806_v20 = vpop.eup %8805  ;;  %8311 = vmatpush3.xpose.msk.msra.mxu1 %vm300_vm5, %v4894_v43  ;;  %8312 = vmatprep.mubr.msk.f32.mxu1 %vm8888_vm4, %v8887_v12 }
0x28b0   :  { %v4738_v51 = vmul.f32 %v8806_v20, %v8802_v50  ;;  %8320 = vmatprep.subr.mxu1 %v8887_v12 }
0x28b2   :  { %8308 = vmatmul.mubr.msk.f32.vlgmr.msra.gmra.mrb[58].mxu0 %vm300_vm5, %v4738_v51  ;;  %8313 = vmatmul.mubr.msk.f32.vlgmr.msra.gmra.mrb[48].mxu1 %vm300_vm5, %v4892_v47 }
0x28b3   :  { %8316 = vmatpush3.xpose.msk.msra.mxu0 %vm300_vm5, %v4972_v49  ;;  %8317 = vmatprep.mubr.msk.f32.mxu0 %vm8888_vm4, %v8887_v12 }
0x28b4   :  { %8325 = vmatprep.subr.mxu0 %v8887_v12  ;;  %8322 = vmatprep.mubr.msk.f32.mxu1 %vm8888_vm4, %v8887_v12 }
0x28b6   :  { %8318 = vmatmul.mubr.msk.f32.vlgmr.msra.gmra.mrb[60].mxu0 %vm300_vm5, %v4970_v52 }
0x28b7   :  { %8327 = vmatprep.mubr.msk.f32.mxu0 %vm8888_vm4, %v8887_v12 }
0x2981   :  { %v4811_v31 = vpop.f32.mrb[46].mxu1 }
0x2982   :  { %v8304_v53 = vpop.f32.mrb[47].mxu1 }
0x2985   :  { %v4887_v54 = vpop.f32.mrb[58].mxu0  ;;  %v4965_v55 = vpop.f32.mrb[48].mxu1 }
0x2986   :  { %v4966_v56 = vadd.f32 %v4965_v55, %v9033_v46  ;;  %v8309_v57 = vpop.f32.mrb[59].mxu0  ;;  %v8314_v58 = vpop.f32.mrb[49].mxu1 }
0x2988   :  { %v5047_v59 = vsel %vm300_vm5, %v4966_v56, -inf }
0x2989   :  { %5048 = vmax.xlane.f32.xlu0 %v5047_v59  ;;  %v5043_v25 = vpop.f32.mrb[60].mxu0 }
0x298a   :  { %v5044_v62 = vadd.f32 %v5043_v25, %v9036_v48  ;;  %v8319_v0 = vpop.f32.mrb[61].mxu0 }
0x298c   :  { %v5050_v30 = vsel %vm300_vm5, %v5044_v62, -inf }
0x298d   :  { %5051 = vmax.xlane.f32.xlu1 %v5050_v30 }
0x299e   :  { %5069 = vrot.lane.b32.xlu1 %v9592_v45, %s8900_s23 }
0x29a2   :  { %5223 = vrot.lane.b32.xlu1 %v9692_v32, %s8901_s24 }
0x29a6   :  { %5225 = vrot.lane.b32.xlu1 %v9694_v38, %s8901_s24 }
0x29aa   :  { %5233 = vrot.lane.b32.xlu1 %v4887_v54, %s8902_s25 }
0x2a16   :  { %v5049_v1 = vpop.xlane.xlu0 %5048 }
0x2a17   :  { %v5053_v34 = vsub.f32 %v4966_v56, %v5049_v1 }
0x2a19   :  { %v5055_v61 = vmul.f32 1.442695, %v5053_v34 }
0x2a1a   :  { %v5052_v26 = vpop.xlane.xlu1 %5051 }
0x2a1b   :  { %8807 = vpow2.f32 %v5055_v61  ;;  %v5054_v63 = vsub.f32 %v5044_v62, %v5052_v26 }
0x2a1d   :  { %v5057_v60 = vmul.f32 1.442695, %v5054_v63 }
0x2a1e   :  { %v5070_v2 = vpop.permute.xlu1 %5069 }
0x2a1f   :  { %8809 = vpow2.f32 %v5057_v60  ;;  %8321 = vmatpush3.msra.mxu1 %v5070_v2 }
0x2a22   :  { %v5224_v18 = vpop.permute.xlu1 %5223 }
0x2a23   :  { %v5245_v8 = vsel %vm300_vm5, %v9652_v14, %v5224_v18  ;;  %v9777_v14 = vld [vmem:[%s10166_s4 + $0x130] sm:$0x3f] }
0x2a24   :  { %v5254_v54 = vrot.slane %v9777_v14, %v8961_v9 }
0x2a25   :  { %v8808_v3 = vpop.eup %8807 }
0x2a26   :  { %v5059_v45 = vsel %vm300_vm5, %v8808_v3, 0.0  ;;  %v5226_v37 = vpop.permute.xlu1 %5225 }
0x2a27   :  { %5060 = vadd.xlane.f32.xlu0 %v5059_v45  ;;  %v5246_v47 = vsel %vm300_vm5, %v9654_v22, %v5226_v37 }
0x2a29   :  { %v8810_v32 = vpop.eup %8809 }
0x2a2a   :  { %v5062_v4 = vsel %vm300_vm5, %v8810_v32, 0.0  ;;  %v5234_v44 = vpop.permute.xlu1 %5233 }
0x2a2b   :  { %5063 = vadd.xlane.f32.xlu0 %v5062_v4  ;;  %v5248_v52 = vsel %vm49_vm0, %v5246_v47, %v5234_v44  ;;  %v7611_v4 = vld [vmem:[%s10165_s3 + $0x68] sm:$0xff] }
0x2a41   :  { %5145 = vrot.lane.b32.xlu0 %v9590_v33, %s8900_s23  ;;  %v7613_v33 = vld [vmem:[%s10166_s4 + $0xd0] sm:$0xff] }
0x2a42   :  { %v8606_v24 = vpack.c.bf16 %v7614_v23, %v7613_v33  ;;  %v7621_v33 = vld [vmem:[%s10166_s4 + $0x110] sm:$0xff]  ;;  %v7622_v23 = vld [vmem:[%s10166_s4 + $0x118] sm:$0xff] }
0x2a44   :  { %8607 = vmatprep.subr.bf16.mxu1 %v8606_v24 }
0x2a45   :  { %5231 = vrot.lane.b32.xlu0 %v4811_v31, %s8902_s25 }
0x2ab4   :  { %v5061_v38 = vpop.xlane.xlu0 %5060 }
0x2ab5   :  { %8811 = vrcp.f32 %v5061_v38 }
0x2ab8   :  { %v5064_v6 = vpop.xlane.xlu0 %5063 }
0x2ab9   :  { %8813 = vrcp.f32 %v5064_v6  ;;  %v7617_v6 = vld [vmem:[%s10166_s4 + $0xf0] sm:$0xff] }
0x2abc   :  { %v5146_v7 = vpop.permute.xlu0 %5145 }
0x2abd   :  { %8326 = vmatpush3.msra.mxu0 %v5146_v7  ;;  %v7618_v7 = vld [vmem:[%s10166_s4 + $0xf8] sm:$0xff] }
0x2abf   :  { %v8812_v11 = vpop.eup %8811 }
0x2ac0   :  { %v5067_v36 = vmul.f32 %v8812_v11, %v8808_v3  ;;  %v5232_v43 = vpop.permute.xlu0 %5231  ;;  %v7609_v3 = vld [vmem:[%s10165_s3 + $0x58] sm:$0xff]  ;;  %v7619_v11 = vld [vmem:[%s10166_s4 + $0x100] sm:$0xff] }
0x2ac1   :  { %v5247_v20 = vsel %vm49_vm0, %v5245_v8, %v5232_v43  ;;  %v5373_v43 = vrot.slane %v9777_v14, %v9243_v21 }
0x2ac2   :  { %8323 = vmatmul.mubr.msk.f32.vlgmr.msra.gmra.mrb[50].mxu1 %vm300_vm5, %v5067_v36  ;;  %v8622_v36 = vpack.c.bf16 %v7618_v7, %v7617_v6  ;;  %v7660_v7 = vld [vmem:[%s10164_s2 + $0x78] sm:$0xff] }
0x2ac3   :  { %v8814_v13 = vpop.eup %8813  ;;  %8609 = vmatpush3.bf16.msra.mxu1 %v8606_v24  ;;  %v8630_v24 = vpack.c.bf16 %v7622_v23, %v7621_v33 }
0x2ac4   :  { %v5068_v17 = vmul.f32 %v8814_v13, %v8810_v32  ;;  %8611 = vmatprep.subr.bf16.mxu1 %v8610_v27  ;;  %v7610_v32 = vld [vmem:[%s10165_s3 + $0x60] sm:$0xff]  ;;  %v7620_v13 = vld [vmem:[%s10166_s4 + $0x108] sm:$0xff] }
0x2ac5   :  { %v8618_v38 = vpack.c.bf16 %v7611_v4, %v7610_v32 }
0x2ac6   :  { %8328 = vmatmul.mubr.msk.f32.vlgmr.msra.gmra.mrb[62].mxu0 %vm300_vm5, %v5068_v17  ;;  %v8626_v17 = vpack.c.bf16 %v7620_v13, %v7619_v11  ;;  %v7661_v11 = vld [vmem:[%s10164_s2 + $0x80] sm:$0xff]  ;;  %v7662_v13 = vld [vmem:[%s10164_s2 + $0x88] sm:$0xff] }
0x2ac7   :  { %8613 = vmatpush3.bf16.msra.mxu1 %v8610_v27 }
0x2ac8   :  { %8623 = vmatprep.subr.bf16.mxu1 %v8622_v36 }
0x2b95   :  { %v5141_v28 = vpop.f32.mrb[50].mxu1 }
0x2b96   :  { %5239 = vrot.lane.b32.xlu0 %v5141_v28, %s8903_s9  ;;  %v8324_v29 = vpop.f32.mrb[51].mxu1 }
0x2b99   :  { %v5217_v50 = vpop.f32.mrb[62].mxu0 }
0x2b9a   :  { %5241 = vrot.lane.b32.xlu1 %v5217_v50, %s8903_s9  ;;  %v8329_v5 = vpop.f32.mrb[63].mxu0 }
0x2b9b   :  { %v5367_v5 = vrot.slane %v9777_v14, %v9240_v19 }
0x2c08   :  { %v5240_v49 = vpop.permute.xlu0 %5239 }
0x2c09   :  { %v5249_v51 = vsel %vm1646_vm7, %v5247_v20, %v5240_v49 }
0x2c0a   :  { %8338 = vmatprep.mubr.msk.f32.mxu1 %vm213_vm3, %v5249_v51 }
0x2c0c   :  { %v5242_v31 = vpop.permute.xlu1 %5241 }
0x2c0d   :  { %v5250_v53 = vsel %vm1646_vm7, %v5248_v52, %v5242_v31  ;;  %v7623_v52 = vld [vmem:[%s10166_s4 + $0x120] sm:$0xff]  ;;  %v7624_v31 = vld [vmem:[%s10166_s4 + $0x128] sm:$0xff] }
0x2c0e   :  { %8339 = vmatmul.mubr.msk.f32.vlgmr.msra.gmra.mrb[52].mxu1 %vm213_vm3, %v5250_v53  ;;  %v8634_v53 = vpack.c.bf16 %v7624_v31, %v7623_v52 }
0x2c0f   :  { %8625 = vmatpush3.bf16.msra.mxu1 %v8622_v36  ;;  %v8638_v36 = vpack.c.bf16 %v7661_v11, %v7660_v7 }
0x2c10   :  { %8627 = vmatprep.subr.bf16.mxu1 %v8626_v17 }
0x2c13   :  { %8629 = vmatpush3.bf16.msra.mxu1 %v8626_v17  ;;  %v7663_v17 = vld [vmem:[%s10164_s2 + $0x90] sm:$0xff] }
0x2c14   :  { %8631 = vmatprep.subr.bf16.mxu1 %v8630_v24  ;;  %v8642_v33 = vpack.c.bf16 %v7663_v17, %v7662_v13 }
0x2c17   :  { %8633 = vmatpush3.bf16.msra.mxu1 %v8630_v24 }
0x2c18   :  { %8635 = vmatprep.subr.bf16.mxu1 %v8634_v53 }
0x2c1b   :  { %8637 = vmatpush3.bf16.msra.mxu1 %v8634_v53 }
0x2c1c   :  { %8392 = vmatprep.subr.mxu1 %v8887_v12 }
0x2ce1   :  { %v8340_v55 = vpop.f32.mrb[52].mxu1 }
0x2ce2   :  { %v5333_v56 = vadd.f32 %v8340_v55, %v5254_v54  ;;  %v5327_v57 = vpop.f32.mrb[53].mxu1 }
0x2ce3   :  { %v5328_v58 = vadd.f32 %v5327_v57, %v5254_v54  ;;  %v7655_v54 = vld [vmem:[%s10165_s3 + $0x70] ss:$0 sm:$0xff] }
0x2ce4   :  { %v5337_v22 = vadd.f32 %v5333_v56, %v9579_v41 }
0x2ce5   :  { %v5336_v59 = vadd.f32 %v5328_v58, %v9577_v40  ;;  %v7608_v40 = vld [vmem:[%s10165_s3 + $0x50] sm:$0xff] }
0x2ce6   :  { %v5341_v25 = vsel %vm213_vm3, %v5337_v22, 0.0  ;;  %v8614_v45 = vpack.c.bf16 %v7609_v3, %v7608_v40 }
0x2ce7   :  { %5342 = vadd.xlane.f32.xlu1 %v5341_v25  ;;  %v5338_v62 = vsel %vm213_vm3, %v5336_v59, 0.0  ;;  %v5466_v25 = vrot.slane %v9777_v14, %v8964_v10 }
0x2ce8   :  { %5339 = vadd.xlane.f32.xlu0 %v5338_v62  ;;  %8615 = vmatprep.subr.bf16.mxu0 %v8614_v45 }
0x2ce9   :  { %8617 = vmatpush3.bf16.msra.mxu0 %v8614_v45 }
0x2cea   :  { %8619 = vmatprep.subr.bf16.mxu0 %v8618_v38 }
0x2ced   :  { %8621 = vmatpush3.bf16.msra.mxu0 %v8618_v38 }
0x2cee   :  { %8639 = vmatprep.subr.bf16.mxu0 %v8638_v36 }
0x2d74   :  { %v5343_v0 = vpop.xlane.xlu1 %5342 }
0x2d75   :  { %v5345_v30 = vmul.f32 0.03125, %v5343_v0  ;;  %v5340_v1 = vpop.xlane.xlu0 %5339 }
0x2d76   :  { %v5344_v34 = vmul.f32 0.03125, %v5340_v1 }
0x2d77   :  { %v5347_v61 = vsub.f32 %v5337_v22, %v5345_v30 }
0x2d78   :  { %v5346_v26 = vsub.f32 %v5336_v59, %v5344_v34 }
0x2d79   :  { %v5349_v2 = vmul.f32 %v5347_v61, %v5347_v61 }
0x2d7a   :  { %v5348_v63 = vmul.f32 %v5346_v26, %v5346_v26 }
0x2d7b   :  { %v5353_v41 = vsel %vm213_vm3, %v5349_v2, 0.0 }
0x2d7c   :  { %v5350_v60 = vsel %vm213_vm3, %v5348_v63, 0.0 }
0x2d7d   :  { %5351 = vadd.xlane.f32.xlu0 %v5350_v60 }
0x2d81   :  { %5354 = vadd.xlane.f32.xlu0 %v5353_v41 }
0x2e0a   :  { %v5352_v35 = vpop.xlane.xlu0 %5351 }
0x2e0b   :  { %v5356_v42 = vmul.f32 0.03125, %v5352_v35 }
0x2e0d   :  { %v5358_v27 = vadd.f32 1e-05, %v5356_v42 }
0x2e0e   :  { %v5355_v28 = vpop.xlane.xlu0 %5354 }
0x2e0f   :  { %8815 = vrsqrt.f32 %v5358_v27  ;;  %v5357_v29 = vmul.f32 0.03125, %v5355_v28 }
0x2e11   :  { %v5359_v50 = vadd.f32 1e-05, %v5357_v29  ;;  %v5579_v29 = vrot.slane %v9777_v14, %v9285_v15 }
0x2e13   :  { %8817 = vrsqrt.f32 %v5359_v50 }
0x2e19   :  { %v8816_v18 = vpop.eup %8815 }
0x2e1a   :  { %v5362_v37 = vmul.f32 %v8816_v18, %v5346_v26 }
0x2e1c   :  { %v5368_v8 = vmul.f32 %v5367_v5, %v5362_v37 }
0x2e1d   :  { %v8818_v44 = vpop.eup %8817 }
0x2e1e   :  { %v5363_v20 = vmul.f32 %v8818_v44, %v5347_v61  ;;  %v5374_v49 = vadd.f32 %v5373_v43, %v5368_v8 }
0x2e20   :  { %v5369_v51 = vmul.f32 %v5367_v5, %v5363_v20  ;;  %8349 = vmatprep.mubr.msk.f32.mxu0 %vm213_vm3, %v5374_v49 }
0x2e22   :  { %v5375_v47 = vadd.f32 %v5373_v43, %v5369_v51  ;;  %v5585_v43 = vrot.slane %v9777_v14, %v9288_v16  ;;  %v7683_v51 = vld [vmem:[%s10164_s2 + $0x98] ss:$0 sm:$0xff] }
0x2e24   :  { %8350 = vmatmul.mubr.msk.f32.vlgmr.msra.gmra.mrb[64].mxu0 %vm213_vm3, %v5375_v47 }
0x2e25   :  { %8641 = vmatpush3.bf16.msra.mxu0 %v8638_v36 }
0x2e26   :  { %8643 = vmatprep.subr.bf16.mxu0 %v8642_v33 }
0x2e29   :  { %8645 = vmatpush3.bf16.msra.mxu0 %v8642_v33 }
0x2e2a   :  { %8382 = vmatprep.subr.mxu0 %v8887_v12 }
0x2ef7   :  { %v8351_v55 = vpop.f32.mrb[64].mxu0 }
0x2ef8   :  { %v5458_v56 = vadd.f32 %v8351_v55, %v7655_v54  ;;  %v5452_v57 = vpop.f32.mrb[65].mxu0 }
0x2ef9   :  { %v5453_v58 = vadd.f32 %v7655_v54, %v5452_v57 }
0x2efa   :  { %v5462_v59 = vmax.f32 %v5458_v56, 0.0 }
0x2efb   :  { %v5461_v22 = vmax.f32 %v5453_v58, 0.0 }
0x2efd   :  { %8368 = vmatprep.mubr.msk.f32.mxu1 %vm1866_vm8, %v5461_v22 }
0x2efe   :  { %8369 = vmatmul.mubr.msk.f32.vlgmr.msra.gmra.mrb[54].mxu1 %vm1866_vm8, %v5462_v59 }
0x2eff   :  { %8394 = vmatprep.mubr.msk.f32.mxu1 %vm8888_vm4, %v8887_v12 }
0x2fd1   :  { %v8370_v62 = vpop.f32.mrb[54].mxu1 }
0x2fd2   :  { %v5545_v0 = vadd.f32 %v8370_v62, %v5466_v25  ;;  %v5539_v30 = vpop.f32.mrb[55].mxu1 }
0x2fd3   :  { %v5540_v1 = vadd.f32 %v5539_v30, %v5466_v25 }
0x2fd4   :  { %v5549_v34 = vadd.f32 %v5545_v0, %v5375_v47 }
0x2fd5   :  { %v5548_v61 = vadd.f32 %v5540_v1, %v5374_v49 }
0x2fd6   :  { %v5553_v26 = vsel %vm213_vm3, %v5549_v34, 0.0 }
0x2fd7   :  { %5554 = vadd.xlane.f32.xlu0 %v5553_v26  ;;  %v5550_v63 = vsel %vm213_vm3, %v5548_v61, 0.0 }
0x2fd8   :  { %5551 = vadd.xlane.f32.xlu1 %v5550_v63 }
0x3064   :  { %v5555_v60 = vpop.xlane.xlu0 %5554 }
0x3065   :  { %v5557_v2 = vmul.f32 0.03125, %v5555_v60  ;;  %v5552_v41 = vpop.xlane.xlu1 %5551 }
0x3066   :  { %v5556_v40 = vmul.f32 0.03125, %v5552_v41 }
0x3067   :  { %v5559_v3 = vsub.f32 %v5549_v34, %v5557_v2 }
0x3068   :  { %v5558_v45 = vsub.f32 %v5548_v61, %v5556_v40 }
0x3069   :  { %v5561_v32 = vmul.f32 %v5559_v3, %v5559_v3 }
0x306a   :  { %v5560_v4 = vmul.f32 %v5558_v45, %v5558_v45 }
0x306b   :  { %v5565_v38 = vsel %vm213_vm3, %v5561_v32, 0.0 }
0x306c   :  { %5566 = vadd.xlane.f32.xlu0 %v5565_v38  ;;  %v5562_v6 = vsel %vm213_vm3, %v5560_v4, 0.0 }
0x306d   :  { %5563 = vadd.xlane.f32.xlu1 %v5562_v6 }
0x30f9   :  { %v5567_v23 = vpop.xlane.xlu0 %5566 }
0x30fa   :  { %v5569_v24 = vmul.f32 0.03125, %v5567_v23  ;;  %v5564_v35 = vpop.xlane.xlu1 %5563 }
0x30fb   :  { %v5568_v42 = vmul.f32 0.03125, %v5564_v35 }
0x30fc   :  { %v5571_v27 = vadd.f32 1e-05, %v5569_v24 }
0x30fd   :  { %v5570_v28 = vadd.f32 1e-05, %v5568_v42 }
0x30fe   :  { %8819 = vrsqrt.f32 %v5571_v27 }
0x30ff   :  { %8821 = vrsqrt.f32 %v5570_v28 }
0x3108   :  { %v8820_v50 = vpop.eup %8819 }
0x3109   :  { %v8822_v5 = vpop.eup %8821  ;;  %v5575_v18 = vmul.f32 %v8820_v50, %v5559_v3 }
0x310a   :  { %v5574_v37 = vmul.f32 %v8822_v5, %v5558_v45 }
0x310b   :  { %v5581_v8 = vmul.f32 %v5579_v29, %v5575_v18 }
0x310c   :  { %v5580_v44 = vmul.f32 %v5579_v29, %v5574_v37 }
0x310d   :  { %v9862_v49 = vadd.f32 %v5585_v43, %v5581_v8 }
0x310e   :  { %v9860_v20 = vadd.f32 %v5585_v43, %v5580_v44 }
0x3110   :  { %8379 = vmatprep.mubr.msk.f32.mxu0 %vm213_vm3, %v9860_v20 }
0x3111   :  { %8380 = vmatmul.mubr.msk.f32.vlgmr.msra.gmra.mrb[66].mxu0 %vm213_vm3, %v9862_v49 }
0x3112   :  { %8384 = vmatprep.mubr.msk.f32.mxu0 %vm8888_vm4, %v8887_v12 }
0x31e4   :  { %v8381_v14 = vpop.f32.mrb[66].mxu0 }
0x31e5   :  { %v9873_v47 = vadd.f32 %v8381_v14, %v7683_v51  ;;  %v5690_v52 = vpop.f32.mrb[67].mxu0 }
0x31e6   :  { %v9875_v31 = vadd.f32 %v7683_v51, %v5690_v52 }
0x31e7   :  { %5780 = vrot.lane.b32.xlu0 %v9873_v47, %s8889_s13  ;;  %v9892_v56 = vmul.f32 0.35355338, %v9873_v47 }
0x31e8   :  { %5702 = vrot.lane.b32.xlu1 %v9875_v31, %s8889_s13  ;;  %v9883_v54 = vmul.f32 0.35355338, %v9875_v31 }
0x3259   :  { %v5781_v55 = vpop.permute.xlu0 %5780 }
0x325a   :  { %v5703_v53 = vpop.permute.xlu1 %5702 }
0x325b   :  { %8383 = vmatpush3.xpose.msk.msra.mxu0 %vm300_vm5, %v5703_v53 }
0x325c   :  { %8387 = vmatprep.subr.mxu0 %v8887_v12 }
0x325e   :  { %8385 = vmatmul.mubr.msk.f32.vlgmr.msra.gmra.mrb[68].mxu0 %vm300_vm5, %v9883_v54 }
0x325f   :  { %8388 = vmatpush3.xpose.msk.msra.mxu0 %vm300_vm5, %v5781_v55  ;;  %8389 = vmatprep.mubr.msk.f32.mxu0 %vm8888_vm4, %v8887_v12 }
0x3260   :  { %8397 = vmatprep.subr.mxu0 %v8887_v12 }
0x3262   :  { %8390 = vmatmul.mubr.msk.f32.vlgmr.msra.gmra.mrb[70].mxu0 %vm300_vm5, %v9892_v56 }
0x3263   :  { %8399 = vmatprep.mubr.msk.f32.mxu0 %vm8888_vm4, %v8887_v12 }
0x3331   :  { %v5775_v57 = vpop.f32.mrb[68].mxu0 }
0x3332   :  { %v5776_v58 = vadd.f32 %v5775_v57, %v9033_v46  ;;  %v8386_v22 = vpop.f32.mrb[69].mxu0 }
0x3334   :  { %v5857_v59 = vsel %vm300_vm5, %v5776_v58, -inf }
0x3335   :  { %5858 = vmax.xlane.f32.xlu1 %v5857_v59  ;;  %v5853_v25 = vpop.f32.mrb[70].mxu0 }
0x3336   :  { %v5854_v62 = vadd.f32 %v5853_v25, %v9036_v48  ;;  %v8391_v0 = vpop.f32.mrb[71].mxu0 }
0x3338   :  { %v5860_v30 = vsel %vm300_vm5, %v5854_v62, -inf }
0x3339   :  { %5861 = vmax.xlane.f32.xlu0 %v5860_v30 }
0x3346   :  { %5879 = vrot.lane.b32.xlu1 %v9875_v31, %s8891_s14 }
0x334a   :  { %6033 = vrot.lane.b32.xlu1 %v9875_v31, %s8892_s15 }
0x334e   :  { %6111 = vrot.lane.b32.xlu1 %v9873_v47, %s8892_s15 }
0x334f   :  { %5955 = vrot.lane.b32.xlu0 %v9873_v47, %s8891_s14 }
0x33c2   :  { %v5859_v1 = vpop.xlane.xlu1 %5858 }
0x33c3   :  { %v5863_v34 = vsub.f32 %v5776_v58, %v5859_v1 }
0x33c5   :  { %v5865_v61 = vmul.f32 1.442695, %v5863_v34 }
0x33c6   :  { %v5880_v26 = vpop.permute.xlu1 %5879  ;;  %v5862_v63 = vpop.xlane.xlu0 %5861 }
0x33c7   :  { %8823 = vpow2.f32 %v5865_v61  ;;  %v5864_v60 = vsub.f32 %v5854_v62, %v5862_v63  ;;  %8393 = vmatpush3.msra.mxu1 %v5880_v26 }
0x33c8   :  { %8402 = vmatprep.subr.mxu1 %v8887_v12 }
0x33c9   :  { %v5867_v2 = vmul.f32 1.442695, %v5864_v60 }
0x33ca   :  { %v5956_v41 = vpop.permute.xlu0 %5955  ;;  %v6034_v4 = vpop.permute.xlu1 %6033 }
0x33cb   :  { %8825 = vpow2.f32 %v5867_v2  ;;  %8398 = vmatpush3.msra.mxu0 %v5956_v41 }
0x33cc   :  { %8407 = vmatprep.subr.mxu0 %v8887_v12 }
0x33ce   :  { %v6112_v38 = vpop.permute.xlu1 %6111 }
0x33d1   :  { %v8824_v40 = vpop.eup %8823 }
0x33d2   :  { %v5869_v3 = vsel %vm300_vm5, %v8824_v40, 0.0 }
0x33d3   :  { %5870 = vadd.xlane.f32.xlu1 %v5869_v3 }
0x33d5   :  { %v8826_v45 = vpop.eup %8825 }
0x33d6   :  { %v5872_v32 = vsel %vm300_vm5, %v8826_v45, 0.0 }
0x33d7   :  { %5873 = vadd.xlane.f32.xlu0 %v5872_v32 }
0x33e4   :  { %6109 = vrot.lane.b32.xlu1 %v9892_v56, %s8893_s16 }
0x33ed   :  { %6031 = vrot.lane.b32.xlu0 %v9883_v54, %s8893_s16 }
0x3460   :  { %v5871_v6 = vpop.xlane.xlu1 %5870 }
0x3461   :  { %8827 = vrcp.f32 %v5871_v6 }
0x3464   :  { %v5874_v7 = vpop.xlane.xlu0 %5873  ;;  %v6110_v23 = vpop.permute.xlu1 %6109 }
0x3465   :  { %8829 = vrcp.f32 %v5874_v7 }
0x3468   :  { %v6032_v33 = vpop.permute.xlu0 %6031 }
0x346b   :  { %v8828_v11 = vpop.eup %8827 }
0x346c   :  { %v5877_v36 = vmul.f32 %v8828_v11, %v8824_v40 }
0x346e   :  { %8395 = vmatmul.mubr.msk.f32.vlgmr.msra.gmra.mrb[56].mxu1 %vm300_vm5, %v5877_v36 }
0x346f   :  { %v8830_v13 = vpop.eup %8829  ;;  %8403 = vmatpush3.xpose.msk.msra.mxu1 %vm300_vm5, %v6034_v4  ;;  %8404 = vmatprep.mubr.msk.f32.mxu1 %vm8888_vm4, %v8887_v12 }
0x3470   :  { %v5878_v17 = vmul.f32 %v8830_v13, %v8826_v45  ;;  %8412 = vmatprep.subr.mxu1 %v8887_v12 }
0x3472   :  { %8400 = vmatmul.mubr.msk.f32.vlgmr.msra.gmra.mrb[72].mxu0 %vm300_vm5, %v5878_v17  ;;  %8405 = vmatmul.mubr.msk.f32.vlgmr.msra.gmra.mrb[58].mxu1 %vm300_vm5, %v6032_v33 }
0x3473   :  { %8408 = vmatpush3.xpose.msk.msra.mxu0 %vm300_vm5, %v6112_v38  ;;  %8409 = vmatprep.mubr.msk.f32.mxu0 %vm8888_vm4, %v8887_v12 }
0x3474   :  { %8417 = vmatprep.subr.mxu0 %v8887_v12  ;;  %8414 = vmatprep.mubr.msk.f32.mxu1 %vm8888_vm4, %v8887_v12 }
0x3476   :  { %8410 = vmatmul.mubr.msk.f32.vlgmr.msra.gmra.mrb[74].mxu0 %vm300_vm5, %v6110_v23 }
0x3477   :  { %8419 = vmatprep.mubr.msk.f32.mxu0 %vm8888_vm4, %v8887_v12 }
0x3541   :  { %v9935_v24 = vpop.f32.mrb[56].mxu1 }
0x3542   :  { %v8396_v35 = vpop.f32.mrb[57].mxu1 }
0x3545   :  { %v9937_v42 = vpop.f32.mrb[72].mxu0  ;;  %v6105_v27 = vpop.f32.mrb[58].mxu1 }
0x3546   :  { %v6106_v28 = vadd.f32 %v6105_v27, %v9033_v46  ;;  %v8401_v29 = vpop.f32.mrb[73].mxu0  ;;  %v8406_v50 = vpop.f32.mrb[59].mxu1 }
0x3548   :  { %v6187_v5 = vsel %vm300_vm5, %v6106_v28, -inf }
0x3549   :  { %6188 = vmax.xlane.f32.xlu0 %v6187_v5  ;;  %v6183_v18 = vpop.f32.mrb[74].mxu0 }
0x354a   :  { %v6184_v37 = vadd.f32 %v6183_v18, %v9036_v48  ;;  %v8411_v43 = vpop.f32.mrb[75].mxu0 }
0x354c   :  { %v6190_v8 = vsel %vm300_vm5, %v6184_v37, -inf }
0x354d   :  { %6191 = vmax.xlane.f32.xlu1 %v6190_v8 }
0x355e   :  { %6209 = vrot.lane.b32.xlu1 %v9875_v31, %s8894_s17 }
0x355f   :  { %6285 = vrot.lane.b32.xlu0 %v9873_v47, %s8894_s17 }
0x3562   :  { %6363 = vrot.lane.b32.xlu1 %v9875_v31, %s8895_s18 }
0x3566   :  { %6441 = vrot.lane.b32.xlu1 %v9873_v47, %s8895_s18 }
0x356a   :  { %6439 = vrot.lane.b32.xlu1 %v9892_v56, %s8896_s19 }
0x35d6   :  { %v6189_v44 = vpop.xlane.xlu0 %6188 }
0x35d7   :  { %v6193_v51 = vsub.f32 %v6106_v28, %v6189_v44 }
0x35d9   :  { %v6195_v14 = vmul.f32 1.442695, %v6193_v51 }
0x35da   :  { %v6286_v52 = vpop.permute.xlu0 %6285  ;;  %v6192_v53 = vpop.xlane.xlu1 %6191 }
0x35db   :  { %8831 = vpow2.f32 %v6195_v14  ;;  %v6194_v55 = vsub.f32 %v6184_v37, %v6192_v53  ;;  %8418 = vmatpush3.msra.mxu0 %v6286_v52 }
0x35dc   :  { %8427 = vmatprep.subr.mxu0 %v8887_v12 }
0x35dd   :  { %v6197_v57 = vmul.f32 1.442695, %v6194_v55 }
0x35de   :  { %v6210_v58 = vpop.permute.xlu1 %6209 }
0x35df   :  { %8833 = vpow2.f32 %v6197_v57  ;;  %8413 = vmatpush3.msra.mxu1 %v6210_v58 }
0x35e0   :  { %8422 = vmatprep.subr.mxu1 %v8887_v12 }
0x35e2   :  { %v6364_v1 = vpop.permute.xlu1 %6363 }
0x35e5   :  { %v8832_v22 = vpop.eup %8831 }
0x35e6   :  { %v6199_v59 = vsel %vm300_vm5, %v8832_v22, 0.0  ;;  %v6442_v63 = vpop.permute.xlu1 %6441 }
0x35e7   :  { %6200 = vadd.xlane.f32.xlu0 %v6199_v59 }
0x35e9   :  { %v8834_v25 = vpop.eup %8833 }
0x35ea   :  { %v6202_v62 = vsel %vm300_vm5, %v8834_v25, 0.0  ;;  %v6440_v41 = vpop.permute.xlu1 %6439 }
0x35eb   :  { %6203 = vadd.xlane.f32.xlu0 %v6202_v62 }
0x3601   :  { %6361 = vrot.lane.b32.xlu0 %v9883_v54, %s8896_s19 }
0x3674   :  { %v6201_v0 = vpop.xlane.xlu0 %6200 }
0x3675   :  { %8835 = vrcp.f32 %v6201_v0 }
0x3678   :  { %v6204_v30 = vpop.xlane.xlu0 %6203 }
0x3679   :  { %8837 = vrcp.f32 %v6204_v30 }
0x367c   :  { %v6362_v2 = vpop.permute.xlu0 %6361 }
0x367f   :  { %v8836_v34 = vpop.eup %8835 }
0x3680   :  { %v6207_v61 = vmul.f32 %v8836_v34, %v8832_v22 }
0x3682   :  { %8415 = vmatmul.mubr.msk.f32.vlgmr.msra.gmra.mrb[60].mxu1 %vm300_vm5, %v6207_v61 }
0x3683   :  { %v8838_v26 = vpop.eup %8837  ;;  %8423 = vmatpush3.xpose.msk.msra.mxu1 %vm300_vm5, %v6364_v1  ;;  %8424 = vmatprep.mubr.msk.f32.mxu1 %vm8888_vm4, %v8887_v12 }
0x3684   :  { %v6208_v60 = vmul.f32 %v8838_v26, %v8834_v25  ;;  %8432 = vmatprep.subr.mxu1 %v8887_v12 }
0x3686   :  { %8420 = vmatmul.mubr.msk.f32.vlgmr.msra.gmra.mrb[76].mxu0 %vm300_vm5, %v6208_v60  ;;  %8425 = vmatmul.mubr.msk.f32.vlgmr.msra.gmra.mrb[62].mxu1 %vm300_vm5, %v6362_v2 }
0x3687   :  { %8428 = vmatpush3.xpose.msk.msra.mxu0 %vm300_vm5, %v6442_v63  ;;  %8429 = vmatprep.mubr.msk.f32.mxu0 %vm8888_vm4, %v8887_v12 }
0x3688   :  { %8437 = vmatprep.subr.mxu0 %v8887_v12  ;;  %8434 = vmatprep.mubr.msk.f32.mxu1 %vm8888_vm4, %v8887_v12 }
0x368a   :  { %8430 = vmatmul.mubr.msk.f32.vlgmr.msra.gmra.mrb[78].mxu0 %vm300_vm5, %v6440_v41 }
0x368b   :  { %8439 = vmatprep.mubr.msk.f32.mxu0 %vm8888_vm4, %v8887_v12 }
0x3755   :  { %v9975_v40 = vpop.f32.mrb[60].mxu1 }
0x3756   :  { %v8416_v3 = vpop.f32.mrb[61].mxu1 }
0x3759   :  { %v9977_v45 = vpop.f32.mrb[76].mxu0  ;;  %v6435_v32 = vpop.f32.mrb[62].mxu1 }
0x375a   :  { %v6436_v4 = vadd.f32 %v6435_v32, %v9033_v46  ;;  %v8421_v38 = vpop.f32.mrb[77].mxu0  ;;  %v8426_v6 = vpop.f32.mrb[63].mxu1 }
0x375c   :  { %v6517_v7 = vsel %vm300_vm5, %v6436_v4, -inf }
0x375d   :  { %6518 = vmax.xlane.f32.xlu0 %v6517_v7  ;;  %v6513_v11 = vpop.f32.mrb[78].mxu0 }
0x375e   :  { %v6514_v36 = vadd.f32 %v6513_v11, %v9036_v48  ;;  %v8431_v13 = vpop.f32.mrb[79].mxu0 }
0x3760   :  { %v6520_v17 = vsel %vm300_vm5, %v6514_v36, -inf }
0x3761   :  { %6521 = vmax.xlane.f32.xlu1 %v6520_v17 }
0x3772   :  { %6539 = vrot.lane.b32.xlu1 %v9875_v31, %s8897_s20 }
0x3773   :  { %6615 = vrot.lane.b32.xlu0 %v9873_v47, %s8897_s20 }
0x3776   :  { %6693 = vrot.lane.b32.xlu1 %v9875_v31, %s8898_s21 }
0x377a   :  { %6771 = vrot.lane.b32.xlu1 %v9873_v47, %s8898_s21 }
0x377e   :  { %6769 = vrot.lane.b32.xlu1 %v9892_v56, %s8899_s22 }
0x37ea   :  { %v6519_v33 = vpop.xlane.xlu0 %6518 }
0x37eb   :  { %v6523_v23 = vsub.f32 %v6436_v4, %v6519_v33 }
0x37ed   :  { %v6525_v35 = vmul.f32 1.442695, %v6523_v23  ;;  %v7671_v23 = vld [vmem:[%s10166_s4 + $0x140] sm:$0xff] }
0x37ee   :  { %v6616_v27 = vpop.permute.xlu0 %6615  ;;  %v6522_v28 = vpop.xlane.xlu1 %6521 }
0x37ef   :  { %8839 = vpow2.f32 %v6525_v35  ;;  %v6524_v29 = vsub.f32 %v6514_v36, %v6522_v28  ;;  %8438 = vmatpush3.msra.mxu0 %v6616_v27  ;;  %v7672_v27 = vld [vmem:[%s10166_s4 + $0x148] sm:$0xff]  ;;  %v7673_v28 = vld [vmem:[%s10166_s4 + $0x150] sm:$0xff] }
0x37f0   :  { %8447 = vmatprep.subr.mxu0 %v8887_v12 }
0x37f1   :  { %v6527_v50 = vmul.f32 1.442695, %v6524_v29  ;;  %v8650_v29 = vpack.c.bf16 %v7673_v28, %v7672_v27 }
0x37f2   :  { %v6540_v5 = vpop.permute.xlu1 %6539 }
0x37f3   :  { %8841 = vpow2.f32 %v6527_v50  ;;  %8433 = vmatpush3.msra.mxu1 %v6540_v5 }
0x37f4   :  { %8442 = vmatprep.subr.mxu1 %v8887_v12 }
0x37f6   :  { %v6694_v51 = vpop.permute.xlu1 %6693 }
0x37f9   :  { %v8840_v18 = vpop.eup %8839 }
0x37fa   :  { %v6529_v37 = vsel %vm300_vm5, %v8840_v18, 0.0  ;;  %v6772_v55 = vpop.permute.xlu1 %6771 }
0x37fb   :  { %6530 = vadd.xlane.f32.xlu0 %v6529_v37 }
0x37fd   :  { %v8842_v56 = vpop.eup %8841 }
0x37fe   :  { %v6532_v43 = vsel %vm300_vm5, %v8842_v56, 0.0  ;;  %v6770_v58 = vpop.permute.xlu1 %6769 }
0x37ff   :  { %6533 = vadd.xlane.f32.xlu0 %v6532_v43 }
0x3815   :  { %6691 = vrot.lane.b32.xlu0 %v9883_v54, %s8899_s22 }
0x3888   :  { %v6531_v8 = vpop.xlane.xlu0 %6530 }
0x3889   :  { %8843 = vrcp.f32 %v6531_v8 }
0x388c   :  { %v6534_v44 = vpop.xlane.xlu0 %6533 }
0x388d   :  { %8845 = vrcp.f32 %v6534_v44 }
0x3890   :  { %v6692_v54 = vpop.permute.xlu0 %6691 }
0x3893   :  { %v8844_v14 = vpop.eup %8843 }
0x3894   :  { %v6537_v52 = vmul.f32 %v8844_v14, %v8840_v18 }
0x3896   :  { %8435 = vmatmul.mubr.msk.f32.vlgmr.msra.gmra.mrb[64].mxu1 %vm300_vm5, %v6537_v52 }
0x3897   :  { %v8846_v53 = vpop.eup %8845  ;;  %8443 = vmatpush3.xpose.msk.msra.mxu1 %vm300_vm5, %v6694_v51  ;;  %8444 = vmatprep.mubr.msk.f32.mxu1 %vm8888_vm4, %v8887_v12 }
0x3898   :  { %v6538_v57 = vmul.f32 %v8846_v53, %v8842_v56  ;;  %8452 = vmatprep.subr.mxu1 %v8887_v12 }
0x389a   :  { %8440 = vmatmul.mubr.msk.f32.vlgmr.msra.gmra.mrb[80].mxu0 %vm300_vm5, %v6538_v57  ;;  %8445 = vmatmul.mubr.msk.f32.vlgmr.msra.gmra.mrb[66].mxu1 %vm300_vm5, %v6692_v54 }
0x389b   :  { %8448 = vmatpush3.xpose.msk.msra.mxu0 %vm300_vm5, %v6772_v55  ;;  %8449 = vmatprep.mubr.msk.f32.mxu0 %vm8888_vm4, %v8887_v12 }
0x389c   :  { %8457 = vmatprep.subr.mxu0 %v8887_v12  ;;  %8454 = vmatprep.mubr.msk.f32.mxu1 %vm8888_vm4, %v8887_v12 }
0x389e   :  { %8450 = vmatmul.mubr.msk.f32.vlgmr.msra.gmra.mrb[82].mxu0 %vm300_vm5, %v6770_v58 }
0x389f   :  { %8459 = vmatprep.mubr.msk.f32.mxu0 %vm8888_vm4, %v8887_v12 }
0x3969   :  { %v6611_v22 = vpop.f32.mrb[64].mxu1 }
0x396a   :  { %v8436_v59 = vpop.f32.mrb[65].mxu1 }
0x396d   :  { %v6687_v25 = vpop.f32.mrb[80].mxu0  ;;  %v6765_v62 = vpop.f32.mrb[66].mxu1 }
0x396e   :  { %v6766_v0 = vadd.f32 %v6765_v62, %v9033_v46  ;;  %v8441_v30 = vpop.f32.mrb[81].mxu0  ;;  %v8446_v1 = vpop.f32.mrb[67].mxu1 }
0x3970   :  { %v6847_v34 = vsel %vm300_vm5, %v6766_v0, -inf }
0x3971   :  { %6848 = vmax.xlane.f32.xlu0 %v6847_v34  ;;  %v6843_v61 = vpop.f32.mrb[82].mxu0 }
0x3972   :  { %v6844_v26 = vadd.f32 %v6843_v61, %v9036_v48  ;;  %v8451_v63 = vpop.f32.mrb[83].mxu0 }
0x3974   :  { %v6850_v60 = vsel %vm300_vm5, %v6844_v26, -inf }
0x3975   :  { %6851 = vmax.xlane.f32.xlu1 %v6850_v60 }
0x3986   :  { %6869 = vrot.lane.b32.xlu1 %v9875_v31, %s8900_s23 }
0x398a   :  { %7023 = vrot.lane.b32.xlu1 %v9975_v40, %s8901_s24 }
0x398e   :  { %7025 = vrot.lane.b32.xlu1 %v9977_v45, %s8901_s24 }
0x3992   :  { %7033 = vrot.lane.b32.xlu1 %v6687_v25, %s8902_s25 }
0x39fe   :  { %v6849_v46 = vpop.xlane.xlu0 %6848 }
0x39ff   :  { %v6853_v2 = vsub.f32 %v6766_v0, %v6849_v46 }
0x3a01   :  { %v6855_v41 = vmul.f32 1.442695, %v6853_v2 }
0x3a02   :  { %v6852_v3 = vpop.xlane.xlu1 %6851 }
0x3a03   :  { %8847 = vpow2.f32 %v6855_v41  ;;  %v6854_v48 = vsub.f32 %v6844_v26, %v6852_v3 }
0x3a05   :  { %v6857_v32 = vmul.f32 1.442695, %v6854_v48 }
0x3a06   :  { %v6870_v4 = vpop.permute.xlu1 %6869 }
0x3a07   :  { %8849 = vpow2.f32 %v6857_v32  ;;  %8453 = vmatpush3.msra.mxu1 %v6870_v4  ;;  %v7666_v32 = vld [vmem:[%s10165_s3 + $0x80] sm:$0xff] }
0x3a0a   :  { %v7024_v56 = vpop.permute.xlu1 %7023 }
0x3a0b   :  { %v7045_v44 = vsel %vm300_vm5, %v9935_v24, %v7024_v56  ;;  %v10060_v24 = vld [vmem:[%s10166_s4 + $0x198] sm:$0x3f] }
0x3a0c   :  { %v7173_v56 = vrot.slane %v10060_v24, %v9243_v21  ;;  %v7681_v21 = vld [vmem:[%s10166_s4 + $0x190] sm:$0xff] }
0x3a0d   :  { %v8848_v38 = vpop.eup %8847 }
0x3a0e   :  { %v6859_v31 = vsel %vm300_vm5, %v8848_v38, 0.0  ;;  %v7026_v43 = vpop.permute.xlu1 %7025 }
0x3a0f   :  { %6860 = vadd.xlane.f32.xlu0 %v6859_v31  ;;  %v7046_v55 = vsel %vm300_vm5, %v9937_v42, %v7026_v43  ;;  %v7668_v31 = vld [vmem:[%s10165_s3 + $0x90] sm:$0xff] }
0x3a11   :  { %v8850_v40 = vpop.eup %8849 }
0x3a12   :  { %v6862_v6 = vsel %vm300_vm5, %v8850_v40, 0.0  ;;  %v7034_v51 = vpop.permute.xlu1 %7033 }
0x3a13   :  { %6863 = vadd.xlane.f32.xlu0 %v6862_v6  ;;  %v7048_v57 = vsel %vm49_vm0, %v7046_v55, %v7034_v51  ;;  %v7674_v6 = vld [vmem:[%s10166_s4 + $0x158] sm:$0xff] }
0x3a14   :  { %v7712_v55 = vld [vmem:[%s10165_s3 + $0x98] ss:$0 sm:$0xff] }
0x3a29   :  { %6945 = vrot.lane.b32.xlu0 %v9873_v47, %s8900_s23  ;;  %v7670_v47 = vld [vmem:[%s10166_s4 + $0x138] sm:$0xff] }
0x3a2a   :  { %v8646_v35 = vpack.c.bf16 %v7671_v23, %v7670_v47 }
0x3a2c   :  { %8647 = vmatprep.subr.bf16.mxu1 %v8646_v35 }
0x3a2d   :  { %7031 = vrot.lane.b32.xlu0 %v6611_v22, %s8902_s25  ;;  %v7054_v22 = vrot.slane %v10060_v24, %v8961_v9 }
0x3a9c   :  { %v6861_v45 = vpop.xlane.xlu0 %6860 }
0x3a9d   :  { %8851 = vrcp.f32 %v6861_v45  ;;  %v7675_v45 = vld [vmem:[%s10166_s4 + $0x160] sm:$0xff] }
0x3aa0   :  { %v6864_v7 = vpop.xlane.xlu0 %6863 }
0x3aa1   :  { %8853 = vrcp.f32 %v6864_v7  ;;  %v7676_v7 = vld [vmem:[%s10166_s4 + $0x168] sm:$0xff] }
0x3aa4   :  { %v6946_v11 = vpop.permute.xlu0 %6945 }
0x3aa5   :  { %8458 = vmatpush3.msra.mxu0 %v6946_v11  ;;  %v8662_v11 = vpack.c.bf16 %v7675_v45, %v7674_v6  ;;  %v7407_v6 = vld [vmem:[%s10167_s5 + $0x8] sm:$0xff] }
0x3aa7   :  { %v8852_v36 = vpop.eup %8851 }
0x3aa8   :  { %v6867_v13 = vmul.f32 %v8852_v36, %v8848_v38  ;;  %v7032_v8 = vpop.permute.xlu0 %7031  ;;  %v7667_v38 = vld [vmem:[%s10165_s3 + $0x88] sm:$0xff]  ;;  %v7677_v36 = vld [vmem:[%s10166_s4 + $0x170] sm:$0xff] }
0x3aa9   :  { %v7047_v14 = vsel %vm49_vm0, %v7045_v44, %v7032_v8 }
0x3aaa   :  { %8455 = vmatmul.mubr.msk.f32.vlgmr.msra.gmra.mrb[68].mxu1 %vm300_vm5, %v6867_v13  ;;  %v8666_v13 = vpack.c.bf16 %v7677_v36, %v7676_v7  ;;  %v8904_v7 = vmov 0.0|0.0  }
0x3aab   :  { %v8854_v17 = vpop.eup %8853  ;;  %8649 = vmatpush3.bf16.msra.mxu1 %v8646_v35 }
0x3aac   :  { %v6868_v33 = vmul.f32 %v8854_v17, %v8850_v40  ;;  %8651 = vmatprep.subr.bf16.mxu1 %v8650_v29  ;;  %v8658_v40 = vpack.c.bf16 %v7668_v31, %v7667_v38  ;;  %v7678_v17 = vld [vmem:[%s10166_s4 + $0x178] sm:$0xff] }
0x3aae   :  { %8460 = vmatmul.mubr.msk.f32.vlgmr.msra.gmra.mrb[84].mxu0 %vm300_vm5, %v6868_v33  ;;  %v7679_v33 = vld [vmem:[%s10166_s4 + $0x180] sm:$0xff] }
0x3aaf   :  { %8653 = vmatpush3.bf16.msra.mxu1 %v8650_v29  ;;  %v8670_v47 = vpack.c.bf16 %v7679_v33, %v7678_v17 }
0x3ab0   :  { %8663 = vmatprep.subr.bf16.mxu1 %v8662_v11 }
0x3b7d   :  { %v6941_v50 = vpop.f32.mrb[68].mxu1 }
0x3b7e   :  { %7039 = vrot.lane.b32.xlu0 %v6941_v50, %s8903_s9  ;;  %v8456_v5 = vpop.f32.mrb[69].mxu1 }
0x3b7f   :  { %v7167_v5 = vrot.slane %v10060_v24, %v9240_v19  ;;  %v7680_v19 = vld [vmem:[%s10166_s4 + $0x188] sm:$0xff] }
0x3b81   :  { %v7017_v18 = vpop.f32.mrb[84].mxu0 }
0x3b82   :  { %7041 = vrot.lane.b32.xlu1 %v7017_v18, %s8903_s9  ;;  %v8461_v37 = vpop.f32.mrb[85].mxu0 }
0x3bf0   :  { %v7040_v52 = vpop.permute.xlu0 %7039 }
0x3bf1   :  { %v7049_v53 = vsel %vm1646_vm7, %v7047_v14, %v7040_v52 }
0x3bf2   :  { %8470 = vmatprep.mubr.msk.f32.mxu1 %vm213_vm3, %v7049_v53  ;;  %v8674_v53 = vpack.c.bf16 %v7681_v21, %v7680_v19 }
0x3bf4   :  { %v7042_v54 = vpop.permute.xlu1 %7041 }
0x3bf5   :  { %v7050_v58 = vsel %vm1646_vm7, %v7048_v57, %v7042_v54 }
0x3bf6   :  { %8471 = vmatmul.mubr.msk.f32.vlgmr.msra.gmra.mrb[70].mxu1 %vm213_vm3, %v7050_v58 }
0x3bf7   :  { %8665 = vmatpush3.bf16.msra.mxu1 %v8662_v11 }
0x3bf8   :  { %8667 = vmatprep.subr.bf16.mxu1 %v8666_v13 }
0x3bfb   :  { %8669 = vmatpush3.bf16.msra.mxu1 %v8666_v13 }
0x3bfc   :  { %8671 = vmatprep.subr.bf16.mxu1 %v8670_v47 }
0x3bff   :  { %8673 = vmatpush3.bf16.msra.mxu1 %v8670_v47 }
0x3c00   :  { %8675 = vmatprep.subr.bf16.mxu1 %v8674_v53 }
0x3c03   :  { %8677 = vmatpush3.bf16.msra.mxu1 %v8674_v53 }
0x3cc9   :  { %v8472_v59 = vpop.f32.mrb[70].mxu1 }
0x3cca   :  { %v7133_v25 = vadd.f32 %v8472_v59, %v7054_v22  ;;  %v7127_v62 = vpop.f32.mrb[71].mxu1 }
0x3ccb   :  { %v7128_v0 = vadd.f32 %v7127_v62, %v7054_v22 }
0x3ccc   :  { %v7137_v42 = vadd.f32 %v7133_v25, %v9862_v49  ;;  %v7266_v25 = vrot.slane %v10060_v24, %v8964_v10 }
0x3ccd   :  { %v7136_v30 = vadd.f32 %v7128_v0, %v9860_v20  ;;  %v7665_v20 = vld [vmem:[%s10165_s3 + $0x78] sm:$0xff] }
0x3cce   :  { %v7141_v1 = vsel %vm213_vm3, %v7137_v42, 0.0  ;;  %v8654_v4 = vpack.c.bf16 %v7666_v32, %v7665_v20 }
0x3ccf   :  { %7142 = vadd.xlane.f32.xlu1 %v7141_v1  ;;  %v7138_v34 = vsel %vm213_vm3, %v7136_v30, 0.0 }
0x3cd0   :  { %7139 = vadd.xlane.f32.xlu0 %v7138_v34  ;;  %8655 = vmatprep.subr.bf16.mxu0 %v8654_v4 }
0x3cd1   :  { %8657 = vmatpush3.bf16.msra.mxu0 %v8654_v4  ;;  %v171_v4 = vsub.f32 1.0, %v9028_v39 }
0x3cd2   :  { %8659 = vmatprep.subr.bf16.mxu0 %v8658_v40 }
0x3cd3   :  { %v175_v38 = vrot.slane %v171_v4, %v8961_v9  ;;  %v182_v31 = vrot.slane %v171_v4, %v8964_v10  ;;  %v7408_v9 = vld [vmem:[%s10167_s5 + $0x10] sm:$0xff]  ;;  %v7409_v10 = vld [vmem:[%s10167_s5 + $0x18] sm:$0xff] }
0x3cd4   :  { %v8682_v39 = vpack.c.bf16 %v7409_v10, %v7408_v9 }
0x3cd5   :  { %8661 = vmatpush3.bf16.msra.mxu0 %v8658_v40  ;;  %v7406_v40 = vld [vmem:[%s10167_s5] sm:$0xff] }
0x3cd6   :  { %v8679_v45 = vpack.c.bf16 %v7407_v6, %v7406_v40  ;;  %8678 = vmatprep.subr.bf16.mxu0 %v8904_v7 }
0x3d5c   :  { %v7143_v61 = vpop.xlane.xlu1 %7142 }
0x3d5d   :  { %v7145_v26 = vmul.f32 0.03125, %v7143_v61  ;;  %v7140_v63 = vpop.xlane.xlu0 %7139 }
0x3d5e   :  { %v7144_v60 = vmul.f32 0.03125, %v7140_v63 }
0x3d5f   :  { %v7147_v46 = vsub.f32 %v7137_v42, %v7145_v26 }
0x3d60   :  { %v7146_v2 = vsub.f32 %v7136_v30, %v7144_v60 }
0x3d61   :  { %v7149_v48 = vmul.f32 %v7147_v46, %v7147_v46 }
0x3d62   :  { %v7148_v41 = vmul.f32 %v7146_v2, %v7146_v2 }
0x3d63   :  { %v7153_v49 = vsel %vm213_vm3, %v7149_v48, 0.0 }
0x3d64   :  { %v7150_v3 = vsel %vm213_vm3, %v7148_v41, 0.0 }
0x3d65   :  { %7151 = vadd.xlane.f32.xlu0 %v7150_v3 }
0x3d69   :  { %7154 = vadd.xlane.f32.xlu0 %v7153_v49 }
0x3df2   :  { %v7152_v23 = vpop.xlane.xlu0 %7151 }
0x3df3   :  { %v7156_v35 = vmul.f32 0.03125, %v7152_v23  ;;  %v7379_v23 = vrot.slane %v10060_v24, %v9285_v15 }
0x3df5   :  { %v7158_v27 = vadd.f32 1e-05, %v7156_v35 }
0x3df6   :  { %v7155_v28 = vpop.xlane.xlu0 %7154 }
0x3df7   :  { %8855 = vrsqrt.f32 %v7158_v27  ;;  %v7157_v29 = vmul.f32 0.03125, %v7155_v28 }
0x3df9   :  { %v7159_v50 = vadd.f32 1e-05, %v7157_v29  ;;  %v7385_v29 = vrot.slane %v10060_v24, %v9288_v16 }
0x3dfb   :  { %8857 = vrsqrt.f32 %v7159_v50 }
0x3e01   :  { %v8856_v18 = vpop.eup %8855 }
0x3e02   :  { %v7162_v37 = vmul.f32 %v8856_v18, %v7146_v2 }
0x3e04   :  { %v7168_v43 = vmul.f32 %v7167_v5, %v7162_v37 }
0x3e05   :  { %v8858_v8 = vpop.eup %8857 }
0x3e06   :  { %v7163_v44 = vmul.f32 %v8858_v8, %v7147_v46  ;;  %v7174_v51 = vadd.f32 %v7173_v56, %v7168_v43 }
0x3e08   :  { %v7169_v14 = vmul.f32 %v7167_v5, %v7163_v44  ;;  %8481 = vmatprep.mubr.msk.f32.mxu0 %vm213_vm3, %v7174_v51 }
0x3e0a   :  { %v7175_v52 = vadd.f32 %v7173_v56, %v7169_v14 }
0x3e0c   :  { %8482 = vmatmul.mubr.msk.f32.vlgmr.msra.gmra.mrb[86].mxu0 %vm213_vm3, %v7175_v52 }
0x3e0d   :  { %8511 = vmatprep.mubr.msk.f32.mxu0 %vm8888_vm4, %v8887_v12  ;;  %8680 = vmatpush3.bf16.msra.mxu0 %v8679_v45 }
0x3e0e   :  { %8681 = vmatprep.subr.bf16.mxu0 %v8904_v7 }
0x3e11   :  { %8683 = vmatpush3.bf16.msra.mxu0 %v8682_v39 }
0x3edf   :  { %v8483_v57 = vpop.f32.mrb[86].mxu0 }
0x3ee0   :  { %v7258_v54 = vadd.f32 %v8483_v57, %v7712_v55  ;;  %v7252_v58 = vpop.f32.mrb[87].mxu0 }
0x3ee1   :  { %v7253_v22 = vadd.f32 %v7712_v55, %v7252_v58 }
0x3ee2   :  { %v7262_v59 = vmax.f32 %v7258_v54, 0.0 }
0x3ee3   :  { %v7261_v12 = vmax.f32 %v7253_v22, 0.0 }
0x3ee5   :  { %8500 = vmatprep.mubr.msk.f32.mxu1 %vm1866_vm8, %v7261_v12 }
0x3ee6   :  { %8501 = vmatmul.mubr.msk.f32.vlgmr.msra.gmra.mrb[72].mxu1 %vm1866_vm8, %v7262_v59 }
0x3fb9   :  { %v8502_v62 = vpop.f32.mrb[72].mxu1 }
0x3fba   :  { %v7345_v0 = vadd.f32 %v8502_v62, %v7266_v25  ;;  %v7339_v42 = vpop.f32.mrb[73].mxu1 }
0x3fbb   :  { %v7340_v30 = vadd.f32 %v7339_v42, %v7266_v25 }
0x3fbc   :  { %v7349_v1 = vadd.f32 %v7345_v0, %v7175_v52  ;;  %v7717_v0 = vld [vmem:[%s10167_s5 + $0x20] ss:$0 sm:$0xff] }
0x3fbd   :  { %v7348_v34 = vadd.f32 %v7340_v30, %v7174_v51 }
0x3fbe   :  { %v7353_v61 = vsel %vm213_vm3, %v7349_v1, 0.0 }
0x3fbf   :  { %7354 = vadd.xlane.f32.xlu0 %v7353_v61  ;;  %v7350_v26 = vsel %vm213_vm3, %v7348_v34, 0.0 }
0x3fc0   :  { %7351 = vadd.xlane.f32.xlu1 %v7350_v26 }
0x404c   :  { %v7355_v63 = vpop.xlane.xlu0 %7354 }
0x404d   :  { %v7357_v60 = vmul.f32 0.03125, %v7355_v63  ;;  %v7352_v46 = vpop.xlane.xlu1 %7351 }
0x404e   :  { %v7356_v2 = vmul.f32 0.03125, %v7352_v46 }
0x404f   :  { %v7359_v41 = vsub.f32 %v7349_v1, %v7357_v60 }
0x4050   :  { %v7358_v3 = vsub.f32 %v7348_v34, %v7356_v2 }
0x4051   :  { %v7361_v48 = vmul.f32 %v7359_v41, %v7359_v41 }
0x4052   :  { %v7360_v49 = vmul.f32 %v7358_v3, %v7358_v3 }
0x4053   :  { %v7365_v20 = vsel %vm213_vm3, %v7361_v48, 0.0 }
0x4054   :  { %7366 = vadd.xlane.f32.xlu0 %v7365_v20  ;;  %v7362_v32 = vsel %vm213_vm3, %v7360_v49, 0.0 }
0x4055   :  { %7363 = vadd.xlane.f32.xlu1 %v7362_v32 }
0x4066   :  { %177 = vbcast.lane.b32.xlu1 %v175_v38, 256 }
0x406a   :  { %184 = vbcast.lane.b32.xlu0 %v182_v31, 256 }
0x40e1   :  { %v7367_v11 = vpop.xlane.xlu0 %7366 }
0x40e2   :  { %v7369_v36 = vmul.f32 0.03125, %v7367_v11  ;;  %v7364_v13 = vpop.xlane.xlu1 %7363 }
0x40e3   :  { %v7368_v17 = vmul.f32 0.03125, %v7364_v13 }
0x40e4   :  { %v7371_v33 = vadd.f32 1e-05, %v7369_v36 }
0x40e5   :  { %v7370_v47 = vadd.f32 1e-05, %v7368_v17  ;;  %v185_v18 = vpop.permute.xlu0 %184 }
0x40e6   :  { %8859 = vrsqrt.f32 %v7371_v33  ;;  %v178_v43 = vpop.permute.xlu1 %177 }
0x40e7   :  { %8861 = vrsqrt.f32 %v7370_v47 }
0x40f0   :  { %v8860_v35 = vpop.eup %8859 }
0x40f1   :  { %v8862_v27 = vpop.eup %8861  ;;  %v7375_v28 = vmul.f32 %v8860_v35, %v7359_v41 }
0x40f2   :  { %v7374_v50 = vmul.f32 %v8862_v27, %v7358_v3 }
0x40f3   :  { %v7381_v5 = vmul.f32 %v7379_v23, %v7375_v28 }
0x40f4   :  { %v7380_v37 = vmul.f32 %v7379_v23, %v7374_v50 }
0x40f5   :  { %v7387_v56 = vadd.f32 %v7385_v29, %v7381_v5 }
0x40f6   :  { %v7386_v8 = vadd.f32 %v7385_v29, %v7380_v37 }
0x40f7   :  { %v7389_v44 = vmul.f32 %v7387_v56, %v185_v18 }
0x40f8   :  { %v7388_v51 = vmul.f32 %v7386_v8, %v178_v43 }
0x40f9   :  { %v7397_v14 = vsel %vm213_vm3, %v7389_v44, 0.0 }
0x40fa   :  { %v7398_v52 = vrot.slane %v7397_v14, 4  ;;  %v7390_v15 = vsel %vm213_vm3, %v7388_v51, 0.0 }
0x40fb   :  { %v7391_v19 = vrot.slane %v7390_v15, 4 }
0x40fc   :  { %v7399_v21 = vadd.f32 %v7398_v52, %v7397_v14 }
0x40fd   :  { %v7392_v53 = vadd.f32 %v7391_v19, %v7390_v15 }
0x40fe   :  { %v7400_v55 = vrot.slane %v7399_v21, 2 }
0x40ff   :  { %v7393_v57 = vrot.slane %v7392_v53, 2 }
0x4100   :  { %v7401_v16 = vadd.f32 %v7400_v55, %v7399_v21 }
0x4101   :  { %v7394_v24 = vadd.f32 %v7393_v57, %v7392_v53 }
0x4102   :  { %v7402_v54 = vrot.slane %v7401_v16, 1 }
0x4103   :  { %v7395_v58 = vrot.slane %v7394_v24, 1 }
0x4104   :  { %v7403_v22 = vadd.f32 %v7402_v54, %v7401_v16 }
0x4105   :  { %v7396_v12 = vadd.f32 %v7395_v58, %v7394_v24 }
0x4106   :  { %v7405_v59 = vmax.f32 %v7403_v22, 0.0 }
0x4107   :  { %v7404_v25 = vmax.f32 %v7396_v12, 0.0 }
0x4109   :  { %v7418_v62 = vsel %vm7417_vm9, %v7405_v59, %v7404_v25 }
0x410a   :  { %8512 = vmatmul.mubr.msk.f32.vlgmr.msra.gmra.mrb[88].mxu0 %vm213_vm3, %v7418_v62 }
0x41dd   :  { %v7487_v42 = vpop.f32.mrb[88].mxu0 }
0x41de   :  { %v7488_v30 = vadd.f32 %v7717_v0, %v7487_v42  ;;  %v8513_v1 = vpop.f32.mrb[89].mxu0 }
0x41e0   :  { %7492 = vst.msk [vmem:[#allocation2] sm:$0x3] %vm7491_vm10, %v7488_v30 }
0x41e1   :  { %8874 = shalt.err (!%p8871_p4)
}
0x41e2   :  { %s8875_s27 = scalar_lea.hbm %s10168_s6, 32 }
0x41e3   :  { %p8876_p5 = scmp.ne.s32.totalorder %s10168_s6, %s8875_s27  ;;  %p8879_p6 = scmp.lt.u32.totalorder %s8875_s27, %s10168_s6 }
0x41e5   :  { %p8881_p7 = pnand %p8879_p6, %p8876_p5 }
0x41e7   :  { %8884 = shalt.err (!%p8881_p7)
}
0x41e8   :  { %7502 = dma.vmem_to_hbm [thread:$0]  %s7500_s11, 32, %s10168_s6, [#allocation3]  }
0x41e9   :  { %8885 = dma.done.wait [#allocation3], 32  }
0x41ea   :  { %8886 = vsyncadd [#allocation3], 4294967264 }
0x41eb   :  { %7506 = vsyncpa [#allocation3], 1 }

</bundles_post_ra>
